<compile_context>
chip_gen: v7x
topology: tpu7x:2x2x1
jax: 0.10.0
libtpu: 0.0.40
codegen_flags: <defaults>
</compile_context>

<pallas_src>
import functools

import jax
import jax.numpy as jnp
from jax import lax
from jax.experimental import pallas as pl
from jax.experimental.pallas import tpu as pltpu


def _round_up(x, m):
    return ((x + m - 1) // m) * m


def _pin_util_kernel(nx_ref, ny_ref, out_ref, *,
                     xl, yl, bin_size_x, bin_size_y,
                     density_on_x, mxu_dtype):
    """grid = (node split [parallel], node tile within split [reduction])."""
    k = pl.program_id(1)

    # Output block is resident across the node-tile (k) axis: zero at k == 0.
    @pl.when(k == 0)
    def _():
        out_ref[...] = jnp.zeros_like(out_ref)

    nodes_x = nx_ref[...]                 # (8, tile_n): attrs on sublanes
    x_min = nodes_x[0:1, :]               # (1, tile_n)
    x_max = nodes_x[1:2, :]
    nodes_y = ny_ref[...]                 # (tile_n, 8): attrs on lanes
    y_min = nodes_y[:, 0:1]               # (tile_n, 1)
    y_max = nodes_y[:, 1:2]

    bx_pad = out_ref.shape[0]
    by_pad = out_ref.shape[1]

    # Bin lower edges generated in-kernel (cheap iota; avoids two per-step
    # DMAs and lane-padded double buffers for the edge columns).  Padded bins
    # only feed output rows/cols that the wrapper slices away.
    bx_idx = lax.broadcasted_iota(jnp.int32, (bx_pad, 1), 0).astype(jnp.float32)
    bxlo = xl + bin_size_x * bx_idx                      # (bx_pad, 1)
    by_idx = lax.broadcasted_iota(jnp.int32, (1, by_pad), 1).astype(jnp.float32)
    bylo = yl + bin_size_y * by_idx                      # (1, by_pad)

    # Per-axis overlaps, clamped at 0.  Padded nodes have zero-width boxes and
    # zero density, so they contribute exactly 0.
    ov_x = jnp.maximum(
        jnp.minimum(x_max, bxlo + bin_size_x) - jnp.maximum(x_min, bxlo),
        0.0)                                             # (bx_pad, tile_n)
    ov_y = jnp.maximum(
        jnp.minimum(y_max, bylo + bin_size_y) - jnp.maximum(y_min, bylo),
        0.0)                                             # (tile_n, by_pad)

    # density (with out_scale folded in) goes on the SMALLER matrix.
    if density_on_x:
        ov_x = ov_x * nodes_x[2:3, :]                    # (1, tile_n) broadcast
    else:
        ov_y = ov_y * nodes_y[:, 2:3]                    # (tile_n, 1) broadcast

    if mxu_dtype != jnp.float32:
        ov_x = ov_x.astype(mxu_dtype)
        ov_y = ov_y.astype(mxu_dtype)

    # Canonical MXU orientation: K on LHS lanes, K on RHS sublanes -> no
    # transpose of either operand.  f32 accumulation into the resident block.
    out_ref[...] += lax.dot_general(
        ov_x, ov_y, (((1,), (0,)), ((), ())),
        preferred_element_type=jnp.float32)


def pin_utilization_forward(pos, node_size_x, node_size_y,
                            half_node_size_stretch_x, half_node_size_stretch_y,
                            pin_weights,
                            xl, yl, xh, yh,
                            num_physical_nodes, num_bins_x, num_bins_y,
                            unit_pin_capacity, *,
                            tile_n=2048,
                            mxu_dtype=jnp.float32,
                            num_node_splits=None,
                            density_on_x=None):
    num_nodes = node_size_x.shape[0]
    bin_size_x = (xh - xl) / num_bins_x
    bin_size_y = (yh - yl) / num_bins_y
    out_scale = 1.0 / (bin_size_x * bin_size_y * unit_pin_capacity)

    bx_pad = _round_up(num_bins_x, 8)
    by_pad = _round_up(num_bins_y, 128)   # lane-dense output / MXU columns

    # v7x has 2 TensorCores per chip: shard the node (reduction) axis across
    # them.  Single-TC chips (v5e / v6e) keep one serial pass (splitting there
    # only duplicates overlap work).
    if num_node_splits is None:
        try:
            kind = jax.devices()[0].device_kind.lower()
        except Exception:  # pragma: no cover
            kind = ""
        num_node_splits = 2 if "v7" in kind else 1
    num_node_splits = max(int(num_node_splits), 1)

    if density_on_x is None:
        density_on_x = bx_pad <= by_pad

    # ---- VMEM budgeting (v7x: 64 MiB physical, ~32 MiB default scoped) ----
    def vmem_estimate(t):
        in_bufs = 2 * (8 * t * 4) + 2 * (t * 128 * 4)   # packed_x + lane-padded packed_y
        out_buf = bx_pad * by_pad * 4                   # resident f32 accumulator
        inter = (2 * bx_pad * t + 2 * t * by_pad) * 4   # ov_x(+scaled), ov_y(+scaled)
        if mxu_dtype != jnp.float32:
            inter += (bx_pad * t + t * by_pad) * 2      # bf16 copies of operands
        return in_bufs + out_buf + 2 * inter            # 2x headroom on temps

    tile_n = max(int(tile_n) // 128 * 128, 256)
    while vmem_estimate(tile_n) > 40 * 2**20 and tile_n > 256:
        tile_n //= 2

    # ---- one-shot XLA preprocessing: boxes + density, packed lane-dense ----
    x = pos[:num_physical_nodes].astype(jnp.float32)
    y = pos[num_nodes:num_nodes + num_physical_nodes].astype(jnp.float32)
    nsx = node_size_x[:num_physical_nodes].astype(jnp.float32)
    nsy = node_size_y[:num_physical_nodes].astype(jnp.float32)
    hsx = half_node_size_stretch_x.astype(jnp.float32)
    hsy = half_node_size_stretch_y.astype(jnp.float32)
    pw = pin_weights.astype(jnp.float32)

    xc = x + 0.5 * nsx
    yc = y + 0.5 * nsy
    x_min, x_max = xc - hsx, xc + hsx
    y_min, y_max = yc - hsy, yc + hsy
    # Final output scale folded into density -> no epilogue pass in the kernel.
    # Precondition (guaranteed by PinUtilization.reset(): hsx, hsy are clamped
    # to >= 0.5 * bin_size * pin_stretch_ratio > 0), so no divide-by-zero here.
    density = pw * (out_scale / 4.0) / (hsx * hsy)

    n_pad = _round_up(max(int(num_physical_nodes), 1), tile_n * num_node_splits)
    pad = n_pad - num_physical_nodes

    def pad_row(a):
        return jnp.pad(a, (0, pad))       # zero pad: zero-width box, zero density

    zeros = jnp.zeros((n_pad,), jnp.float32)
    # x attrs: attributes on sublanes, nodes on lanes  -> MXU LHS K on lanes.
    packed_x = jnp.stack([pad_row(x_min), pad_row(x_max), pad_row(density),
                          zeros, zeros, zeros, zeros, zeros], axis=0)   # (8, n_pad)
    # y attrs: nodes on sublanes, attributes on lanes  -> MXU RHS K on sublanes.
    packed_y = jnp.stack([pad_row(y_min), pad_row(y_max), pad_row(density),
                          zeros, zeros, zeros, zeros, zeros], axis=1)   # (n_pad, 8)

    k_total = n_pad // tile_n
    k_per_split = k_total // num_node_splits

    kernel = functools.partial(
        _pin_util_kernel,
        xl=float(xl), yl=float(yl),
        bin_size_x=float(bin_size_x), bin_size_y=float(bin_size_y),
        density_on_x=bool(density_on_x), mxu_dtype=mxu_dtype)

    vmem_limit = int(min(max(vmem_estimate(tile_n) * 5 // 4, 32 * 2**20),
                         48 * 2**20))

    out = pl.pallas_call(
        kernel,
        out_shape=jax.ShapeDtypeStruct((num_node_splits, bx_pad, by_pad),
                                       jnp.float32),
        grid_spec=pltpu.PrefetchScalarGridSpec(
            num_scalar_prefetch=0,
            grid=(num_node_splits, k_per_split),        # reduction axis last
            in_specs=[
                pl.BlockSpec((8, tile_n),
                             lambda s, k: (0, s * k_per_split + k)),
                pl.BlockSpec((tile_n, 8),
                             lambda s, k: (s * k_per_split + k, 0)),
            ],
            out_specs=pl.BlockSpec((None, bx_pad, by_pad),
                                   lambda s, k: (s, 0, 0)),
        ),
        compiler_params=pltpu.CompilerParams(
            dimension_semantics=("parallel", "arbitrary"),
            vmem_limit_bytes=vmem_limit),
    )(packed_x, packed_y)

    out = out[0] if num_node_splits == 1 else jnp.sum(out, axis=0)
    return out[:num_bins_x, :num_bins_y].astype(pos.dtype)


def _reference(pos, node_size_x, node_size_y, hsx, hsy, pin_weights,
               xl, yl, xh, yh, num_physical_nodes, num_bins_x, num_bins_y,
               unit_pin_capacity):
    num_nodes = node_size_x.shape[0]
    bin_size_x = (xh - xl) / num_bins_x
    bin_size_y = (yh - yl) / num_bins_y
    x = pos[:num_physical_nodes]
    y = pos[num_nodes:num_nodes + num_physical_nodes]
    xc = x + 0.5 * node_size_x[:num_physical_nodes]
    yc = y + 0.5 * node_size_y[:num_physical_nodes]
    x_min, x_max = xc - hsx, xc + hsx
    y_min, y_max = yc - hsy, yc + hsy
    bxl = xl + bin_size_x * jnp.arange(num_bins_x, dtype=jnp.float32)
    byl = yl + bin_size_y * jnp.arange(num_bins_y, dtype=jnp.float32)
    ov_x = jnp.maximum(jnp.minimum(x_max[:, None], bxl[None, :] + bin_size_x)
                       - jnp.maximum(x_min[:, None], bxl[None, :]), 0.0)
    ov_y = jnp.maximum(jnp.minimum(y_max[:, None], byl[None, :] + bin_size_y)
                       - jnp.maximum(y_min[:, None], byl[None, :]), 0.0)
    density = pin_weights / (4.0 * hsx * hsy)
    out = jnp.einsum('nx,ny->xy', ov_x, ov_y * density[:, None])
    return out / (bin_size_x * bin_size_y * unit_pin_capacity)


if __name__ == "__main__":
    # Module configuration (small, synthetic).
    num_movable_nodes = 170
    num_filler_nodes = 30
    num_nodes = 230
    num_physical_nodes = num_nodes - num_filler_nodes   # 200
    xl, xh, yl, yh = 0.0, 64.0, 0.0, 64.0
    num_bins_x, num_bins_y = 32, 32
    unit_pin_capacity = 0.5
    pin_stretch_ratio = 1.414
    bin_size_x = (xh - xl) / num_bins_x
    bin_size_y = (yh - yl) / num_bins_y

    key = jax.random.PRNGKey(0)
    k1, k2, k3, k4, k5 = jax.random.split(key, 5)

    # Deterministic "parameters" (module __init__ inputs).
    node_size_x = jax.random.uniform(k1, (num_nodes,), jnp.float32, 0.5, 6.0)
    node_size_y = jax.random.uniform(k2, (num_nodes,), jnp.float32, 0.5, 6.0)
    pin_weights = jax.random.randint(
        k3, (num_physical_nodes,), 1, 9).astype(jnp.float32)

    # reset(): stretched half sizes (clamp(min=...) == maximum).
    half_node_size_stretch_x = 0.5 * jnp.maximum(
        node_size_x[:num_physical_nodes], bin_size_x * pin_stretch_ratio)
    half_node_size_stretch_y = 0.5 * jnp.maximum(
        node_size_y[:num_physical_nodes], bin_size_y * pin_stretch_ratio)

    # Input `pos`: flat (2*num_nodes,), x coords then y coords.
    pos_x = jax.random.uniform(k4, (num_nodes,), jnp.float32, xl, xh - 6.0)
    pos_y = jax.random.uniform(k5, (num_nodes,), jnp.float32, yl, yh - 6.0)
    pos = jnp.concatenate([pos_x, pos_y])

    ref = _reference(pos, node_size_x, node_size_y,
                     half_node_size_stretch_x, half_node_size_stretch_y,
                     pin_weights, xl, yl, xh, yh,
                     num_physical_nodes, num_bins_x, num_bins_y,
                     unit_pin_capacity)

    # Default path: f32 MXU inputs, auto split / density placement.
    out = pin_utilization_forward(
        pos, node_size_x, node_size_y,
        half_node_size_stretch_x, half_node_size_stretch_y, pin_weights,
        xl, yl, xh, yh, num_physical_nodes, num_bins_x, num_bins_y,
        unit_pin_capacity)
    out = jax.block_until_ready(out)
    assert out.shape == (num_bins_x, num_bins_y)
    assert jnp.allclose(out, ref, rtol=1e-4, atol=1e-4), \
        "default path mismatch vs reference"

    # Node-split path (as used on v7x's 2 TensorCores) + density-on-y branch.
    out_split = pin_utilization_forward(
        pos, node_size_x, node_size_y,
        half_node_size_stretch_x, half_node_size_stretch_y, pin_weights,
        xl, yl, xh, yh, num_physical_nodes, num_bins_x, num_bins_y,
        unit_pin_capacity, tile_n=256, num_node_splits=2, density_on_x=False)
    out_split = jax.block_until_ready(out_split)
    assert out_split.shape == (num_bins_x, num_bins_y)
    assert jnp.allclose(out_split, ref, rtol=1e-4, atol=1e-4), \
        "node-split path mismatch vs reference"

    print("KERNEL_OK")
</pallas_src>

<mosaic_0001>
module attributes {stable_mosaic.version = 11 : i64} {
  func.func @_pin_util_kernel(%arg0: i32, %arg1: i32, %arg2: memref<8x2048xf32, #tpu.memory_space<vmem>>, %arg3: memref<2048x8xf32, #tpu.memory_space<vmem>>, %arg4: memref<1x32x128xf32, #tpu.memory_space<vmem>>) attributes {dimension_semantics = [#tpu.dimension_semantics<parallel>, #tpu.dimension_semantics<arbitrary>], iteration_bounds = array<i64: 1, 1>, scalar_prefetch = 0 : i64, scratch_operands = 0 : i64, tpu.core_type = #tpu.core_type<tc>, window_params = [{transform_indices = @transform_0, window_bounds = array<i64: 8, 2048>}, {transform_indices = @transform_1, window_bounds = array<i64: 2048, 8>}, {transform_indices = @transform_2, window_bounds = array<i64: 1, 32, 128>}]} {
    %c0_i32 = arith.constant 0 : i32
    %0 = arith.cmpi eq, %arg1, %c0_i32 : i32
    %1 = arith.extui %0 : i1 to i32
    %c0_i32_0 = arith.constant 0 : i32
    %2 = arith.cmpi ne, %1, %c0_i32_0 : i32
    scf.if %2 {
      %cst_18 = arith.constant 0.000000e+00 : f32
      %53 = vector.broadcast %cst_18 : f32 to vector<32x128xf32>
      %c0_19 = arith.constant 0 : index
      %c0_20 = arith.constant 0 : index
      %c0_21 = arith.constant 0 : index
      %54 = vector.load %arg4[%c0_19, %c0_20, %c0_21] : memref<1x32x128xf32, #tpu.memory_space<vmem>>, vector<1x32x128xf32>
      %55 = vector.shape_cast %54 : vector<1x32x128xf32> to vector<32x128xf32>
      %56 = vector.shape_cast %53 : vector<32x128xf32> to vector<1x32x128xf32>
      tpu.vector_store %arg4[%c0_19, %c0_20, %c0_21], %56 {strides = array<i32>} : memref<1x32x128xf32, #tpu.memory_space<vmem>>, vector<1x32x128xf32>,
    } else {
    }
    %c0 = arith.constant 0 : index
    %c0_1 = arith.constant 0 : index
    %3 = vector.load %arg2[%c0, %c0_1] : memref<8x2048xf32, #tpu.memory_space<vmem>>, vector<8x2048xf32>
    %4 = vector.extract_strided_slice %3 {offsets = [0, 0], sizes = [1, 2048], strides = [1, 1]} : vector<8x2048xf32> to vector<1x2048xf32>
    %5 = vector.extract_strided_slice %3 {offsets = [1, 0], sizes = [1, 2048], strides = [1, 1]} : vector<8x2048xf32> to vector<1x2048xf32>
    %c0_2 = arith.constant 0 : index
    %c0_3 = arith.constant 0 : index
    %6 = vector.load %arg3[%c0_2, %c0_3] : memref<2048x8xf32, #tpu.memory_space<vmem>>, vector<2048x8xf32>
    %7 = vector.extract_strided_slice %6 {offsets = [0, 0], sizes = [2048, 1], strides = [1, 1]} : vector<2048x8xf32> to vector<2048x1xf32>
    %8 = vector.extract_strided_slice %6 {offsets = [0, 1], sizes = [2048, 1], strides = [1, 1]} : vector<2048x8xf32> to vector<2048x1xf32>
    %9 = tpu.iota {dimensions = array<i32: 0>} : vector<32x1xi32>
    %10 = arith.sitofp %9 : vector<32x1xi32> to vector<32x1xf32>
    %cst = arith.constant 2.000000e+00 : f32
    %11 = vector.broadcast %cst : f32 to vector<32x1xf32>
    %12 = arith.mulf %11, %10 : vector<32x1xf32>
    %cst_4 = arith.constant 0.000000e+00 : f32
    %13 = vector.broadcast %cst_4 : f32 to vector<32x1xf32>
    %14 = arith.addf %13, %12 : vector<32x1xf32>
    %15 = tpu.iota {dimensions = array<i32: 1>} : vector<1x128xi32>
    %16 = arith.sitofp %15 : vector<1x128xi32> to vector<1x128xf32>
    %cst_5 = arith.constant 2.000000e+00 : f32
    %17 = vector.broadcast %cst_5 : f32 to vector<1x128xf32>
    %18 = arith.mulf %17, %16 : vector<1x128xf32>
    %cst_6 = arith.constant 0.000000e+00 : f32
    %19 = vector.broadcast %cst_6 : f32 to vector<1x128xf32>
    %20 = arith.addf %19, %18 : vector<1x128xf32>
    %cst_7 = arith.constant 2.000000e+00 : f32
    %21 = vector.broadcast %cst_7 : f32 to vector<32x1xf32>
    %22 = arith.addf %14, %21 : vector<32x1xf32>
    %23 = vector.broadcast %5 : vector<1x2048xf32> to vector<32x2048xf32>
    %24 = vector.broadcast %22 : vector<32x1xf32> to vector<32x2048xf32>
    %25 = arith.minimumf %23, %24 : vector<32x2048xf32>
    %26 = vector.broadcast %4 : vector<1x2048xf32> to vector<32x2048xf32>
    %27 = vector.broadcast %14 : vector<32x1xf32> to vector<32x2048xf32>
    %28 = arith.maximumf %26, %27 : vector<32x2048xf32>
    %29 = arith.subf %25, %28 : vector<32x2048xf32>
    %cst_8 = arith.constant 0.000000e+00 : f32
    %30 = vector.broadcast %cst_8 : f32 to vector<32x2048xf32>
    %31 = arith.maximumf %29, %30 : vector<32x2048xf32>
    %cst_9 = arith.constant 2.000000e+00 : f32
    %32 = vector.broadcast %cst_9 : f32 to vector<1x128xf32>
    %33 = arith.addf %20, %32 : vector<1x128xf32>
    %34 = vector.broadcast %8 : vector<2048x1xf32> to vector<2048x128xf32>
    %35 = vector.broadcast %33 : vector<1x128xf32> to vector<2048x128xf32>
    %36 = arith.minimumf %34, %35 : vector<2048x128xf32>
    %37 = vector.broadcast %7 : vector<2048x1xf32> to vector<2048x128xf32>
    %38 = vector.broadcast %20 : vector<1x128xf32> to vector<2048x128xf32>
    %39 = arith.maximumf %37, %38 : vector<2048x128xf32>
    %40 = arith.subf %36, %39 : vector<2048x128xf32>
    %cst_10 = arith.constant 0.000000e+00 : f32
    %41 = vector.broadcast %cst_10 : f32 to vector<2048x128xf32>
    %42 = arith.maximumf %40, %41 : vector<2048x128xf32>
    %43 = vector.extract_strided_slice %3 {offsets = [2, 0], sizes = [1, 2048], strides = [1, 1]} : vector<8x2048xf32> to vector<1x2048xf32>
    %44 = vector.broadcast %43 : vector<1x2048xf32> to vector<32x2048xf32>
    %45 = arith.mulf %31, %44 : vector<32x2048xf32>
    %c0_11 = arith.constant 0 : index
    %c0_12 = arith.constant 0 : index
    %c0_13 = arith.constant 0 : index
    %46 = vector.load %arg4[%c0_11, %c0_12, %c0_13] : memref<1x32x128xf32, #tpu.memory_space<vmem>>, vector<1x32x128xf32>
    %47 = vector.shape_cast %46 : vector<1x32x128xf32> to vector<32x128xf32>
    %cst_14 = arith.constant dense<0.000000e+00> : vector<32x128xf32>
    %48 = tpu.matmul %45, %42, %cst_14 {dimension_numbers = #tpu.dot_dimension_numbers<[1], [0], [0], [1], [0, 0, 1, 1], [], []>} : vector<32x2048xf32>, vector<2048x128xf32>, vector<32x128xf32> -> vector<32x128xf32>
    %49 = arith.addf %47, %48 : vector<32x128xf32>
    %c0_15 = arith.constant 0 : index
    %c0_16 = arith.constant 0 : index
    %c0_17 = arith.constant 0 : index
    %50 = vector.load %arg4[%c0_15, %c0_16, %c0_17] : memref<1x32x128xf32, #tpu.memory_space<vmem>>, vector<1x32x128xf32>
    %51 = vector.shape_cast %50 : vector<1x32x128xf32> to vector<32x128xf32>
    %52 = vector.shape_cast %49 : vector<32x128xf32> to vector<1x32x128xf32>
    tpu.vector_store %arg4[%c0_15, %c0_16, %c0_17], %52 {strides = array<i32>} : memref<1x32x128xf32, #tpu.memory_space<vmem>>, vector<1x32x128xf32>,
    return
  }
  func.func @transform_0(%arg0: i32, %arg1: i32) -> (i32, i32) {
    %c1_i32 = arith.constant 1 : i32
    %0 = arith.muli %arg0, %c1_i32 : i32
    %1 = arith.addi %0, %arg1 : i32
    %c0_i32 = arith.constant 0 : i32
    %c0_i32_0 = arith.constant 0 : i32
    return %c0_i32, %1 : i32, i32
  }
  func.func @transform_1(%arg0: i32, %arg1: i32) -> (i32, i32) {
    %c1_i32 = arith.constant 1 : i32
    %0 = arith.muli %arg0, %c1_i32 : i32
    %1 = arith.addi %0, %arg1 : i32
    %c0_i32 = arith.constant 0 : i32
    %c0_i32_0 = arith.constant 0 : i32
    return %1, %c0_i32 : i32, i32
  }
  func.func @transform_2(%arg0: i32, %arg1: i32) -> (i32, i32, i32) {
    %c0_i32 = arith.constant 0 : i32
    %c0_i32_0 = arith.constant 0 : i32
    %c0_i32_1 = arith.constant 0 : i32
    return %arg0, %c0_i32, %c0_i32_0 : i32, i32, i32
  }
}

</mosaic_0001>

<bundles_post_ra>
// kernel: tpu_custom_call.1
= control target key start
LH: loop header
LB: loop body
LE: loop exit
PB: predicated region body
PF: predicated region fallthrough
CT: control target
= control target key end

     0   :  { %v5821_v2 = vmov 1   ;;  %s9972_s0 = inlined_call_operand.vmem [shape: f32[8,2048], index: 0, kind: input, shape index: {}]   ;;  %s9973_s1 = inlined_call_operand.vmem [shape: f32[2048,8], index: 1, kind: input, shape index: {}]   ;;  %s9974_s2 = inlined_call_operand.hbm [shape: f32[1,32,128], index: 2, kind: output, shape index: {}]  }
   0x1   :  { %v82_v0 = vld [vmem:[%s9973_s1 + $0x10] sm:$0xff]  ;;  %v80_v1 = vld [vmem:[%s9973_s1] sm:$0xff]  ;;  %5538 = vset.pattern.permute.xlu1 %v5821_v2  ;;  %5537 = vset.pattern.permute.xlu0 %v5821_v2  ;;  %v83_v3 = vld [vmem:[%s9973_s1 + $0x18] sm:$0xff] }
   0x2   :  { %759 = vperm.xlu1 %5538, %v82_v0   ;;  %749 = vperm.xlu0 %5537, %v80_v1   ;;  %v81_v4 = vld [vmem:[%s9973_s1 + $0x8] sm:$0xff]  ;;  %v84_v6 = vld [vmem:[%s9973_s1 + $0x20] sm:$0xff]  ;;  %v87_v7 = vld [vmem:[%s9973_s1 + $0x38] sm:$0xff] }
   0x3   :  { %v85_v5 = vld [vmem:[%s9973_s1 + $0x28] sm:$0xff]  ;;  %v86_v8 = vld [vmem:[%s9973_s1 + $0x30] sm:$0xff]  ;;  %v88_v10 = vld [vmem:[%s9973_s1 + $0x40] sm:$0xff] }
   0x4   :  { %v89_v9 = vld [vmem:[%s9973_s1 + $0x48] sm:$0xff]  ;;  %v91_v11 = vld [vmem:[%s9973_s1 + $0x58] sm:$0xff]  ;;  %v90_v12 = vld [vmem:[%s9973_s1 + $0x50] sm:$0xff] }
   0x5   :  { %v93_v13 = vld [vmem:[%s9973_s1 + $0x68] sm:$0xff]  ;;  %v92_v14 = vld [vmem:[%s9973_s1 + $0x60] sm:$0xff] }
   0x6   :  { %764 = vperm.xlu1 %5538, %v83_v3   ;;  %754 = vperm.xlu0 %5537, %v81_v4  }
   0xa   :  { %774 = vperm.xlu1 %5538, %v85_v5   ;;  %769 = vperm.xlu0 %5537, %v84_v6  }
   0xe   :  { %784 = vperm.xlu1 %5538, %v87_v7   ;;  %779 = vperm.xlu0 %5537, %v86_v8  }
  0x12   :  { %794 = vperm.xlu1 %5538, %v89_v9   ;;  %789 = vperm.xlu0 %5537, %v88_v10  }
  0x16   :  { %804 = vperm.xlu1 %5538, %v91_v11   ;;  %799 = vperm.xlu0 %5537, %v90_v12  }
  0x1a   :  { %814 = vperm.xlu1 %5538, %v93_v13   ;;  %809 = vperm.xlu0 %5537, %v92_v14  }
  0x1b   :  { %7 = vsyncpa [#allocation3], 0  ;;  %v95_v15 = vld [vmem:[%s9973_s1 + $0x78] sm:$0xff]  ;;  %v94_v16 = vld [vmem:[%s9973_s1 + $0x70] sm:$0xff] }
  0x1c   :  { %v97_v17 = vld [vmem:[%s9973_s1 + $0x88] sm:$0xff]  ;;  %v96_v18 = vld [vmem:[%s9973_s1 + $0x80] sm:$0xff]  ;;  %v99_v19 = vld [vmem:[%s9973_s1 + $0x98] sm:$0xff] }
  0x1d   :  { %v98_v20 = vld [vmem:[%s9973_s1 + $0x90] sm:$0xff]  ;;  %v101_v21 = vld [vmem:[%s9973_s1 + $0xa8] sm:$0xff]  ;;  %v100_v22 = vld [vmem:[%s9973_s1 + $0xa0] sm:$0xff] }
  0x1e   :  { %824 = vperm.xlu1 %5538, %v95_v15   ;;  %819 = vperm.xlu0 %5537, %v94_v16   ;;  %v103_v23 = vld [vmem:[%s9973_s1 + $0xb8] sm:$0xff]  ;;  %v102_v24 = vld [vmem:[%s9973_s1 + $0xb0] sm:$0xff]  ;;  %v105_v25 = vld [vmem:[%s9973_s1 + $0xc8] sm:$0xff] }
  0x1f   :  { %v104_v26 = vld [vmem:[%s9973_s1 + $0xc0] sm:$0xff]  ;;  %v107_v27 = vld [vmem:[%s9973_s1 + $0xd8] sm:$0xff]  ;;  %v106_v28 = vld [vmem:[%s9973_s1 + $0xd0] sm:$0xff] }
  0x20   :  { %v109_v29 = vld [vmem:[%s9973_s1 + $0xe8] sm:$0xff]  ;;  %v108_v30 = vld [vmem:[%s9973_s1 + $0xe0] sm:$0xff]  ;;  %v111_v31 = vld [vmem:[%s9973_s1 + $0xf8] sm:$0xff] }
  0x21   :  { %v110_v32 = vld [vmem:[%s9973_s1 + $0xf0] sm:$0xff]  ;;  %v113_v33 = vld [vmem:[%s9973_s1 + $0x108] sm:$0xff]  ;;  %v112_v34 = vld [vmem:[%s9973_s1 + $0x100] sm:$0xff] }
  0x22   :  { %834 = vperm.xlu1 %5538, %v97_v17   ;;  %829 = vperm.xlu0 %5537, %v96_v18   ;;  %v115_v35 = vld [vmem:[%s9973_s1 + $0x118] sm:$0xff]  ;;  %v114_v36 = vld [vmem:[%s9973_s1 + $0x110] sm:$0xff]  ;;  %v117_v37 = vld [vmem:[%s9973_s1 + $0x128] sm:$0xff] }
  0x23   :  { %v116_v38 = vld [vmem:[%s9973_s1 + $0x120] sm:$0xff]  ;;  %v119_v39 = vld [vmem:[%s9973_s1 + $0x138] sm:$0xff]  ;;  %v118_v40 = vld [vmem:[%s9973_s1 + $0x130] sm:$0xff] }
  0x24   :  { %v121_v41 = vld [vmem:[%s9973_s1 + $0x148] sm:$0xff]  ;;  %v120_v42 = vld [vmem:[%s9973_s1 + $0x140] sm:$0xff]  ;;  %v123_v43 = vld [vmem:[%s9973_s1 + $0x158] sm:$0xff] }
  0x25   :  { %v122_v44 = vld [vmem:[%s9973_s1 + $0x150] sm:$0xff]  ;;  %v125_v45 = vld [vmem:[%s9973_s1 + $0x168] sm:$0xff]  ;;  %v124_v46 = vld [vmem:[%s9973_s1 + $0x160] sm:$0xff] }
  0x26   :  { %844 = vperm.xlu1 %5538, %v99_v19   ;;  %839 = vperm.xlu0 %5537, %v98_v20   ;;  %v127_v47 = vld [vmem:[%s9973_s1 + $0x178] sm:$0xff]  ;;  %v126_v48 = vld [vmem:[%s9973_s1 + $0x170] sm:$0xff]  ;;  %v129_v49 = vld [vmem:[%s9973_s1 + $0x188] sm:$0xff] }
  0x27   :  { %v128_v50 = vld [vmem:[%s9973_s1 + $0x180] sm:$0xff]  ;;  %v131_v51 = vld [vmem:[%s9973_s1 + $0x198] sm:$0xff]  ;;  %v130_v52 = vld [vmem:[%s9973_s1 + $0x190] sm:$0xff] }
  0x28   :  { %v133_v53 = vld [vmem:[%s9973_s1 + $0x1a8] sm:$0xff]  ;;  %v132_v54 = vld [vmem:[%s9973_s1 + $0x1a0] sm:$0xff]  ;;  %v135_v55 = vld [vmem:[%s9973_s1 + $0x1b8] sm:$0xff] }
  0x29   :  { %v134_v56 = vld [vmem:[%s9973_s1 + $0x1b0] sm:$0xff]  ;;  %v137_v57 = vld [vmem:[%s9973_s1 + $0x1c8] sm:$0xff]  ;;  %v136_v58 = vld [vmem:[%s9973_s1 + $0x1c0] sm:$0xff] }
  0x2a   :  { %854 = vperm.xlu1 %5538, %v101_v21   ;;  %849 = vperm.xlu0 %5537, %v100_v22   ;;  %v139_v59 = vld [vmem:[%s9973_s1 + $0x1d8] sm:$0xff]  ;;  %v138_v60 = vld [vmem:[%s9973_s1 + $0x1d0] sm:$0xff]  ;;  %v141_v61 = vld [vmem:[%s9973_s1 + $0x1e8] sm:$0xff] }
  0x2b   :  { %v140_v62 = vld [vmem:[%s9973_s1 + $0x1e0] sm:$0xff]  ;;  %v143_v63 = vld [vmem:[%s9973_s1 + $0x1f8] sm:$0xff]  ;;  %v142_v0 = vld [vmem:[%s9973_s1 + $0x1f0] sm:$0xff] }
  0x2c   :  { %v145_v1 = vld [vmem:[%s9973_s1 + $0x208] sm:$0xff]  ;;  %v144_v2 = vld [vmem:[%s9973_s1 + $0x200] sm:$0xff]  ;;  %v147_v5 = vld [vmem:[%s9973_s1 + $0x218] sm:$0xff] }
  0x2d   :  { %v146_v6 = vld [vmem:[%s9973_s1 + $0x210] sm:$0xff]  ;;  %v149_v9 = vld [vmem:[%s9973_s1 + $0x228] sm:$0xff]  ;;  %v148_v10 = vld [vmem:[%s9973_s1 + $0x220] sm:$0xff] }
  0x2e   :  { %864 = vperm.xlu1 %5538, %v103_v23   ;;  %859 = vperm.xlu0 %5537, %v102_v24   ;;  %v151_v13 = vld [vmem:[%s9973_s1 + $0x238] sm:$0xff]  ;;  %v150_v14 = vld [vmem:[%s9973_s1 + $0x230] sm:$0xff]  ;;  %v153_v17 = vld [vmem:[%s9973_s1 + $0x248] sm:$0xff] }
  0x2f   :  { %v152_v18 = vld [vmem:[%s9973_s1 + $0x240] sm:$0xff]  ;;  %v155_v21 = vld [vmem:[%s9973_s1 + $0x258] sm:$0xff]  ;;  %v154_v22 = vld [vmem:[%s9973_s1 + $0x250] sm:$0xff] }
  0x32   :  { %874 = vperm.xlu1 %5538, %v105_v25   ;;  %869 = vperm.xlu0 %5537, %v104_v26   ;;  %v157_v25 = vld [vmem:[%s9973_s1 + $0x268] sm:$0xff]  ;;  %v156_v26 = vld [vmem:[%s9973_s1 + $0x260] sm:$0xff] }
  0x36   :  { %884 = vperm.xlu1 %5538, %v107_v27   ;;  %879 = vperm.xlu0 %5537, %v106_v28  }
  0x3a   :  { %894 = vperm.xlu1 %5538, %v109_v29   ;;  %889 = vperm.xlu0 %5537, %v108_v30   ;;  %v159_v29 = vld [vmem:[%s9973_s1 + $0x278] sm:$0xff]  ;;  %v158_v30 = vld [vmem:[%s9973_s1 + $0x270] sm:$0xff] }
  0x3e   :  { %904 = vperm.xlu1 %5538, %v111_v31   ;;  %899 = vperm.xlu0 %5537, %v110_v32  }
  0x42   :  { %914 = vperm.xlu1 %5538, %v113_v33   ;;  %909 = vperm.xlu0 %5537, %v112_v34   ;;  %v161_v33 = vld [vmem:[%s9973_s1 + $0x288] sm:$0xff]  ;;  %v160_v34 = vld [vmem:[%s9973_s1 + $0x280] sm:$0xff] }
  0x46   :  { %924 = vperm.xlu1 %5538, %v115_v35   ;;  %919 = vperm.xlu0 %5537, %v114_v36  }
  0x4a   :  { %934 = vperm.xlu1 %5538, %v117_v37   ;;  %929 = vperm.xlu0 %5537, %v116_v38   ;;  %v163_v37 = vld [vmem:[%s9973_s1 + $0x298] sm:$0xff]  ;;  %v162_v38 = vld [vmem:[%s9973_s1 + $0x290] sm:$0xff] }
  0x4e   :  { %944 = vperm.xlu1 %5538, %v119_v39   ;;  %939 = vperm.xlu0 %5537, %v118_v40  }
  0x52   :  { %954 = vperm.xlu1 %5538, %v121_v41   ;;  %949 = vperm.xlu0 %5537, %v120_v42   ;;  %v165_v41 = vld [vmem:[%s9973_s1 + $0x2a8] sm:$0xff]  ;;  %v164_v42 = vld [vmem:[%s9973_s1 + $0x2a0] sm:$0xff] }
  0x56   :  { %964 = vperm.xlu1 %5538, %v123_v43   ;;  %959 = vperm.xlu0 %5537, %v122_v44  }
  0x5a   :  { %974 = vperm.xlu1 %5538, %v125_v45   ;;  %969 = vperm.xlu0 %5537, %v124_v46   ;;  %v167_v45 = vld [vmem:[%s9973_s1 + $0x2b8] sm:$0xff]  ;;  %v166_v46 = vld [vmem:[%s9973_s1 + $0x2b0] sm:$0xff] }
  0x5e   :  { %984 = vperm.xlu1 %5538, %v127_v47   ;;  %979 = vperm.xlu0 %5537, %v126_v48  }
  0x62   :  { %994 = vperm.xlu1 %5538, %v129_v49   ;;  %989 = vperm.xlu0 %5537, %v128_v50   ;;  %v169_v49 = vld [vmem:[%s9973_s1 + $0x2c8] sm:$0xff]  ;;  %v168_v50 = vld [vmem:[%s9973_s1 + $0x2c0] sm:$0xff] }
  0x66   :  { %1004 = vperm.xlu1 %5538, %v131_v51   ;;  %999 = vperm.xlu0 %5537, %v130_v52  }
  0x6a   :  { %1014 = vperm.xlu1 %5538, %v133_v53   ;;  %1009 = vperm.xlu0 %5537, %v132_v54   ;;  %v171_v53 = vld [vmem:[%s9973_s1 + $0x2d8] sm:$0xff]  ;;  %v170_v54 = vld [vmem:[%s9973_s1 + $0x2d0] sm:$0xff] }
  0x6e   :  { %1024 = vperm.xlu1 %5538, %v135_v55   ;;  %1019 = vperm.xlu0 %5537, %v134_v56  }
  0x72   :  { %1034 = vperm.xlu1 %5538, %v137_v57   ;;  %1029 = vperm.xlu0 %5537, %v136_v58   ;;  %v173_v57 = vld [vmem:[%s9973_s1 + $0x2e8] sm:$0xff]  ;;  %v172_v58 = vld [vmem:[%s9973_s1 + $0x2e0] sm:$0xff] }
  0x76   :  { %1044 = vperm.xlu1 %5538, %v139_v59   ;;  %1039 = vperm.xlu0 %5537, %v138_v60  }
  0x7a   :  { %1054 = vperm.xlu1 %5538, %v141_v61   ;;  %1049 = vperm.xlu0 %5537, %v140_v62   ;;  %v175_v61 = vld [vmem:[%s9973_s1 + $0x2f8] sm:$0xff]  ;;  %v174_v62 = vld [vmem:[%s9973_s1 + $0x2f0] sm:$0xff] }
  0x7e   :  { %1064 = vperm.xlu1 %5538, %v143_v63   ;;  %1059 = vperm.xlu0 %5537, %v142_v0  }
  0x81   :  { %v6039_v3 = vpop.permute.xlu1 %759  ;;  %v6041_v4 = vpop.permute.xlu0 %749 }
  0x82   :  { %1074 = vperm.xlu1 %5538, %v145_v1   ;;  %1069 = vperm.xlu0 %5537, %v144_v2   ;;  %v177_v1 = vld [vmem:[%s9973_s1 + $0x308] sm:$0xff]  ;;  %v176_v2 = vld [vmem:[%s9973_s1 + $0x300] sm:$0xff] }
  0x85   :  { %v6049_v7 = vpop.permute.xlu1 %764  ;;  %v6051_v8 = vpop.permute.xlu0 %754 }
  0x86   :  { %1084 = vperm.xlu1 %5538, %v147_v5   ;;  %1079 = vperm.xlu0 %5537, %v146_v6  }
  0x89   :  { %v6059_v11 = vpop.permute.xlu1 %774  ;;  %v6061_v12 = vpop.permute.xlu0 %769 }
  0x8a   :  { %1094 = vperm.xlu1 %5538, %v149_v9   ;;  %1089 = vperm.xlu0 %5537, %v148_v10   ;;  %v179_v9 = vld [vmem:[%s9973_s1 + $0x318] sm:$0xff]  ;;  %v178_v10 = vld [vmem:[%s9973_s1 + $0x310] sm:$0xff] }
  0x8d   :  { %v6069_v15 = vpop.permute.xlu1 %784  ;;  %v6071_v16 = vpop.permute.xlu0 %779 }
  0x8e   :  { %1104 = vperm.xlu1 %5538, %v151_v13   ;;  %1099 = vperm.xlu0 %5537, %v150_v14  }
  0x91   :  { %v6079_v19 = vpop.permute.xlu1 %794  ;;  %v6081_v20 = vpop.permute.xlu0 %789 }
  0x92   :  { %1114 = vperm.xlu1 %5538, %v153_v17   ;;  %1109 = vperm.xlu0 %5537, %v152_v18   ;;  %v181_v17 = vld [vmem:[%s9973_s1 + $0x328] sm:$0xff]  ;;  %v180_v18 = vld [vmem:[%s9973_s1 + $0x320] sm:$0xff] }
  0x95   :  { %v6089_v23 = vpop.permute.xlu1 %804  ;;  %v6091_v24 = vpop.permute.xlu0 %799 }
  0x96   :  { %1124 = vperm.xlu1 %5538, %v155_v21   ;;  %1119 = vperm.xlu0 %5537, %v154_v22  }
  0x99   :  { %v6099_v27 = vpop.permute.xlu1 %814  ;;  %v6101_v28 = vpop.permute.xlu0 %809 }
  0x9a   :  { %1134 = vperm.xlu1 %5538, %v157_v25   ;;  %1129 = vperm.xlu0 %5537, %v156_v26   ;;  %v183_v25 = vld [vmem:[%s9973_s1 + $0x338] sm:$0xff]  ;;  %v182_v26 = vld [vmem:[%s9973_s1 + $0x330] sm:$0xff] }
  0x9d   :  { %v6109_v31 = vpop.permute.xlu1 %824  ;;  %v6111_v32 = vpop.permute.xlu0 %819 }
  0x9e   :  { %10151 = vst [vmem:[#allocation5_spill] sm:$0xff] %v6109_v31  ;;  %10152 = vst [vmem:[#allocation6_spill] sm:$0xff] %v6111_v32  ;;  %1144 = vperm.xlu1 %5538, %v159_v29   ;;  %1139 = vperm.xlu0 %5537, %v158_v30  }
  0xa1   :  { %v6119_v35 = vpop.permute.xlu1 %834  ;;  %v6121_v36 = vpop.permute.xlu0 %829 }
  0xa2   :  { %1154 = vperm.xlu1 %5538, %v161_v33   ;;  %1149 = vperm.xlu0 %5537, %v160_v34   ;;  %v185_v33 = vld [vmem:[%s9973_s1 + $0x348] sm:$0xff]  ;;  %v184_v34 = vld [vmem:[%s9973_s1 + $0x340] sm:$0xff] }
  0xa5   :  { %v6129_v39 = vpop.permute.xlu1 %844  ;;  %v6131_v40 = vpop.permute.xlu0 %839 }
  0xa6   :  { %1164 = vperm.xlu1 %5538, %v163_v37   ;;  %1159 = vperm.xlu0 %5537, %v162_v38  }
  0xa9   :  { %v6139_v43 = vpop.permute.xlu1 %854  ;;  %v6141_v44 = vpop.permute.xlu0 %849 }
  0xaa   :  { %1174 = vperm.xlu1 %5538, %v165_v41   ;;  %1169 = vperm.xlu0 %5537, %v164_v42   ;;  %v187_v41 = vld [vmem:[%s9973_s1 + $0x358] sm:$0xff]  ;;  %v186_v42 = vld [vmem:[%s9973_s1 + $0x350] sm:$0xff] }
  0xad   :  { %v6149_v47 = vpop.permute.xlu1 %864  ;;  %v6151_v48 = vpop.permute.xlu0 %859 }
  0xae   :  { %1184 = vperm.xlu1 %5538, %v167_v45   ;;  %1179 = vperm.xlu0 %5537, %v166_v46  }
  0xb1   :  { %v6159_v51 = vpop.permute.xlu1 %874  ;;  %v6161_v52 = vpop.permute.xlu0 %869 }
  0xb2   :  { %1194 = vperm.xlu1 %5538, %v169_v49   ;;  %1189 = vperm.xlu0 %5537, %v168_v50   ;;  %v189_v49 = vld [vmem:[%s9973_s1 + $0x368] sm:$0xff]  ;;  %v188_v50 = vld [vmem:[%s9973_s1 + $0x360] sm:$0xff] }
  0xb5   :  { %v6169_v55 = vpop.permute.xlu1 %884  ;;  %v6171_v56 = vpop.permute.xlu0 %879 }
  0xb6   :  { %1204 = vperm.xlu1 %5538, %v171_v53   ;;  %1199 = vperm.xlu0 %5537, %v170_v54  }
  0xb9   :  { %v6179_v59 = vpop.permute.xlu1 %894  ;;  %v6181_v60 = vpop.permute.xlu0 %889 }
  0xba   :  { %1214 = vperm.xlu1 %5538, %v173_v57   ;;  %1209 = vperm.xlu0 %5537, %v172_v58   ;;  %v191_v57 = vld [vmem:[%s9973_s1 + $0x378] sm:$0xff]  ;;  %v190_v58 = vld [vmem:[%s9973_s1 + $0x370] sm:$0xff] }
  0xbd   :  { %v6189_v63 = vpop.permute.xlu1 %904  ;;  %v6191_v0 = vpop.permute.xlu0 %899 }
  0xbe   :  { %10153 = vst [vmem:[#allocation7_spill] sm:$0xff] %v6189_v63  ;;  %10154 = vst [vmem:[#allocation8_spill] sm:$0xff] %v6191_v0  ;;  %1224 = vperm.xlu1 %5538, %v175_v61   ;;  %1219 = vperm.xlu0 %5537, %v174_v62  }
  0xc1   :  { %v6199_v5 = vpop.permute.xlu1 %914  ;;  %v6201_v6 = vpop.permute.xlu0 %909 }
  0xc2   :  { %10155 = vst [vmem:[#allocation9_spill] sm:$0xff] %v6199_v5  ;;  %10156 = vst [vmem:[#allocation10_spill] sm:$0xff] %v6201_v6  ;;  %1234 = vperm.xlu1 %5538, %v177_v1   ;;  %1229 = vperm.xlu0 %5537, %v176_v2   ;;  %v193_v1 = vld [vmem:[%s9973_s1 + $0x388] sm:$0xff]  ;;  %v192_v2 = vld [vmem:[%s9973_s1 + $0x380] sm:$0xff] }
  0xc3   :  { %v5622_v6 = vld [vmem:[%s9973_s1 + $0x288] sm:$0xff] }
  0xc5   :  { %v6209_v13 = vpop.permute.xlu1 %924  ;;  %v6211_v14 = vpop.permute.xlu0 %919 }
  0xc6   :  { %10157 = vst [vmem:[#allocation11_spill] sm:$0xff] %v6209_v13  ;;  %10158 = vst [vmem:[#allocation12_spill] sm:$0xff] %v6211_v14  ;;  %1244 = vperm.xlu1 %5538, %v179_v9   ;;  %1239 = vperm.xlu0 %5537, %v178_v10  }
  0xc9   :  { %v6219_v21 = vpop.permute.xlu1 %934  ;;  %v6221_v22 = vpop.permute.xlu0 %929 }
  0xca   :  { %10159 = vst [vmem:[#allocation13_spill] sm:$0xff] %v6219_v21  ;;  %10160 = vst [vmem:[#allocation14_spill] sm:$0xff] %v6221_v22  ;;  %1254 = vperm.xlu1 %5538, %v181_v17   ;;  %1249 = vperm.xlu0 %5537, %v180_v18   ;;  %v195_v17 = vld [vmem:[%s9973_s1 + $0x398] sm:$0xff]  ;;  %v194_v18 = vld [vmem:[%s9973_s1 + $0x390] sm:$0xff] }
  0xcd   :  { %v6229_v29 = vpop.permute.xlu1 %944  ;;  %v6231_v30 = vpop.permute.xlu0 %939 }
  0xce   :  { %10161 = vst [vmem:[#allocation15_spill] sm:$0xff] %v6229_v29  ;;  %10162 = vst [vmem:[#allocation16_spill] sm:$0xff] %v6231_v30  ;;  %1264 = vperm.xlu1 %5538, %v183_v25   ;;  %1259 = vperm.xlu0 %5537, %v182_v26  }
  0xd1   :  { %v6239_v37 = vpop.permute.xlu1 %954  ;;  %v6241_v38 = vpop.permute.xlu0 %949 }
  0xd2   :  { %10163 = vst [vmem:[#allocation17_spill] sm:$0xff] %v6239_v37  ;;  %10164 = vst [vmem:[#allocation18_spill] sm:$0xff] %v6241_v38  ;;  %1274 = vperm.xlu1 %5538, %v185_v33   ;;  %1269 = vperm.xlu0 %5537, %v184_v34   ;;  %v197_v33 = vld [vmem:[%s9973_s1 + $0x3a8] sm:$0xff]  ;;  %v196_v34 = vld [vmem:[%s9973_s1 + $0x3a0] sm:$0xff] }
  0xd5   :  { %v6249_v45 = vpop.permute.xlu1 %964  ;;  %v6251_v46 = vpop.permute.xlu0 %959 }
  0xd6   :  { %10165 = vst [vmem:[#allocation19_spill] sm:$0xff] %v6249_v45  ;;  %10166 = vst [vmem:[#allocation20_spill] sm:$0xff] %v6251_v46  ;;  %1284 = vperm.xlu1 %5538, %v187_v41   ;;  %1279 = vperm.xlu0 %5537, %v186_v42  }
  0xd9   :  { %v6259_v53 = vpop.permute.xlu1 %974  ;;  %v6261_v54 = vpop.permute.xlu0 %969 }
  0xda   :  { %10167 = vst [vmem:[#allocation21_spill] sm:$0xff] %v6259_v53  ;;  %10168 = vst [vmem:[#allocation22_spill] sm:$0xff] %v6261_v54  ;;  %1294 = vperm.xlu1 %5538, %v189_v49   ;;  %1289 = vperm.xlu0 %5537, %v188_v50   ;;  %v199_v49 = vld [vmem:[%s9973_s1 + $0x3b8] sm:$0xff]  ;;  %v198_v50 = vld [vmem:[%s9973_s1 + $0x3b0] sm:$0xff] }
  0xdd   :  { %v6269_v61 = vpop.permute.xlu1 %984  ;;  %v6271_v62 = vpop.permute.xlu0 %979 }
  0xde   :  { %10169 = vst [vmem:[#allocation23_spill] sm:$0xff] %v6269_v61  ;;  %10170 = vst [vmem:[#allocation24_spill] sm:$0xff] %v6271_v62  ;;  %1304 = vperm.xlu1 %5538, %v191_v57   ;;  %1299 = vperm.xlu0 %5537, %v190_v58   ;;  %v5615_v61 = vld [vmem:[%s9973_s1 + $0x250] sm:$0xff] }
  0xe1   :  { %v6279_v9 = vpop.permute.xlu1 %994  ;;  %v6281_v10 = vpop.permute.xlu0 %989 }
  0xe2   :  { %10171 = vst [vmem:[#allocation25_spill] sm:$0xff] %v6279_v9  ;;  %10172 = vst [vmem:[#allocation26_spill] sm:$0xff] %v6281_v10  ;;  %1314 = vperm.xlu1 %5538, %v193_v1   ;;  %1309 = vperm.xlu0 %5537, %v192_v2   ;;  %v201_v1 = vld [vmem:[%s9973_s1 + $0x3c8] sm:$0xff]  ;;  %v200_v2 = vld [vmem:[%s9973_s1 + $0x3c0] sm:$0xff] }
  0xe3   :  { %v5612_v10 = vld [vmem:[%s9973_s1 + $0x238] sm:$0xff] }
  0xe5   :  { %v6289_v25 = vpop.permute.xlu1 %1004  ;;  %v6291_v26 = vpop.permute.xlu0 %999 }
  0xe6   :  { %10173 = vst [vmem:[#allocation27_spill] sm:$0xff] %v6289_v25  ;;  %10174 = vst [vmem:[#allocation28_spill] sm:$0xff] %v6291_v26  ;;  %1324 = vperm.xlu1 %5538, %v195_v17   ;;  %1319 = vperm.xlu0 %5537, %v194_v18  }
  0xe9   :  { %v6299_v41 = vpop.permute.xlu1 %1014  ;;  %v6301_v42 = vpop.permute.xlu0 %1009 }
  0xea   :  { %10175 = vst [vmem:[#allocation29_spill] sm:$0xff] %v6299_v41  ;;  %10176 = vst [vmem:[#allocation30_spill] sm:$0xff] %v6301_v42  ;;  %1334 = vperm.xlu1 %5538, %v197_v33   ;;  %1329 = vperm.xlu0 %5537, %v196_v34   ;;  %v203_v33 = vld [vmem:[%s9973_s1 + $0x3d8] sm:$0xff]  ;;  %v202_v34 = vld [vmem:[%s9973_s1 + $0x3d0] sm:$0xff] }
  0xeb   :  { %v5610_v41 = vld [vmem:[%s9973_s1 + $0x228] sm:$0xff] }
  0xed   :  { %v6309_v57 = vpop.permute.xlu1 %1024  ;;  %v6311_v58 = vpop.permute.xlu0 %1019 }
  0xee   :  { %10177 = vst [vmem:[#allocation31_spill] sm:$0xff] %v6309_v57  ;;  %10178 = vst [vmem:[#allocation32_spill] sm:$0xff] %v6311_v58  ;;  %1344 = vperm.xlu1 %5538, %v199_v49   ;;  %1339 = vperm.xlu0 %5537, %v198_v50  }
  0xf1   :  { %v6319_v17 = vpop.permute.xlu1 %1034  ;;  %v6321_v18 = vpop.permute.xlu0 %1029 }
  0xf2   :  { %10179 = vst [vmem:[#allocation33_spill] sm:$0xff] %v6319_v17  ;;  %10180 = vst [vmem:[#allocation34_spill] sm:$0xff] %v6321_v18  ;;  %1354 = vperm.xlu1 %5538, %v201_v1   ;;  %1349 = vperm.xlu0 %5537, %v200_v2   ;;  %v205_v18 = vld [vmem:[%s9973_s1 + $0x3e8] sm:$0xff]  ;;  %v204_v1 = vld [vmem:[%s9973_s1 + $0x3e0] sm:$0xff] }
  0xf5   :  { %v6329_v49 = vpop.permute.xlu1 %1044  ;;  %v6331_v50 = vpop.permute.xlu0 %1039 }
  0xf6   :  { %10181 = vst [vmem:[#allocation35_spill] sm:$0xff] %v6329_v49  ;;  %10182 = vst [vmem:[#allocation36_spill] sm:$0xff] %v6331_v50  ;;  %1364 = vperm.xlu1 %5538, %v203_v33   ;;  %1359 = vperm.xlu0 %5537, %v202_v34   ;;  %v207_v50 = vld [vmem:[%s9973_s1 + $0x3f8] sm:$0xff]  ;;  %v206_v33 = vld [vmem:[%s9973_s1 + $0x3f0] sm:$0xff] }
  0xf9   :  { %v6339_v2 = vpop.permute.xlu1 %1054  ;;  %v6341_v17 = vpop.permute.xlu0 %1049 }
  0xfa   :  { %10183 = vst [vmem:[#allocation37_spill] sm:$0xff] %v6339_v2  ;;  %10184 = vst [vmem:[#allocation38_spill] sm:$0xff] %v6341_v17  ;;  %1374 = vperm.xlu1 %5538, %v205_v18   ;;  %1369 = vperm.xlu0 %5537, %v204_v1   ;;  %v209_v17 = vld [vmem:[%s9973_s1 + $0x408] sm:$0xff]  ;;  %v208_v18 = vld [vmem:[%s9973_s1 + $0x400] sm:$0xff] }
  0xfd   :  { %v6349_v34 = vpop.permute.xlu1 %1064  ;;  %v6351_v49 = vpop.permute.xlu0 %1059 }
  0xfe   :  { %10185 = vst [vmem:[#allocation39_spill] sm:$0xff] %v6349_v34  ;;  %10186 = vst [vmem:[#allocation40_spill] sm:$0xff] %v6351_v49  ;;  %1384 = vperm.xlu1 %5538, %v207_v50   ;;  %1379 = vperm.xlu0 %5537, %v206_v33   ;;  %v211_v49 = vld [vmem:[%s9973_s1 + $0x418] sm:$0xff]  ;;  %v210_v50 = vld [vmem:[%s9973_s1 + $0x410] sm:$0xff] }
 0x101   :  { %v6359_v1 = vpop.permute.xlu1 %1074  ;;  %v6361_v2 = vpop.permute.xlu0 %1069 }
 0x102   :  { %10187 = vst [vmem:[#allocation41_spill] sm:$0xff] %v6359_v1  ;;  %10188 = vst [vmem:[#allocation42_spill] sm:$0xff] %v6361_v2  ;;  %1394 = vperm.xlu1 %5538, %v209_v17   ;;  %1389 = vperm.xlu0 %5537, %v208_v18   ;;  %v213_v2 = vld [vmem:[%s9973_s1 + $0x428] sm:$0xff]  ;;  %v212_v17 = vld [vmem:[%s9973_s1 + $0x420] sm:$0xff] }
 0x105   :  { %v6369_v33 = vpop.permute.xlu1 %1084  ;;  %v6371_v34 = vpop.permute.xlu0 %1079 }
 0x106   :  { %10189 = vst [vmem:[#allocation43_spill] sm:$0xff] %v6369_v33  ;;  %10190 = vst [vmem:[#allocation44_spill] sm:$0xff] %v6371_v34  ;;  %1404 = vperm.xlu1 %5538, %v211_v49   ;;  %1399 = vperm.xlu0 %5537, %v210_v50   ;;  %v215_v34 = vld [vmem:[%s9973_s1 + $0x438] sm:$0xff]  ;;  %v214_v49 = vld [vmem:[%s9973_s1 + $0x430] sm:$0xff] }
 0x109   :  { %v6379_v18 = vpop.permute.xlu1 %1094  ;;  %v6381_v1 = vpop.permute.xlu0 %1089 }
 0x10a   :  { %10191 = vst [vmem:[#allocation45_spill] sm:$0xff] %v6379_v18  ;;  %10192 = vst [vmem:[#allocation46_spill] sm:$0xff] %v6381_v1  ;;  %1414 = vperm.xlu1 %5538, %v213_v2   ;;  %1409 = vperm.xlu0 %5537, %v212_v17   ;;  %v217_v1 = vld [vmem:[%s9973_s1 + $0x448] sm:$0xff]  ;;  %v216_v2 = vld [vmem:[%s9973_s1 + $0x440] sm:$0xff] }
 0x10d   :  { %v6389_v50 = vpop.permute.xlu1 %1104  ;;  %v6391_v33 = vpop.permute.xlu0 %1099 }
 0x10e   :  { %10193 = vst [vmem:[#allocation47_spill] sm:$0xff] %v6389_v50  ;;  %10194 = vst [vmem:[#allocation48_spill] sm:$0xff] %v6391_v33  ;;  %1424 = vperm.xlu1 %5538, %v215_v34   ;;  %1419 = vperm.xlu0 %5537, %v214_v49   ;;  %v219_v33 = vld [vmem:[%s9973_s1 + $0x458] sm:$0xff]  ;;  %v218_v34 = vld [vmem:[%s9973_s1 + $0x450] sm:$0xff] }
 0x111   :  { %v6399_v17 = vpop.permute.xlu1 %1114  ;;  %v6401_v18 = vpop.permute.xlu0 %1109 }
 0x112   :  { %10195 = vst [vmem:[#allocation49_spill] sm:$0xff] %v6399_v17  ;;  %10196 = vst [vmem:[#allocation50_spill] sm:$0xff] %v6401_v18  ;;  %1434 = vperm.xlu1 %5538, %v217_v1   ;;  %1429 = vperm.xlu0 %5537, %v216_v2   ;;  %v221_v18 = vld [vmem:[%s9973_s1 + $0x468] sm:$0xff]  ;;  %v220_v1 = vld [vmem:[%s9973_s1 + $0x460] sm:$0xff] }
 0x115   :  { %v6409_v49 = vpop.permute.xlu1 %1124  ;;  %v6411_v50 = vpop.permute.xlu0 %1119 }
 0x116   :  { %10197 = vst [vmem:[#allocation51_spill] sm:$0xff] %v6409_v49  ;;  %10198 = vst [vmem:[#allocation52_spill] sm:$0xff] %v6411_v50  ;;  %1444 = vperm.xlu1 %5538, %v219_v33   ;;  %1439 = vperm.xlu0 %5537, %v218_v34   ;;  %v223_v50 = vld [vmem:[%s9973_s1 + $0x478] sm:$0xff]  ;;  %v222_v33 = vld [vmem:[%s9973_s1 + $0x470] sm:$0xff] }
 0x119   :  { %v6419_v2 = vpop.permute.xlu1 %1134  ;;  %v6421_v17 = vpop.permute.xlu0 %1129 }
 0x11a   :  { %10199 = vst [vmem:[#allocation53_spill] sm:$0xff] %v6419_v2  ;;  %10200 = vst [vmem:[#allocation54_spill] sm:$0xff] %v6421_v17  ;;  %1454 = vperm.xlu1 %5538, %v221_v18   ;;  %1449 = vperm.xlu0 %5537, %v220_v1   ;;  %v225_v17 = vld [vmem:[%s9973_s1 + $0x488] sm:$0xff]  ;;  %v224_v18 = vld [vmem:[%s9973_s1 + $0x480] sm:$0xff] }
 0x11d   :  { %v6429_v34 = vpop.permute.xlu1 %1144  ;;  %v6431_v49 = vpop.permute.xlu0 %1139 }
 0x11e   :  { %10201 = vst [vmem:[#allocation55_spill] sm:$0xff] %v6429_v34  ;;  %10202 = vst [vmem:[#allocation56_spill] sm:$0xff] %v6431_v49  ;;  %1464 = vperm.xlu1 %5538, %v223_v50   ;;  %1459 = vperm.xlu0 %5537, %v222_v33   ;;  %v227_v49 = vld [vmem:[%s9973_s1 + $0x498] sm:$0xff]  ;;  %v226_v50 = vld [vmem:[%s9973_s1 + $0x490] sm:$0xff] }
 0x121   :  { %v6439_v1 = vpop.permute.xlu1 %1154  ;;  %v6441_v2 = vpop.permute.xlu0 %1149 }
 0x122   :  { %10203 = vst [vmem:[#allocation57_spill] sm:$0xff] %v6439_v1  ;;  %10204 = vst [vmem:[#allocation58_spill] sm:$0xff] %v6441_v2  ;;  %1474 = vperm.xlu1 %5538, %v225_v17   ;;  %1469 = vperm.xlu0 %5537, %v224_v18   ;;  %v229_v2 = vld [vmem:[%s9973_s1 + $0x4a8] sm:$0xff]  ;;  %v228_v17 = vld [vmem:[%s9973_s1 + $0x4a0] sm:$0xff] }
 0x125   :  { %v6449_v33 = vpop.permute.xlu1 %1164  ;;  %v6451_v34 = vpop.permute.xlu0 %1159 }
 0x126   :  { %10205 = vst [vmem:[#allocation59_spill] sm:$0xff] %v6449_v33  ;;  %10206 = vst [vmem:[#allocation60_spill] sm:$0xff] %v6451_v34  ;;  %1484 = vperm.xlu1 %5538, %v227_v49   ;;  %1479 = vperm.xlu0 %5537, %v226_v50   ;;  %v231_v34 = vld [vmem:[%s9973_s1 + $0x4b8] sm:$0xff]  ;;  %v230_v49 = vld [vmem:[%s9973_s1 + $0x4b0] sm:$0xff] }
 0x129   :  { %v6459_v18 = vpop.permute.xlu1 %1174  ;;  %v6461_v1 = vpop.permute.xlu0 %1169 }
 0x12a   :  { %10207 = vst [vmem:[#allocation61_spill] sm:$0xff] %v6459_v18  ;;  %10208 = vst [vmem:[#allocation62_spill] sm:$0xff] %v6461_v1  ;;  %1494 = vperm.xlu1 %5538, %v229_v2   ;;  %1489 = vperm.xlu0 %5537, %v228_v17   ;;  %v233_v1 = vld [vmem:[%s9973_s1 + $0x4c8] sm:$0xff]  ;;  %v232_v2 = vld [vmem:[%s9973_s1 + $0x4c0] sm:$0xff] }
 0x12d   :  { %v6469_v50 = vpop.permute.xlu1 %1184  ;;  %v6471_v33 = vpop.permute.xlu0 %1179 }
 0x12e   :  { %10209 = vst [vmem:[#allocation63_spill] sm:$0xff] %v6469_v50  ;;  %10210 = vst [vmem:[#allocation64_spill] sm:$0xff] %v6471_v33  ;;  %1504 = vperm.xlu1 %5538, %v231_v34   ;;  %1499 = vperm.xlu0 %5537, %v230_v49   ;;  %v235_v33 = vld [vmem:[%s9973_s1 + $0x4d8] sm:$0xff]  ;;  %v234_v34 = vld [vmem:[%s9973_s1 + $0x4d0] sm:$0xff] }
 0x131   :  { %v6479_v17 = vpop.permute.xlu1 %1194  ;;  %v6481_v18 = vpop.permute.xlu0 %1189 }
 0x132   :  { %10211 = vst [vmem:[#allocation65_spill] sm:$0xff] %v6479_v17  ;;  %10212 = vst [vmem:[#allocation66_spill] sm:$0xff] %v6481_v18  ;;  %1514 = vperm.xlu1 %5538, %v233_v1   ;;  %1509 = vperm.xlu0 %5537, %v232_v2   ;;  %v237_v18 = vld [vmem:[%s9973_s1 + $0x4e8] sm:$0xff]  ;;  %v236_v1 = vld [vmem:[%s9973_s1 + $0x4e0] sm:$0xff] }
 0x135   :  { %v6489_v49 = vpop.permute.xlu1 %1204  ;;  %v6491_v50 = vpop.permute.xlu0 %1199 }
 0x136   :  { %10213 = vst [vmem:[#allocation67_spill] sm:$0xff] %v6489_v49  ;;  %10214 = vst [vmem:[#allocation68_spill] sm:$0xff] %v6491_v50  ;;  %1524 = vperm.xlu1 %5538, %v235_v33   ;;  %1519 = vperm.xlu0 %5537, %v234_v34   ;;  %v239_v50 = vld [vmem:[%s9973_s1 + $0x4f8] sm:$0xff]  ;;  %v238_v33 = vld [vmem:[%s9973_s1 + $0x4f0] sm:$0xff] }
 0x139   :  { %v6499_v2 = vpop.permute.xlu1 %1214  ;;  %v6501_v17 = vpop.permute.xlu0 %1209 }
 0x13a   :  { %10215 = vst [vmem:[#allocation69_spill] sm:$0xff] %v6499_v2  ;;  %10216 = vst [vmem:[#allocation70_spill] sm:$0xff] %v6501_v17  ;;  %1534 = vperm.xlu1 %5538, %v237_v18   ;;  %1529 = vperm.xlu0 %5537, %v236_v1   ;;  %v241_v17 = vld [vmem:[%s9973_s1 + $0x508] sm:$0xff]  ;;  %v240_v18 = vld [vmem:[%s9973_s1 + $0x500] sm:$0xff] }
 0x13d   :  { %v6509_v34 = vpop.permute.xlu1 %1224  ;;  %v6511_v49 = vpop.permute.xlu0 %1219 }
 0x13e   :  { %10217 = vst [vmem:[#allocation71_spill] sm:$0xff] %v6509_v34  ;;  %10218 = vst [vmem:[#allocation72_spill] sm:$0xff] %v6511_v49  ;;  %1544 = vperm.xlu1 %5538, %v239_v50   ;;  %1539 = vperm.xlu0 %5537, %v238_v33   ;;  %v243_v49 = vld [vmem:[%s9973_s1 + $0x518] sm:$0xff]  ;;  %v242_v50 = vld [vmem:[%s9973_s1 + $0x510] sm:$0xff] }
 0x141   :  { %v6519_v1 = vpop.permute.xlu1 %1234  ;;  %v6521_v2 = vpop.permute.xlu0 %1229 }
 0x142   :  { %10219 = vst [vmem:[#allocation73_spill] sm:$0xff] %v6519_v1  ;;  %10220 = vst [vmem:[#allocation74_spill] sm:$0xff] %v6521_v2  ;;  %1554 = vperm.xlu1 %5538, %v241_v17   ;;  %1549 = vperm.xlu0 %5537, %v240_v18   ;;  %v245_v2 = vld [vmem:[%s9973_s1 + $0x528] sm:$0xff]  ;;  %v244_v17 = vld [vmem:[%s9973_s1 + $0x520] sm:$0xff] }
 0x145   :  { %v6529_v33 = vpop.permute.xlu1 %1244  ;;  %v6531_v34 = vpop.permute.xlu0 %1239 }
 0x146   :  { %10221 = vst [vmem:[#allocation75_spill] sm:$0xff] %v6529_v33  ;;  %10222 = vst [vmem:[#allocation76_spill] sm:$0xff] %v6531_v34  ;;  %1564 = vperm.xlu1 %5538, %v243_v49   ;;  %1559 = vperm.xlu0 %5537, %v242_v50   ;;  %v247_v34 = vld [vmem:[%s9973_s1 + $0x538] sm:$0xff]  ;;  %v246_v49 = vld [vmem:[%s9973_s1 + $0x530] sm:$0xff] }
 0x149   :  { %v6539_v18 = vpop.permute.xlu1 %1254  ;;  %v6541_v1 = vpop.permute.xlu0 %1249 }
 0x14a   :  { %10223 = vst [vmem:[#allocation77_spill] sm:$0xff] %v6539_v18  ;;  %10224 = vst [vmem:[#allocation78_spill] sm:$0xff] %v6541_v1  ;;  %1574 = vperm.xlu1 %5538, %v245_v2   ;;  %1569 = vperm.xlu0 %5537, %v244_v17   ;;  %v249_v1 = vld [vmem:[%s9973_s1 + $0x548] sm:$0xff]  ;;  %v248_v2 = vld [vmem:[%s9973_s1 + $0x540] sm:$0xff] }
 0x14d   :  { %v6549_v50 = vpop.permute.xlu1 %1264  ;;  %v6551_v33 = vpop.permute.xlu0 %1259 }
 0x14e   :  { %10225 = vst [vmem:[#allocation79_spill] sm:$0xff] %v6549_v50  ;;  %10226 = vst [vmem:[#allocation80_spill] sm:$0xff] %v6551_v33  ;;  %1584 = vperm.xlu1 %5538, %v247_v34   ;;  %1579 = vperm.xlu0 %5537, %v246_v49   ;;  %v251_v33 = vld [vmem:[%s9973_s1 + $0x558] sm:$0xff]  ;;  %v250_v34 = vld [vmem:[%s9973_s1 + $0x550] sm:$0xff] }
 0x151   :  { %v6559_v17 = vpop.permute.xlu1 %1274  ;;  %v6561_v18 = vpop.permute.xlu0 %1269 }
 0x152   :  { %10227 = vst [vmem:[#allocation81_spill] sm:$0xff] %v6559_v17  ;;  %10228 = vst [vmem:[#allocation82_spill] sm:$0xff] %v6561_v18  ;;  %1594 = vperm.xlu1 %5538, %v249_v1   ;;  %1589 = vperm.xlu0 %5537, %v248_v2   ;;  %v253_v18 = vld [vmem:[%s9973_s1 + $0x568] sm:$0xff]  ;;  %v252_v1 = vld [vmem:[%s9973_s1 + $0x560] sm:$0xff] }
 0x155   :  { %v6569_v49 = vpop.permute.xlu1 %1284  ;;  %v6571_v50 = vpop.permute.xlu0 %1279 }
 0x156   :  { %10229 = vst [vmem:[#allocation83_spill] sm:$0xff] %v6569_v49  ;;  %10230 = vst [vmem:[#allocation84_spill] sm:$0xff] %v6571_v50  ;;  %1604 = vperm.xlu1 %5538, %v251_v33   ;;  %1599 = vperm.xlu0 %5537, %v250_v34   ;;  %v255_v50 = vld [vmem:[%s9973_s1 + $0x578] sm:$0xff]  ;;  %v254_v33 = vld [vmem:[%s9973_s1 + $0x570] sm:$0xff] }
 0x159   :  { %v6579_v2 = vpop.permute.xlu1 %1294  ;;  %v6581_v17 = vpop.permute.xlu0 %1289 }
 0x15a   :  { %10231 = vst [vmem:[#allocation85_spill] sm:$0xff] %v6579_v2  ;;  %10232 = vst [vmem:[#allocation86_spill] sm:$0xff] %v6581_v17  ;;  %1614 = vperm.xlu1 %5538, %v253_v18   ;;  %1609 = vperm.xlu0 %5537, %v252_v1   ;;  %v257_v17 = vld [vmem:[%s9973_s1 + $0x588] sm:$0xff]  ;;  %v256_v18 = vld [vmem:[%s9973_s1 + $0x580] sm:$0xff] }
 0x15d   :  { %v6589_v34 = vpop.permute.xlu1 %1304  ;;  %v6591_v49 = vpop.permute.xlu0 %1299 }
 0x15e   :  { %10233 = vst [vmem:[#allocation87_spill] sm:$0xff] %v6589_v34  ;;  %10234 = vst [vmem:[#allocation88_spill] sm:$0xff] %v6591_v49  ;;  %1624 = vperm.xlu1 %5538, %v255_v50   ;;  %1619 = vperm.xlu0 %5537, %v254_v33   ;;  %v259_v49 = vld [vmem:[%s9973_s1 + $0x598] sm:$0xff]  ;;  %v258_v50 = vld [vmem:[%s9973_s1 + $0x590] sm:$0xff] }
 0x161   :  { %v6599_v1 = vpop.permute.xlu1 %1314  ;;  %v6601_v2 = vpop.permute.xlu0 %1309 }
 0x162   :  { %10235 = vst [vmem:[#allocation89_spill] sm:$0xff] %v6599_v1  ;;  %10236 = vst [vmem:[#allocation90_spill] sm:$0xff] %v6601_v2  ;;  %1634 = vperm.xlu1 %5538, %v257_v17   ;;  %1629 = vperm.xlu0 %5537, %v256_v18   ;;  %v261_v2 = vld [vmem:[%s9973_s1 + $0x5a8] sm:$0xff]  ;;  %v260_v17 = vld [vmem:[%s9973_s1 + $0x5a0] sm:$0xff] }
 0x165   :  { %v6609_v33 = vpop.permute.xlu1 %1324  ;;  %v6611_v34 = vpop.permute.xlu0 %1319 }
 0x166   :  { %10237 = vst [vmem:[#allocation91_spill] sm:$0xff] %v6609_v33  ;;  %10238 = vst [vmem:[#allocation92_spill] sm:$0xff] %v6611_v34  ;;  %1644 = vperm.xlu1 %5538, %v259_v49   ;;  %1639 = vperm.xlu0 %5537, %v258_v50   ;;  %v263_v34 = vld [vmem:[%s9973_s1 + $0x5b8] sm:$0xff]  ;;  %v262_v49 = vld [vmem:[%s9973_s1 + $0x5b0] sm:$0xff] }
 0x169   :  { %v6619_v18 = vpop.permute.xlu1 %1334  ;;  %v6621_v1 = vpop.permute.xlu0 %1329 }
 0x16a   :  { %10239 = vst [vmem:[#allocation93_spill] sm:$0xff] %v6619_v18  ;;  %10240 = vst [vmem:[#allocation94_spill] sm:$0xff] %v6621_v1  ;;  %1654 = vperm.xlu1 %5538, %v261_v2   ;;  %1649 = vperm.xlu0 %5537, %v260_v17   ;;  %v265_v1 = vld [vmem:[%s9973_s1 + $0x5c8] sm:$0xff]  ;;  %v264_v2 = vld [vmem:[%s9973_s1 + $0x5c0] sm:$0xff] }
 0x16d   :  { %v6629_v50 = vpop.permute.xlu1 %1344  ;;  %v6631_v33 = vpop.permute.xlu0 %1339 }
 0x16e   :  { %10241 = vst [vmem:[#allocation95_spill] sm:$0xff] %v6629_v50  ;;  %10242 = vst [vmem:[#allocation96_spill] sm:$0xff] %v6631_v33  ;;  %1664 = vperm.xlu1 %5538, %v263_v34   ;;  %1659 = vperm.xlu0 %5537, %v262_v49   ;;  %v267_v33 = vld [vmem:[%s9973_s1 + $0x5d8] sm:$0xff]  ;;  %v266_v34 = vld [vmem:[%s9973_s1 + $0x5d0] sm:$0xff] }
 0x171   :  { %v6639_v17 = vpop.permute.xlu1 %1354  ;;  %v6641_v18 = vpop.permute.xlu0 %1349 }
 0x172   :  { %10243 = vst [vmem:[#allocation97_spill] sm:$0xff] %v6639_v17  ;;  %10244 = vst [vmem:[#allocation98_spill] sm:$0xff] %v6641_v18  ;;  %1674 = vperm.xlu1 %5538, %v265_v1   ;;  %1669 = vperm.xlu0 %5537, %v264_v2   ;;  %v269_v18 = vld [vmem:[%s9973_s1 + $0x5e8] sm:$0xff]  ;;  %v268_v1 = vld [vmem:[%s9973_s1 + $0x5e0] sm:$0xff] }
 0x175   :  { %v6649_v49 = vpop.permute.xlu1 %1364  ;;  %v6651_v50 = vpop.permute.xlu0 %1359 }
 0x176   :  { %10245 = vst [vmem:[#allocation99_spill] sm:$0xff] %v6649_v49  ;;  %10246 = vst [vmem:[#allocation100_spill] sm:$0xff] %v6651_v50  ;;  %1684 = vperm.xlu1 %5538, %v267_v33   ;;  %1679 = vperm.xlu0 %5537, %v266_v34   ;;  %v271_v50 = vld [vmem:[%s9973_s1 + $0x5f8] sm:$0xff]  ;;  %v270_v33 = vld [vmem:[%s9973_s1 + $0x5f0] sm:$0xff] }
 0x179   :  { %v6659_v2 = vpop.permute.xlu1 %1374  ;;  %v6661_v17 = vpop.permute.xlu0 %1369 }
 0x17a   :  { %10247 = vst [vmem:[#allocation101_spill] sm:$0xff] %v6659_v2  ;;  %10248 = vst [vmem:[#allocation102_spill] sm:$0xff] %v6661_v17  ;;  %1694 = vperm.xlu1 %5538, %v269_v18   ;;  %1689 = vperm.xlu0 %5537, %v268_v1   ;;  %v273_v17 = vld [vmem:[%s9973_s1 + $0x608] sm:$0xff]  ;;  %v272_v18 = vld [vmem:[%s9973_s1 + $0x600] sm:$0xff] }
 0x17d   :  { %v6669_v34 = vpop.permute.xlu1 %1384  ;;  %v6671_v49 = vpop.permute.xlu0 %1379 }
 0x17e   :  { %10249 = vst [vmem:[#allocation103_spill] sm:$0xff] %v6669_v34  ;;  %10250 = vst [vmem:[#allocation104_spill] sm:$0xff] %v6671_v49  ;;  %1704 = vperm.xlu1 %5538, %v271_v50   ;;  %1699 = vperm.xlu0 %5537, %v270_v33   ;;  %v275_v49 = vld [vmem:[%s9973_s1 + $0x618] sm:$0xff]  ;;  %v274_v50 = vld [vmem:[%s9973_s1 + $0x610] sm:$0xff] }
 0x181   :  { %v6679_v1 = vpop.permute.xlu1 %1394  ;;  %v6681_v2 = vpop.permute.xlu0 %1389 }
 0x182   :  { %10251 = vst [vmem:[#allocation105_spill] sm:$0xff] %v6679_v1  ;;  %10252 = vst [vmem:[#allocation106_spill] sm:$0xff] %v6681_v2  ;;  %1714 = vperm.xlu1 %5538, %v273_v17   ;;  %1709 = vperm.xlu0 %5537, %v272_v18   ;;  %v277_v2 = vld [vmem:[%s9973_s1 + $0x628] sm:$0xff]  ;;  %v276_v17 = vld [vmem:[%s9973_s1 + $0x620] sm:$0xff] }
 0x185   :  { %v6689_v33 = vpop.permute.xlu1 %1404  ;;  %v6691_v34 = vpop.permute.xlu0 %1399 }
 0x186   :  { %10253 = vst [vmem:[#allocation107_spill] sm:$0xff] %v6689_v33  ;;  %10254 = vst [vmem:[#allocation108_spill] sm:$0xff] %v6691_v34  ;;  %1724 = vperm.xlu1 %5538, %v275_v49   ;;  %1719 = vperm.xlu0 %5537, %v274_v50   ;;  %v279_v34 = vld [vmem:[%s9973_s1 + $0x638] sm:$0xff]  ;;  %v278_v49 = vld [vmem:[%s9973_s1 + $0x630] sm:$0xff] }
 0x189   :  { %v6699_v18 = vpop.permute.xlu1 %1414  ;;  %v6701_v1 = vpop.permute.xlu0 %1409 }
 0x18a   :  { %10255 = vst [vmem:[#allocation109_spill] sm:$0xff] %v6699_v18  ;;  %10256 = vst [vmem:[#allocation110_spill] sm:$0xff] %v6701_v1  ;;  %1734 = vperm.xlu1 %5538, %v277_v2   ;;  %1729 = vperm.xlu0 %5537, %v276_v17   ;;  %v281_v1 = vld [vmem:[%s9973_s1 + $0x648] sm:$0xff]  ;;  %v280_v2 = vld [vmem:[%s9973_s1 + $0x640] sm:$0xff] }
 0x18d   :  { %v6709_v50 = vpop.permute.xlu1 %1424  ;;  %v6711_v33 = vpop.permute.xlu0 %1419 }
 0x18e   :  { %10257 = vst [vmem:[#allocation111_spill] sm:$0xff] %v6709_v50  ;;  %10258 = vst [vmem:[#allocation112_spill] sm:$0xff] %v6711_v33  ;;  %1744 = vperm.xlu1 %5538, %v279_v34   ;;  %1739 = vperm.xlu0 %5537, %v278_v49   ;;  %v283_v33 = vld [vmem:[%s9973_s1 + $0x658] sm:$0xff]  ;;  %v282_v34 = vld [vmem:[%s9973_s1 + $0x650] sm:$0xff] }
 0x191   :  { %v6719_v17 = vpop.permute.xlu1 %1434  ;;  %v6721_v18 = vpop.permute.xlu0 %1429 }
 0x192   :  { %10259 = vst [vmem:[#allocation113_spill] sm:$0xff] %v6719_v17  ;;  %10260 = vst [vmem:[#allocation114_spill] sm:$0xff] %v6721_v18  ;;  %1754 = vperm.xlu1 %5538, %v281_v1   ;;  %1749 = vperm.xlu0 %5537, %v280_v2   ;;  %v285_v18 = vld [vmem:[%s9973_s1 + $0x668] sm:$0xff]  ;;  %v284_v1 = vld [vmem:[%s9973_s1 + $0x660] sm:$0xff] }
 0x195   :  { %v6729_v49 = vpop.permute.xlu1 %1444  ;;  %v6731_v50 = vpop.permute.xlu0 %1439 }
 0x196   :  { %10261 = vst [vmem:[#allocation115_spill] sm:$0xff] %v6729_v49  ;;  %10262 = vst [vmem:[#allocation116_spill] sm:$0xff] %v6731_v50  ;;  %1764 = vperm.xlu1 %5538, %v283_v33   ;;  %1759 = vperm.xlu0 %5537, %v282_v34   ;;  %v287_v50 = vld [vmem:[%s9973_s1 + $0x678] sm:$0xff]  ;;  %v286_v33 = vld [vmem:[%s9973_s1 + $0x670] sm:$0xff] }
 0x199   :  { %v6739_v2 = vpop.permute.xlu1 %1454  ;;  %v6741_v17 = vpop.permute.xlu0 %1449 }
 0x19a   :  { %10263 = vst [vmem:[#allocation117_spill] sm:$0xff] %v6739_v2  ;;  %10264 = vst [vmem:[#allocation118_spill] sm:$0xff] %v6741_v17  ;;  %1774 = vperm.xlu1 %5538, %v285_v18   ;;  %1769 = vperm.xlu0 %5537, %v284_v1   ;;  %v289_v17 = vld [vmem:[%s9973_s1 + $0x688] sm:$0xff]  ;;  %v288_v18 = vld [vmem:[%s9973_s1 + $0x680] sm:$0xff] }
 0x19d   :  { %v6749_v34 = vpop.permute.xlu1 %1464  ;;  %v6751_v49 = vpop.permute.xlu0 %1459 }
 0x19e   :  { %10265 = vst [vmem:[#allocation119_spill] sm:$0xff] %v6749_v34  ;;  %10266 = vst [vmem:[#allocation120_spill] sm:$0xff] %v6751_v49  ;;  %1784 = vperm.xlu1 %5538, %v287_v50   ;;  %1779 = vperm.xlu0 %5537, %v286_v33   ;;  %v291_v49 = vld [vmem:[%s9973_s1 + $0x698] sm:$0xff]  ;;  %v290_v50 = vld [vmem:[%s9973_s1 + $0x690] sm:$0xff] }
 0x1a1   :  { %v6759_v1 = vpop.permute.xlu1 %1474  ;;  %v6761_v2 = vpop.permute.xlu0 %1469 }
 0x1a2   :  { %10267 = vst [vmem:[#allocation121_spill] sm:$0xff] %v6759_v1  ;;  %10268 = vst [vmem:[#allocation122_spill] sm:$0xff] %v6761_v2  ;;  %1794 = vperm.xlu1 %5538, %v289_v17   ;;  %1789 = vperm.xlu0 %5537, %v288_v18   ;;  %v293_v2 = vld [vmem:[%s9973_s1 + $0x6a8] sm:$0xff]  ;;  %v292_v17 = vld [vmem:[%s9973_s1 + $0x6a0] sm:$0xff] }
 0x1a5   :  { %v6769_v33 = vpop.permute.xlu1 %1484  ;;  %v6771_v34 = vpop.permute.xlu0 %1479 }
 0x1a6   :  { %10269 = vst [vmem:[#allocation123_spill] sm:$0xff] %v6769_v33  ;;  %10270 = vst [vmem:[#allocation124_spill] sm:$0xff] %v6771_v34  ;;  %1804 = vperm.xlu1 %5538, %v291_v49   ;;  %1799 = vperm.xlu0 %5537, %v290_v50   ;;  %v295_v34 = vld [vmem:[%s9973_s1 + $0x6b8] sm:$0xff]  ;;  %v294_v49 = vld [vmem:[%s9973_s1 + $0x6b0] sm:$0xff] }
 0x1a9   :  { %v6779_v18 = vpop.permute.xlu1 %1494  ;;  %v6781_v1 = vpop.permute.xlu0 %1489 }
 0x1aa   :  { %10271 = vst [vmem:[#allocation125_spill] sm:$0xff] %v6779_v18  ;;  %10272 = vst [vmem:[#allocation126_spill] sm:$0xff] %v6781_v1  ;;  %1814 = vperm.xlu1 %5538, %v293_v2   ;;  %1809 = vperm.xlu0 %5537, %v292_v17   ;;  %v297_v1 = vld [vmem:[%s9973_s1 + $0x6c8] sm:$0xff]  ;;  %v296_v2 = vld [vmem:[%s9973_s1 + $0x6c0] sm:$0xff] }
 0x1ad   :  { %v6789_v50 = vpop.permute.xlu1 %1504  ;;  %v6791_v33 = vpop.permute.xlu0 %1499 }
 0x1ae   :  { %10273 = vst [vmem:[#allocation127_spill] sm:$0xff] %v6789_v50  ;;  %10274 = vst [vmem:[#allocation128_spill] sm:$0xff] %v6791_v33  ;;  %1824 = vperm.xlu1 %5538, %v295_v34   ;;  %1819 = vperm.xlu0 %5537, %v294_v49   ;;  %v299_v33 = vld [vmem:[%s9973_s1 + $0x6d8] sm:$0xff]  ;;  %v298_v34 = vld [vmem:[%s9973_s1 + $0x6d0] sm:$0xff] }
 0x1b1   :  { %v6799_v17 = vpop.permute.xlu1 %1514  ;;  %v6801_v18 = vpop.permute.xlu0 %1509 }
 0x1b2   :  { %10275 = vst [vmem:[#allocation129_spill] sm:$0xff] %v6799_v17  ;;  %10276 = vst [vmem:[#allocation130_spill] sm:$0xff] %v6801_v18  ;;  %1834 = vperm.xlu1 %5538, %v297_v1   ;;  %1829 = vperm.xlu0 %5537, %v296_v2   ;;  %v301_v18 = vld [vmem:[%s9973_s1 + $0x6e8] sm:$0xff]  ;;  %v300_v1 = vld [vmem:[%s9973_s1 + $0x6e0] sm:$0xff] }
 0x1b5   :  { %v6809_v49 = vpop.permute.xlu1 %1524  ;;  %v6811_v50 = vpop.permute.xlu0 %1519 }
 0x1b6   :  { %10277 = vst [vmem:[#allocation131_spill] sm:$0xff] %v6809_v49  ;;  %10278 = vst [vmem:[#allocation132_spill] sm:$0xff] %v6811_v50  ;;  %1844 = vperm.xlu1 %5538, %v299_v33   ;;  %1839 = vperm.xlu0 %5537, %v298_v34   ;;  %v303_v50 = vld [vmem:[%s9973_s1 + $0x6f8] sm:$0xff]  ;;  %v302_v33 = vld [vmem:[%s9973_s1 + $0x6f0] sm:$0xff] }
 0x1b9   :  { %v6819_v2 = vpop.permute.xlu1 %1534  ;;  %v6821_v17 = vpop.permute.xlu0 %1529 }
 0x1ba   :  { %10279 = vst [vmem:[#allocation133_spill] sm:$0xff] %v6819_v2  ;;  %10280 = vst [vmem:[#allocation134_spill] sm:$0xff] %v6821_v17  ;;  %1854 = vperm.xlu1 %5538, %v301_v18   ;;  %1849 = vperm.xlu0 %5537, %v300_v1   ;;  %v305_v17 = vld [vmem:[%s9973_s1 + $0x708] sm:$0xff]  ;;  %v304_v18 = vld [vmem:[%s9973_s1 + $0x700] sm:$0xff] }
 0x1bd   :  { %v6829_v34 = vpop.permute.xlu1 %1544  ;;  %v6831_v49 = vpop.permute.xlu0 %1539 }
 0x1be   :  { %10281 = vst [vmem:[#allocation135_spill] sm:$0xff] %v6829_v34  ;;  %10282 = vst [vmem:[#allocation136_spill] sm:$0xff] %v6831_v49  ;;  %1864 = vperm.xlu1 %5538, %v303_v50   ;;  %1859 = vperm.xlu0 %5537, %v302_v33   ;;  %v307_v49 = vld [vmem:[%s9973_s1 + $0x718] sm:$0xff]  ;;  %v306_v50 = vld [vmem:[%s9973_s1 + $0x710] sm:$0xff] }
 0x1c1   :  { %v6839_v1 = vpop.permute.xlu1 %1554  ;;  %v6841_v2 = vpop.permute.xlu0 %1549 }
 0x1c2   :  { %10283 = vst [vmem:[#allocation137_spill] sm:$0xff] %v6839_v1  ;;  %10284 = vst [vmem:[#allocation138_spill] sm:$0xff] %v6841_v2  ;;  %1874 = vperm.xlu1 %5538, %v305_v17   ;;  %1869 = vperm.xlu0 %5537, %v304_v18   ;;  %v309_v2 = vld [vmem:[%s9973_s1 + $0x728] sm:$0xff]  ;;  %v308_v17 = vld [vmem:[%s9973_s1 + $0x720] sm:$0xff] }
 0x1c5   :  { %v6849_v33 = vpop.permute.xlu1 %1564  ;;  %v6851_v34 = vpop.permute.xlu0 %1559 }
 0x1c6   :  { %10285 = vst [vmem:[#allocation139_spill] sm:$0xff] %v6849_v33  ;;  %10286 = vst [vmem:[#allocation140_spill] sm:$0xff] %v6851_v34  ;;  %1884 = vperm.xlu1 %5538, %v307_v49   ;;  %1879 = vperm.xlu0 %5537, %v306_v50   ;;  %v311_v34 = vld [vmem:[%s9973_s1 + $0x738] sm:$0xff]  ;;  %v310_v49 = vld [vmem:[%s9973_s1 + $0x730] sm:$0xff] }
 0x1c9   :  { %v6859_v18 = vpop.permute.xlu1 %1574  ;;  %v6861_v1 = vpop.permute.xlu0 %1569 }
 0x1ca   :  { %10287 = vst [vmem:[#allocation141_spill] sm:$0xff] %v6859_v18  ;;  %10288 = vst [vmem:[#allocation142_spill] sm:$0xff] %v6861_v1  ;;  %1894 = vperm.xlu1 %5538, %v309_v2   ;;  %1889 = vperm.xlu0 %5537, %v308_v17   ;;  %v313_v1 = vld [vmem:[%s9973_s1 + $0x748] sm:$0xff]  ;;  %v312_v2 = vld [vmem:[%s9973_s1 + $0x740] sm:$0xff] }
 0x1cd   :  { %v6869_v50 = vpop.permute.xlu1 %1584  ;;  %v6871_v33 = vpop.permute.xlu0 %1579 }
 0x1ce   :  { %10289 = vst [vmem:[#allocation143_spill] sm:$0xff] %v6869_v50  ;;  %10290 = vst [vmem:[#allocation144_spill] sm:$0xff] %v6871_v33  ;;  %1904 = vperm.xlu1 %5538, %v311_v34   ;;  %1899 = vperm.xlu0 %5537, %v310_v49   ;;  %v315_v33 = vld [vmem:[%s9973_s1 + $0x758] sm:$0xff]  ;;  %v314_v34 = vld [vmem:[%s9973_s1 + $0x750] sm:$0xff] }
 0x1d1   :  { %v6879_v17 = vpop.permute.xlu1 %1594  ;;  %v6881_v18 = vpop.permute.xlu0 %1589 }
 0x1d2   :  { %10291 = vst [vmem:[#allocation145_spill] sm:$0xff] %v6879_v17  ;;  %10292 = vst [vmem:[#allocation146_spill] sm:$0xff] %v6881_v18  ;;  %1914 = vperm.xlu1 %5538, %v313_v1   ;;  %1909 = vperm.xlu0 %5537, %v312_v2   ;;  %v317_v18 = vld [vmem:[%s9973_s1 + $0x768] sm:$0xff]  ;;  %v316_v1 = vld [vmem:[%s9973_s1 + $0x760] sm:$0xff] }
 0x1d5   :  { %v6889_v49 = vpop.permute.xlu1 %1604  ;;  %v6891_v50 = vpop.permute.xlu0 %1599 }
 0x1d6   :  { %10293 = vst [vmem:[#allocation147_spill] sm:$0xff] %v6889_v49  ;;  %10294 = vst [vmem:[#allocation148_spill] sm:$0xff] %v6891_v50  ;;  %1924 = vperm.xlu1 %5538, %v315_v33   ;;  %1919 = vperm.xlu0 %5537, %v314_v34   ;;  %v319_v50 = vld [vmem:[%s9973_s1 + $0x778] sm:$0xff]  ;;  %v318_v33 = vld [vmem:[%s9973_s1 + $0x770] sm:$0xff] }
 0x1d9   :  { %v6899_v2 = vpop.permute.xlu1 %1614  ;;  %v6901_v17 = vpop.permute.xlu0 %1609 }
 0x1da   :  { %10295 = vst [vmem:[#allocation149_spill] sm:$0xff] %v6899_v2  ;;  %10296 = vst [vmem:[#allocation150_spill] sm:$0xff] %v6901_v17  ;;  %1934 = vperm.xlu1 %5538, %v317_v18   ;;  %1929 = vperm.xlu0 %5537, %v316_v1   ;;  %v321_v17 = vld [vmem:[%s9973_s1 + $0x788] sm:$0xff]  ;;  %v320_v18 = vld [vmem:[%s9973_s1 + $0x780] sm:$0xff] }
 0x1dd   :  { %v6909_v34 = vpop.permute.xlu1 %1624  ;;  %v6911_v49 = vpop.permute.xlu0 %1619 }
 0x1de   :  { %10297 = vst [vmem:[#allocation151_spill] sm:$0xff] %v6909_v34  ;;  %10298 = vst [vmem:[#allocation152_spill] sm:$0xff] %v6911_v49  ;;  %1944 = vperm.xlu1 %5538, %v319_v50   ;;  %1939 = vperm.xlu0 %5537, %v318_v33   ;;  %v323_v49 = vld [vmem:[%s9973_s1 + $0x798] sm:$0xff]  ;;  %v322_v50 = vld [vmem:[%s9973_s1 + $0x790] sm:$0xff] }
 0x1e1   :  { %v6919_v1 = vpop.permute.xlu1 %1634  ;;  %v6921_v2 = vpop.permute.xlu0 %1629 }
 0x1e2   :  { %10299 = vst [vmem:[#allocation153_spill] sm:$0xff] %v6919_v1  ;;  %10300 = vst [vmem:[#allocation154_spill] sm:$0xff] %v6921_v2  ;;  %1954 = vperm.xlu1 %5538, %v321_v17   ;;  %1949 = vperm.xlu0 %5537, %v320_v18   ;;  %v325_v2 = vld [vmem:[%s9973_s1 + $0x7a8] sm:$0xff]  ;;  %v324_v17 = vld [vmem:[%s9973_s1 + $0x7a0] sm:$0xff] }
 0x1e5   :  { %v6929_v33 = vpop.permute.xlu1 %1644  ;;  %v6931_v34 = vpop.permute.xlu0 %1639 }
 0x1e6   :  { %10301 = vst [vmem:[#allocation155_spill] sm:$0xff] %v6929_v33  ;;  %10302 = vst [vmem:[#allocation156_spill] sm:$0xff] %v6931_v34  ;;  %1964 = vperm.xlu1 %5538, %v323_v49   ;;  %1959 = vperm.xlu0 %5537, %v322_v50   ;;  %v327_v34 = vld [vmem:[%s9973_s1 + $0x7b8] sm:$0xff]  ;;  %v326_v49 = vld [vmem:[%s9973_s1 + $0x7b0] sm:$0xff] }
 0x1e9   :  { %v6939_v18 = vpop.permute.xlu1 %1654  ;;  %v6941_v1 = vpop.permute.xlu0 %1649 }
 0x1ea   :  { %10303 = vst [vmem:[#allocation157_spill] sm:$0xff] %v6939_v18  ;;  %10304 = vst [vmem:[#allocation158_spill] sm:$0xff] %v6941_v1  ;;  %1974 = vperm.xlu1 %5538, %v325_v2   ;;  %1969 = vperm.xlu0 %5537, %v324_v17   ;;  %v329_v1 = vld [vmem:[%s9973_s1 + $0x7c8] sm:$0xff]  ;;  %v328_v2 = vld [vmem:[%s9973_s1 + $0x7c0] sm:$0xff] }
 0x1ed   :  { %v6949_v50 = vpop.permute.xlu1 %1664  ;;  %v6951_v33 = vpop.permute.xlu0 %1659 }
 0x1ee   :  { %10305 = vst [vmem:[#allocation159_spill] sm:$0xff] %v6949_v50  ;;  %10306 = vst [vmem:[#allocation160_spill] sm:$0xff] %v6951_v33  ;;  %1984 = vperm.xlu1 %5538, %v327_v34   ;;  %1979 = vperm.xlu0 %5537, %v326_v49   ;;  %v331_v33 = vld [vmem:[%s9973_s1 + $0x7d8] sm:$0xff]  ;;  %v330_v34 = vld [vmem:[%s9973_s1 + $0x7d0] sm:$0xff] }
 0x1f1   :  { %v6959_v17 = vpop.permute.xlu1 %1674  ;;  %v6961_v18 = vpop.permute.xlu0 %1669 }
 0x1f2   :  { %10307 = vst [vmem:[#allocation161_spill] sm:$0xff] %v6959_v17  ;;  %10308 = vst [vmem:[#allocation162_spill] sm:$0xff] %v6961_v18  ;;  %1994 = vperm.xlu1 %5538, %v329_v1   ;;  %1989 = vperm.xlu0 %5537, %v328_v2   ;;  %v333_v18 = vld [vmem:[%s9973_s1 + $0x7e8] sm:$0xff]  ;;  %v332_v1 = vld [vmem:[%s9973_s1 + $0x7e0] sm:$0xff] }
 0x1f5   :  { %v6969_v49 = vpop.permute.xlu1 %1684  ;;  %v6971_v50 = vpop.permute.xlu0 %1679 }
 0x1f6   :  { %10309 = vst [vmem:[#allocation163_spill] sm:$0xff] %v6969_v49  ;;  %10310 = vst [vmem:[#allocation164_spill] sm:$0xff] %v6971_v50  ;;  %2004 = vperm.xlu1 %5538, %v331_v33   ;;  %1999 = vperm.xlu0 %5537, %v330_v34   ;;  %v335_v50 = vld [vmem:[%s9973_s1 + $0x7f8] sm:$0xff]  ;;  %v334_v33 = vld [vmem:[%s9973_s1 + $0x7f0] sm:$0xff] }
 0x1f9   :  { %v6979_v2 = vpop.permute.xlu1 %1694  ;;  %v6981_v17 = vpop.permute.xlu0 %1689 }
 0x1fa   :  { %10311 = vst [vmem:[#allocation165_spill] sm:$0xff] %v6979_v2  ;;  %10312 = vst [vmem:[#allocation166_spill] sm:$0xff] %v6981_v17  ;;  %2014 = vperm.xlu1 %5538, %v333_v18   ;;  %2009 = vperm.xlu0 %5537, %v332_v1   ;;  %v5822_v18 = vmov 0   ;;  %v5541_v1 = vld [vmem:[%s9973_s1 + $0x8] sm:$0xff]  ;;  %v5608_v17 = vld [vmem:[%s9973_s1 + $0x218] sm:$0xff] }
 0x1fd   :  { %v6989_v34 = vpop.permute.xlu1 %1704  ;;  %v6991_v49 = vpop.permute.xlu0 %1699 }
 0x1fe   :  { %10313 = vst [vmem:[#allocation167_spill] sm:$0xff] %v6989_v34  ;;  %10314 = vst [vmem:[#allocation168_spill] sm:$0xff] %v6991_v49  ;;  %2024 = vperm.xlu1 %5538, %v335_v50   ;;  %2019 = vperm.xlu0 %5537, %v334_v33   ;;  %v5542_v34 = vld [vmem:[%s9973_s1] sm:$0xff]  ;;  %v5543_v33 = vld [vmem:[%s9973_s1 + $0x10] sm:$0xff] }
 0x201   :  { %v6993_v58 = vpop.permute.xlu1 %1714  ;;  %v6995_v2 = vpop.permute.xlu0 %1709 }
 0x202   :  { %10315 = vst [vmem:[#allocation169_spill] sm:$0xff] %v6993_v58  ;;  %10316 = vst [vmem:[#allocation170_spill] sm:$0xff] %v6995_v2  ;;  %5540 = vset.pattern.permute.xlu1 %v5822_v18  ;;  %5539 = vset.pattern.permute.xlu0 %v5822_v18  ;;  %v5544_v18 = vld [vmem:[%s9973_s1 + $0x18] sm:$0xff] }
 0x203   :  { %2288 = vperm.xlu1 %5540, %v5541_v1   ;;  %2284 = vperm.xlu0 %5539, %v5542_v34   ;;  %v5545_v34 = vld [vmem:[%s9973_s1 + $0x20] sm:$0xff] }
 0x205   :  { %v7003_v49 = vpop.permute.xlu1 %1724  ;;  %v7005_v50 = vpop.permute.xlu0 %1719 }
 0x206   :  { %10317 = vst [vmem:[#allocation171_spill] sm:$0xff] %v7003_v49  ;;  %10318 = vst [vmem:[#allocation172_spill] sm:$0xff] %v7005_v50  ;;  %v5546_v50 = vld [vmem:[%s9973_s1 + $0x28] sm:$0xff] }
 0x207   :  { %2292 = vperm.xlu1 %5540, %v5543_v33   ;;  %2296 = vperm.xlu0 %5539, %v5544_v18   ;;  %v5547_v18 = vld [vmem:[%s9973_s1 + $0x30] sm:$0xff] }
 0x209   :  { %v7013_v1 = vpop.permute.xlu1 %1734  ;;  %v7015_v2 = vpop.permute.xlu0 %1729 }
 0x20a   :  { %10319 = vst [vmem:[#allocation173_spill] sm:$0xff] %v7013_v1  ;;  %10320 = vst [vmem:[#allocation174_spill] sm:$0xff] %v7015_v2  ;;  %v5548_v2 = vld [vmem:[%s9973_s1 + $0x38] sm:$0xff] }
 0x20b   :  { %2300 = vperm.xlu1 %5540, %v5545_v34   ;;  %2304 = vperm.xlu0 %5539, %v5546_v50   ;;  %v5549_v50 = vld [vmem:[%s9973_s1 + $0x40] sm:$0xff] }
 0x20d   :  { %v7023_v33 = vpop.permute.xlu1 %1744  ;;  %v7025_v49 = vpop.permute.xlu0 %1739 }
 0x20e   :  { %10321 = vst [vmem:[#allocation175_spill] sm:$0xff] %v7023_v33  ;;  %10322 = vst [vmem:[#allocation176_spill] sm:$0xff] %v7025_v49  ;;  %v5550_v49 = vld [vmem:[%s9973_s1 + $0x48] sm:$0xff] }
 0x20f   :  { %2308 = vperm.xlu1 %5540, %v5547_v18   ;;  %2312 = vperm.xlu0 %5539, %v5548_v2   ;;  %v5551_v2 = vld [vmem:[%s9973_s1 + $0x50] sm:$0xff] }
 0x211   :  { %v7033_v34 = vpop.permute.xlu1 %1754  ;;  %v7035_v1 = vpop.permute.xlu0 %1749 }
 0x212   :  { %10323 = vst [vmem:[#allocation177_spill] sm:$0xff] %v7033_v34  ;;  %10324 = vst [vmem:[#allocation178_spill] sm:$0xff] %v7035_v1  ;;  %v5552_v1 = vld [vmem:[%s9973_s1 + $0x58] sm:$0xff] }
 0x213   :  { %2316 = vperm.xlu1 %5540, %v5549_v50   ;;  %2320 = vperm.xlu0 %5539, %v5550_v49   ;;  %v5553_v49 = vld [vmem:[%s9973_s1 + $0x60] sm:$0xff] }
 0x215   :  { %v7043_v18 = vpop.permute.xlu1 %1764  ;;  %v7045_v33 = vpop.permute.xlu0 %1759 }
 0x216   :  { %10325 = vst [vmem:[#allocation179_spill] sm:$0xff] %v7043_v18  ;;  %10326 = vst [vmem:[#allocation180_spill] sm:$0xff] %v7045_v33  ;;  %v5554_v33 = vld [vmem:[%s9973_s1 + $0x68] sm:$0xff] }
 0x217   :  { %2324 = vperm.xlu1 %5540, %v5551_v2   ;;  %2328 = vperm.xlu0 %5539, %v5552_v1   ;;  %v5555_v1 = vld [vmem:[%s9973_s1 + $0x70] sm:$0xff] }
 0x219   :  { %v7053_v50 = vpop.permute.xlu1 %1774  ;;  %v7055_v34 = vpop.permute.xlu0 %1769 }
 0x21a   :  { %10327 = vst [vmem:[#allocation181_spill] sm:$0xff] %v7053_v50  ;;  %10328 = vst [vmem:[#allocation182_spill] sm:$0xff] %v7055_v34  ;;  %v5556_v34 = vld [vmem:[%s9973_s1 + $0x78] sm:$0xff] }
 0x21b   :  { %2332 = vperm.xlu1 %5540, %v5553_v49   ;;  %2336 = vperm.xlu0 %5539, %v5554_v33   ;;  %v5557_v33 = vld [vmem:[%s9973_s1 + $0x80] sm:$0xff] }
 0x21d   :  { %v7063_v2 = vpop.permute.xlu1 %1784  ;;  %v7065_v18 = vpop.permute.xlu0 %1779 }
 0x21e   :  { %10329 = vst [vmem:[#allocation183_spill] sm:$0xff] %v7063_v2  ;;  %10330 = vst [vmem:[#allocation184_spill] sm:$0xff] %v7065_v18  ;;  %v5558_v18 = vld [vmem:[%s9973_s1 + $0x88] sm:$0xff] }
 0x21f   :  { %2340 = vperm.xlu1 %5540, %v5555_v1   ;;  %2344 = vperm.xlu0 %5539, %v5556_v34   ;;  %v5559_v34 = vld [vmem:[%s9973_s1 + $0x90] sm:$0xff] }
 0x221   :  { %v7073_v49 = vpop.permute.xlu1 %1794  ;;  %v7075_v50 = vpop.permute.xlu0 %1789 }
 0x222   :  { %10331 = vst [vmem:[#allocation185_spill] sm:$0xff] %v7073_v49  ;;  %10332 = vst [vmem:[#allocation186_spill] sm:$0xff] %v7075_v50  ;;  %v5560_v50 = vld [vmem:[%s9973_s1 + $0x98] sm:$0xff] }
 0x223   :  { %2348 = vperm.xlu1 %5540, %v5557_v33   ;;  %2352 = vperm.xlu0 %5539, %v5558_v18   ;;  %v5561_v18 = vld [vmem:[%s9973_s1 + $0xa0] sm:$0xff] }
 0x225   :  { %v7083_v1 = vpop.permute.xlu1 %1804  ;;  %v7085_v2 = vpop.permute.xlu0 %1799 }
 0x226   :  { %10333 = vst [vmem:[#allocation187_spill] sm:$0xff] %v7083_v1  ;;  %10334 = vst [vmem:[#allocation188_spill] sm:$0xff] %v7085_v2  ;;  %v5562_v2 = vld [vmem:[%s9973_s1 + $0xa8] sm:$0xff] }
 0x227   :  { %2356 = vperm.xlu1 %5540, %v5559_v34   ;;  %2360 = vperm.xlu0 %5539, %v5560_v50   ;;  %v5563_v50 = vld [vmem:[%s9973_s1 + $0xb0] sm:$0xff] }
 0x229   :  { %v7093_v33 = vpop.permute.xlu1 %1814  ;;  %v7095_v49 = vpop.permute.xlu0 %1809 }
 0x22a   :  { %10335 = vst [vmem:[#allocation189_spill] sm:$0xff] %v7093_v33  ;;  %10336 = vst [vmem:[#allocation190_spill] sm:$0xff] %v7095_v49  ;;  %v5564_v49 = vld [vmem:[%s9973_s1 + $0xb8] sm:$0xff] }
 0x22b   :  { %2364 = vperm.xlu1 %5540, %v5561_v18   ;;  %2368 = vperm.xlu0 %5539, %v5562_v2   ;;  %v5565_v2 = vld [vmem:[%s9973_s1 + $0xc0] sm:$0xff] }
 0x22d   :  { %v7103_v34 = vpop.permute.xlu1 %1824  ;;  %v7105_v1 = vpop.permute.xlu0 %1819 }
 0x22e   :  { %10337 = vst [vmem:[#allocation191_spill] sm:$0xff] %v7103_v34  ;;  %10338 = vst [vmem:[#allocation192_spill] sm:$0xff] %v7105_v1  ;;  %v5566_v1 = vld [vmem:[%s9973_s1 + $0xc8] sm:$0xff] }
 0x22f   :  { %2372 = vperm.xlu1 %5540, %v5563_v50   ;;  %2376 = vperm.xlu0 %5539, %v5564_v49   ;;  %v5567_v49 = vld [vmem:[%s9973_s1 + $0xd0] sm:$0xff] }
 0x231   :  { %v7113_v18 = vpop.permute.xlu1 %1834  ;;  %v7115_v33 = vpop.permute.xlu0 %1829 }
 0x232   :  { %10339 = vst [vmem:[#allocation193_spill] sm:$0xff] %v7113_v18  ;;  %10340 = vst [vmem:[#allocation194_spill] sm:$0xff] %v7115_v33  ;;  %v5568_v33 = vld [vmem:[%s9973_s1 + $0xd8] sm:$0xff] }
 0x233   :  { %2380 = vperm.xlu1 %5540, %v5565_v2   ;;  %2384 = vperm.xlu0 %5539, %v5566_v1   ;;  %v5569_v1 = vld [vmem:[%s9973_s1 + $0xe0] sm:$0xff] }
 0x235   :  { %v7123_v50 = vpop.permute.xlu1 %1844  ;;  %v7125_v34 = vpop.permute.xlu0 %1839 }
 0x236   :  { %10341 = vst [vmem:[#allocation195_spill] sm:$0xff] %v7123_v50  ;;  %10342 = vst [vmem:[#allocation196_spill] sm:$0xff] %v7125_v34  ;;  %v5570_v34 = vld [vmem:[%s9973_s1 + $0xe8] sm:$0xff] }
 0x237   :  { %2388 = vperm.xlu1 %5540, %v5567_v49   ;;  %2392 = vperm.xlu0 %5539, %v5568_v33   ;;  %v5571_v33 = vld [vmem:[%s9973_s1 + $0xf0] sm:$0xff] }
 0x239   :  { %v7133_v2 = vpop.permute.xlu1 %1854  ;;  %v7135_v18 = vpop.permute.xlu0 %1849 }
 0x23a   :  { %10343 = vst [vmem:[#allocation197_spill] sm:$0xff] %v7133_v2  ;;  %10344 = vst [vmem:[#allocation198_spill] sm:$0xff] %v7135_v18  ;;  %v5572_v18 = vld [vmem:[%s9973_s1 + $0xf8] sm:$0xff] }
 0x23b   :  { %2396 = vperm.xlu1 %5540, %v5569_v1   ;;  %2400 = vperm.xlu0 %5539, %v5570_v34   ;;  %v5573_v34 = vld [vmem:[%s9973_s1 + $0x100] sm:$0xff] }
 0x23d   :  { %v7143_v49 = vpop.permute.xlu1 %1864  ;;  %v7145_v50 = vpop.permute.xlu0 %1859 }
 0x23e   :  { %10345 = vst [vmem:[#allocation199_spill] sm:$0xff] %v7143_v49  ;;  %10346 = vst [vmem:[#allocation200_spill] sm:$0xff] %v7145_v50  ;;  %v5574_v50 = vld [vmem:[%s9973_s1 + $0x108] sm:$0xff] }
 0x23f   :  { %2404 = vperm.xlu1 %5540, %v5571_v33   ;;  %2408 = vperm.xlu0 %5539, %v5572_v18   ;;  %v5575_v18 = vld [vmem:[%s9973_s1 + $0x110] sm:$0xff] }
 0x241   :  { %v7153_v1 = vpop.permute.xlu1 %1874  ;;  %v7155_v2 = vpop.permute.xlu0 %1869 }
 0x242   :  { %10347 = vst [vmem:[#allocation201_spill] sm:$0xff] %v7153_v1  ;;  %10348 = vst [vmem:[#allocation202_spill] sm:$0xff] %v7155_v2  ;;  %v5576_v2 = vld [vmem:[%s9973_s1 + $0x118] sm:$0xff] }
 0x243   :  { %2412 = vperm.xlu1 %5540, %v5573_v34   ;;  %2416 = vperm.xlu0 %5539, %v5574_v50   ;;  %v5577_v50 = vld [vmem:[%s9973_s1 + $0x120] sm:$0xff] }
 0x245   :  { %v7163_v33 = vpop.permute.xlu1 %1884  ;;  %v7165_v49 = vpop.permute.xlu0 %1879 }
 0x246   :  { %10349 = vst [vmem:[#allocation203_spill] sm:$0xff] %v7163_v33  ;;  %10350 = vst [vmem:[#allocation204_spill] sm:$0xff] %v7165_v49  ;;  %v5578_v49 = vld [vmem:[%s9973_s1 + $0x128] sm:$0xff] }
 0x247   :  { %2420 = vperm.xlu1 %5540, %v5575_v18   ;;  %2424 = vperm.xlu0 %5539, %v5576_v2   ;;  %v5579_v2 = vld [vmem:[%s9973_s1 + $0x130] sm:$0xff] }
 0x249   :  { %v7173_v34 = vpop.permute.xlu1 %1894  ;;  %v7175_v1 = vpop.permute.xlu0 %1889 }
 0x24a   :  { %10351 = vst [vmem:[#allocation205_spill] sm:$0xff] %v7173_v34  ;;  %10352 = vst [vmem:[#allocation206_spill] sm:$0xff] %v7175_v1  ;;  %v5580_v1 = vld [vmem:[%s9973_s1 + $0x138] sm:$0xff] }
 0x24b   :  { %2428 = vperm.xlu1 %5540, %v5577_v50   ;;  %2432 = vperm.xlu0 %5539, %v5578_v49   ;;  %v5581_v49 = vld [vmem:[%s9973_s1 + $0x140] sm:$0xff] }
 0x24d   :  { %v7183_v18 = vpop.permute.xlu1 %1904  ;;  %v7185_v33 = vpop.permute.xlu0 %1899 }
 0x24e   :  { %10353 = vst [vmem:[#allocation207_spill] sm:$0xff] %v7183_v18  ;;  %10354 = vst [vmem:[#allocation208_spill] sm:$0xff] %v7185_v33  ;;  %v5582_v33 = vld [vmem:[%s9973_s1 + $0x148] sm:$0xff] }
 0x24f   :  { %2436 = vperm.xlu1 %5540, %v5579_v2   ;;  %2440 = vperm.xlu0 %5539, %v5580_v1   ;;  %v5583_v1 = vld [vmem:[%s9973_s1 + $0x150] sm:$0xff] }
 0x251   :  { %v7193_v50 = vpop.permute.xlu1 %1914  ;;  %v7195_v34 = vpop.permute.xlu0 %1909 }
 0x252   :  { %10355 = vst [vmem:[#allocation209_spill] sm:$0xff] %v7193_v50  ;;  %10356 = vst [vmem:[#allocation210_spill] sm:$0xff] %v7195_v34  ;;  %v5584_v34 = vld [vmem:[%s9973_s1 + $0x158] sm:$0xff] }
 0x253   :  { %2444 = vperm.xlu1 %5540, %v5581_v49   ;;  %2448 = vperm.xlu0 %5539, %v5582_v33   ;;  %v5585_v33 = vld [vmem:[%s9973_s1 + $0x160] sm:$0xff] }
 0x255   :  { %v7203_v2 = vpop.permute.xlu1 %1924  ;;  %v7205_v18 = vpop.permute.xlu0 %1919 }
 0x256   :  { %10357 = vst [vmem:[#allocation211_spill] sm:$0xff] %v7203_v2  ;;  %10358 = vst [vmem:[#allocation212_spill] sm:$0xff] %v7205_v18  ;;  %v5586_v18 = vld [vmem:[%s9973_s1 + $0x168] sm:$0xff] }
 0x257   :  { %2452 = vperm.xlu1 %5540, %v5583_v1   ;;  %2456 = vperm.xlu0 %5539, %v5584_v34   ;;  %v5587_v34 = vld [vmem:[%s9973_s1 + $0x170] sm:$0xff] }
 0x259   :  { %v7213_v49 = vpop.permute.xlu1 %1934  ;;  %v7215_v50 = vpop.permute.xlu0 %1929 }
 0x25a   :  { %10359 = vst [vmem:[#allocation213_spill] sm:$0xff] %v7213_v49  ;;  %10360 = vst [vmem:[#allocation214_spill] sm:$0xff] %v7215_v50  ;;  %v5588_v50 = vld [vmem:[%s9973_s1 + $0x178] sm:$0xff] }
 0x25b   :  { %2460 = vperm.xlu1 %5540, %v5585_v33   ;;  %2464 = vperm.xlu0 %5539, %v5586_v18   ;;  %v5589_v18 = vld [vmem:[%s9973_s1 + $0x180] sm:$0xff] }
 0x25d   :  { %v7223_v1 = vpop.permute.xlu1 %1944  ;;  %v7225_v2 = vpop.permute.xlu0 %1939 }
 0x25e   :  { %10361 = vst [vmem:[#allocation215_spill] sm:$0xff] %v7223_v1  ;;  %10362 = vst [vmem:[#allocation216_spill] sm:$0xff] %v7225_v2  ;;  %v5590_v2 = vld [vmem:[%s9973_s1 + $0x188] sm:$0xff] }
 0x25f   :  { %2468 = vperm.xlu1 %5540, %v5587_v34   ;;  %2472 = vperm.xlu0 %5539, %v5588_v50   ;;  %v5591_v50 = vld [vmem:[%s9973_s1 + $0x190] sm:$0xff] }
 0x261   :  { %v7233_v33 = vpop.permute.xlu1 %1954  ;;  %v7235_v49 = vpop.permute.xlu0 %1949 }
 0x262   :  { %10363 = vst [vmem:[#allocation217_spill] sm:$0xff] %v7233_v33  ;;  %10364 = vst [vmem:[#allocation218_spill] sm:$0xff] %v7235_v49  ;;  %v5592_v49 = vld [vmem:[%s9973_s1 + $0x198] sm:$0xff] }
 0x263   :  { %2476 = vperm.xlu1 %5540, %v5589_v18   ;;  %2480 = vperm.xlu0 %5539, %v5590_v2   ;;  %v5593_v2 = vld [vmem:[%s9973_s1 + $0x1a0] sm:$0xff] }
 0x265   :  { %v7243_v34 = vpop.permute.xlu1 %1964  ;;  %v7245_v1 = vpop.permute.xlu0 %1959 }
 0x266   :  { %10365 = vst [vmem:[#allocation219_spill] sm:$0xff] %v7243_v34  ;;  %10366 = vst [vmem:[#allocation220_spill] sm:$0xff] %v7245_v1  ;;  %v5594_v1 = vld [vmem:[%s9973_s1 + $0x1a8] sm:$0xff] }
 0x267   :  { %2484 = vperm.xlu1 %5540, %v5591_v50   ;;  %2488 = vperm.xlu0 %5539, %v5592_v49   ;;  %v5595_v49 = vld [vmem:[%s9973_s1 + $0x1b0] sm:$0xff] }
 0x269   :  { %v7253_v18 = vpop.permute.xlu1 %1974  ;;  %v7255_v33 = vpop.permute.xlu0 %1969 }
 0x26a   :  { %10367 = vst [vmem:[#allocation221_spill] sm:$0xff] %v7253_v18  ;;  %10368 = vst [vmem:[#allocation222_spill] sm:$0xff] %v7255_v33  ;;  %v5596_v33 = vld [vmem:[%s9973_s1 + $0x1b8] sm:$0xff] }
 0x26b   :  { %2492 = vperm.xlu1 %5540, %v5593_v2   ;;  %2496 = vperm.xlu0 %5539, %v5594_v1   ;;  %v5597_v1 = vld [vmem:[%s9973_s1 + $0x1c0] sm:$0xff] }
 0x26d   :  { %v7263_v50 = vpop.permute.xlu1 %1984  ;;  %v7265_v34 = vpop.permute.xlu0 %1979 }
 0x26e   :  { %10369 = vst [vmem:[#allocation223_spill] sm:$0xff] %v7263_v50  ;;  %10370 = vst [vmem:[#allocation224_spill] sm:$0xff] %v7265_v34  ;;  %v5598_v34 = vld [vmem:[%s9973_s1 + $0x1c8] sm:$0xff] }
 0x26f   :  { %2500 = vperm.xlu1 %5540, %v5595_v49   ;;  %2504 = vperm.xlu0 %5539, %v5596_v33   ;;  %v5599_v33 = vld [vmem:[%s9973_s1 + $0x1d0] sm:$0xff] }
 0x271   :  { %v7273_v2 = vpop.permute.xlu1 %1994  ;;  %v7275_v18 = vpop.permute.xlu0 %1989 }
 0x272   :  { %10371 = vst [vmem:[#allocation225_spill] sm:$0xff] %v7273_v2  ;;  %10372 = vst [vmem:[#allocation226_spill] sm:$0xff] %v7275_v18  ;;  %v5600_v18 = vld [vmem:[%s9973_s1 + $0x1d8] sm:$0xff] }
 0x273   :  { %2508 = vperm.xlu1 %5540, %v5597_v1   ;;  %2512 = vperm.xlu0 %5539, %v5598_v34   ;;  %v5601_v34 = vld [vmem:[%s9973_s1 + $0x1e0] sm:$0xff] }
 0x275   :  { %v7283_v49 = vpop.permute.xlu1 %2004  ;;  %v7285_v50 = vpop.permute.xlu0 %1999 }
 0x276   :  { %10373 = vst [vmem:[#allocation227_spill] sm:$0xff] %v7283_v49  ;;  %10374 = vst [vmem:[#allocation228_spill] sm:$0xff] %v7285_v50  ;;  %v5602_v50 = vld [vmem:[%s9973_s1 + $0x1e8] sm:$0xff] }
 0x277   :  { %2516 = vperm.xlu1 %5540, %v5599_v33   ;;  %2520 = vperm.xlu0 %5539, %v5600_v18   ;;  %v5603_v18 = vld [vmem:[%s9973_s1 + $0x1f0] sm:$0xff] }
 0x279   :  { %v7293_v1 = vpop.permute.xlu1 %2014  ;;  %v7295_v2 = vpop.permute.xlu0 %2009 }
 0x27a   :  { %10375 = vst [vmem:[#allocation229_spill] sm:$0xff] %v7293_v1  ;;  %10376 = vst [vmem:[#allocation230_spill] sm:$0xff] %v7295_v2  ;;  %v5604_v2 = vld [vmem:[%s9973_s1 + $0x1f8] sm:$0xff] }
 0x27b   :  { %2524 = vperm.xlu1 %5540, %v5601_v34   ;;  %2528 = vperm.xlu0 %5539, %v5602_v50   ;;  %v5605_v50 = vld [vmem:[%s9973_s1 + $0x200] sm:$0xff] }
 0x27d   :  { %v7303_v33 = vpop.permute.xlu1 %2024  ;;  %v7305_v49 = vpop.permute.xlu0 %2019 }
 0x27e   :  { %10377 = vst [vmem:[#allocation231_spill] sm:$0xff] %v7303_v33  ;;  %10378 = vst [vmem:[#allocation232_spill] sm:$0xff] %v7305_v49  ;;  %v5606_v49 = vld [vmem:[%s9973_s1 + $0x208] sm:$0xff] }
 0x27f   :  { %2532 = vperm.xlu1 %5540, %v5603_v18   ;;  %2536 = vperm.xlu0 %5539, %v5604_v2   ;;  %v336_v18 = vlaneseq  ;;  %v5607_v2 = vld [vmem:[%s9973_s1 + $0x210] sm:$0xff] }
 0x281   :  { %v7418_v45 = vshrl.u32 %v336_v18, 7 }
 0x282   :  { %v7313_v34 = vpop.permute.xlu1 %2288  ;;  %v7315_v1 = vpop.permute.xlu0 %2284 }
 0x283   :  { %2540 = vperm.xlu1 %5540, %v5605_v50   ;;  %2544 = vperm.xlu0 %5539, %v5606_v49   ;;  %v354_v50 = vand.u32 127, %v336_v18  ;;  %v5609_v49 = vld [vmem:[%s9973_s1 + $0x220] sm:$0xff]  ;;  %10379 = vst [vmem:[#allocation233_spill] sm:$0xff] %v7418_v45  ;;  %v341_v37 = vcvt.s32.f32 %v7418_v45 }
 0x286   :  { %v7323_v33 = vpop.permute.xlu1 %2292  ;;  %v7325_v58 = vpop.permute.xlu0 %2296 }
 0x287   :  { %2548 = vperm.xlu1 %5540, %v5607_v2   ;;  %2552 = vperm.xlu0 %5539, %v5608_v17   ;;  %v355_v2 = vcvt.s32.f32 %v354_v50  ;;  %v5611_v17 = vld [vmem:[%s9973_s1 + $0x230] sm:$0xff]  ;;  %v5613_v50 = vld [vmem:[%s9973_s1 + $0x240] sm:$0xff] }
 0x28a   :  { %v7333_v57 = vpop.permute.xlu1 %2300  ;;  %v7335_v42 = vpop.permute.xlu0 %2304 }
 0x28b   :  { %2556 = vperm.xlu1 %5540, %v5609_v49   ;;  %2560 = vperm.xlu0 %5539, %v5610_v41   ;;  %v7353_v49 = vmul.f32 2.0, %v355_v2 }
 0x28d   :  { %v7366_v62 = vadd.f32 2.0, %v7353_v49  ;;  %v3312_v63 = vmax.f32 %v7335_v42, %v7353_v49  ;;  %v5624_v42 = vld [vmem:[%s9973_s1 + $0x298] sm:$0xff] }
 0x28e   :  { %v7343_v26 = vpop.permute.xlu1 %2308  ;;  %v7345_v25 = vpop.permute.xlu0 %2312 }
 0x28f   :  { %2564 = vperm.xlu1 %5540, %v5611_v17   ;;  %2568 = vperm.xlu0 %5539, %v5612_v10   ;;  %v5614_v17 = vld [vmem:[%s9973_s1 + $0x248] sm:$0xff]  ;;  %v2027_v54 = vmin.f32 %v6041_v4, %v7366_v62  ;;  %v2030_v53 = vmin.f32 %v6049_v7, %v7366_v62  ;;  %v2028_v46 = vmin.f32 %v6051_v8, %v7366_v62 }
 0x290   :  { %v3308_v4 = vmax.f32 %v7313_v34, %v7353_v49  ;;  %v5618_v34 = vld [vmem:[%s9973_s1 + $0x268] sm:$0xff]  ;;  %v2043_v8 = vmin.f32 %v6121_v36, %v7366_v62  ;;  %v5620_v36 = vld [vmem:[%s9973_s1 + $0x278] sm:$0xff] }
 0x292   :  { %v7355_v9 = vpop.permute.xlu1 %2316  ;;  %v7357_v41 = vpop.permute.xlu0 %2320  ;;  %v3564_v29 = vsub.f32 %v2028_v46, %v3308_v4  ;;  %v3310_v46 = vmax.f32 %v7325_v58, %v7353_v49 }
 0x293   :  { %2572 = vperm.xlu1 %5540, %v5613_v50   ;;  %2576 = vperm.xlu0 %5539, %v5614_v17   ;;  %v5616_v50 = vld [vmem:[%s9973_s1 + $0x258] sm:$0xff]  ;;  %v2029_v17 = vmin.f32 %v6039_v3, %v7366_v62  ;;  %v5617_v3 = vld [vmem:[%s9973_s1 + $0x260] sm:$0xff] }
 0x294   :  { %v3820_v21 = vmax.f32 %v3564_v29, 0.0  ;;  %v5621_v29 = vld [vmem:[%s9973_s1 + $0x280] sm:$0xff]  ;;  %v3566_v31 = vsub.f32 %v2030_v53, %v3310_v46  ;;  %v7496_v46 = vsub.s32 2, %v7418_v45 }
 0x296   :  { %v7368_v10 = vpop.permute.xlu1 %2324  ;;  %v7370_v2 = vpop.permute.xlu0 %2328 }
 0x297   :  { %2580 = vperm.xlu1 %5540, %v5615_v61   ;;  %2584 = vperm.xlu0 %5539, %v5616_v50   ;;  %v3307_v61 = vmax.f32 %v7315_v1, %v7353_v49  ;;  %v2044_v50 = vmin.f32 %v6119_v35, %v7366_v62  ;;  %v5619_v35 = vld [vmem:[%s9973_s1 + $0x270] sm:$0xff] }
 0x299   :  { %v3563_v30 = vsub.f32 %v2027_v54, %v3307_v61  ;;  %v3309_v54 = vmax.f32 %v7323_v33, %v7353_v49  ;;  %v7455_v33 = vsub.s32 0, %v7418_v45 }
 0x29a   :  { %v7396_v38 = vpop.permute.xlu1 %2332  ;;  %v7398_v7 = vpop.permute.xlu0 %2336 }
 0x29b   :  { %2588 = vperm.xlu1 %5540, %v5617_v3   ;;  %2592 = vperm.xlu0 %5539, %v5618_v34   ;;  %v2046_v3 = vmin.f32 %v6129_v39, %v7366_v62  ;;  %v2045_v34 = vmin.f32 %v6131_v40, %v7366_v62  ;;  %v7449_v39 = vmul.f32 2.0, %v341_v37  ;;  %v7452_v40 = vsub.s32 1, %v7418_v45  ;;  %v65_v37 = vld [vmem:[%s9972_s0 + $0x8] sm:$0xff] }
 0x29c   :  { %v7473_v61 = vrot.slane %v65_v37, %v7455_v33  ;;  %v3565_v5 = vsub.f32 %v2029_v17, %v3309_v54 }
 0x29d   :  { %v7467_v14 = vadd.f32 2.0, %v7449_v39  ;;  %v7470_v13 = vrot.slane %v65_v37, %v7452_v40 }
 0x29e   :  { %v7430_v1 = vpop.permute.xlu1 %2340  ;;  %v7432_v18 = vpop.permute.xlu0 %2344  ;;  %10381 = vst [vmem:[#allocation235_spill] sm:$0xff] %v7473_v61 }
 0x29f   :  { %2596 = vperm.xlu1 %5540, %v5619_v35   ;;  %2600 = vperm.xlu0 %5539, %v5620_v36   ;;  %v3819_v36 = vmax.f32 %v3563_v30, 0.0  ;;  %10380 = vst [vmem:[#allocation234_spill] sm:$0xff] %v7470_v13  ;;  %v427_v32 = vmin.f32 %v7470_v13, %v7467_v14  ;;  %v3311_v35 = vmax.f32 %v7333_v57, %v7353_v49  ;;  %v5623_v57 = vld [vmem:[%s9973_s1 + $0x290] sm:$0xff] }
 0x2a1   :  { %v5277_v53 = vpack.c.bf16 %v3820_v21, %v3819_v36  ;;  %v7507_v36 = vrot.slane %v65_v37, %v7496_v46 }
 0x2a2   :  { %v2349_v58 = vpop.permute.xlu1 %2348  ;;  %v2353_v22 = vpop.permute.xlu0 %2352 }
 0x2a3   :  { %v3323_v30 = vmax.f32 %v2349_v58, %v7353_v49  ;;  %v3324_v4 = vmax.f32 %v2353_v22, %v7353_v49  ;;  %2604 = vperm.xlu1 %5540, %v5621_v29   ;;  %2608 = vperm.xlu0 %5539, %v5622_v6   ;;  %v555_v58 = vmax.f32 %v7473_v61, %v7449_v39 }
 0x2a4   :  { %v10383_v22 = vmin.f32 %v6059_v11, %v7366_v62  ;;  %v5625_v11 = vld [vmem:[%s9973_s1 + $0x2a0] sm:$0xff] }
 0x2a5   :  { %v3579_v29 = vsub.f32 %v2043_v8, %v3323_v30  ;;  %v3580_v0 = vsub.f32 %v2044_v50, %v3324_v4  ;;  %v619_v54 = vsub.f32 %v427_v32, %v555_v58  ;;  %v3821_v32 = vmax.f32 %v3565_v5, 0.0 }
 0x2a6   :  { %v2357_v6 = vpop.permute.xlu1 %2356  ;;  %v2361_v17 = vpop.permute.xlu0 %2360  ;;  %v3822_v8 = vmax.f32 %v3566_v31, 0.0  ;;  %v10382_v30 = vmin.f32 %v6061_v12, %v7366_v62  ;;  %v3568_v45 = vsub.f32 %v10383_v22, %v3312_v63  ;;  %v3314_v31 = vmax.f32 %v7345_v25, %v7353_v49  ;;  %v5626_v63 = vld [vmem:[%s9973_s1 + $0x2a8] sm:$0xff] }
 0x2a7   :  { %v3325_v61 = vmax.f32 %v2357_v6, %v7353_v49  ;;  %v3326_v13 = vmax.f32 %v2361_v17, %v7353_v49  ;;  %2612 = vperm.xlu1 %5540, %v5623_v57   ;;  %2616 = vperm.xlu0 %5539, %v5624_v42   ;;  %v3835_v50 = vmax.f32 %v3579_v29, 0.0  ;;  %v3836_v21 = vmax.f32 %v3580_v0, 0.0 }
 0x2a8   :  { %v683_v4 = vmax.f32 %v619_v54, 0.0  ;;  %v3567_v58 = vsub.f32 %v10382_v30, %v3311_v35  ;;  %v3313_v0 = vmax.f32 %v7343_v26, %v7353_v49  ;;  %v2051_v25 = vmin.f32 %v6161_v52, %v7366_v62 }
 0x2a9   :  { %v3581_v6 = vsub.f32 %v2045_v34, %v3325_v61  ;;  %v3582_v17 = vsub.f32 %v2046_v3, %v3326_v13  ;;  %v5275_v57 = vpack.c.bf16 %v3836_v21, %v3835_v50  ;;  %v3315_v26 = vmax.f32 %v7355_v9, %v7353_v49 }
 0x2aa   :  { %v2365_v5 = vpop.permute.xlu1 %2364  ;;  %v2369_v37 = vpop.permute.xlu0 %2368  ;;  %v4140_v29 = vmul.f32 %v7507_v36, %v683_v4  ;;  %v3316_v3 = vmax.f32 %v7357_v41, %v7353_v49  ;;  %v10384_v61 = vmin.f32 %v6141_v44, %v7366_v62  ;;  %v10385_v22 = vmin.f32 %v6139_v43, %v7366_v62 }
 0x2ab   :  { %v3837_v54 = vmax.f32 %v3581_v6, 0.0  ;;  %v3838_v12 = vmax.f32 %v3582_v17, 0.0  ;;  %v3327_v34 = vmax.f32 %v2365_v5, %v7353_v49  ;;  %v3328_v13 = vmax.f32 %v2369_v37, %v7353_v49  ;;  %2620 = vperm.xlu1 %5540, %v5625_v11   ;;  %2624 = vperm.xlu0 %5539, %v5626_v63  }
 0x2ac   :  { %5276 = vmatprep.subr.bf16.mxu0 %v5275_v57  ;;  %4271 = vmatprep.mubr.f32.mxu0 %v4140_v29  ;;  %v5281_v21 = vpack.c.bf16 %v3822_v8, %v3821_v32  ;;  %v3823_v52 = vmax.f32 %v3567_v58, 0.0  ;;  %v3824_v4 = vmax.f32 %v3568_v45, 0.0  ;;  %v10386_v9 = vmin.f32 %v6071_v16, %v7366_v62  ;;  %v5627_v45 = vld [vmem:[%s9973_s1 + $0x2b0] sm:$0xff]  ;;  %v5628_v16 = vld [vmem:[%s9973_s1 + $0x2b8] sm:$0xff] }
 0x2ad   :  { %v3583_v35 = vsub.f32 %v10384_v61, %v3327_v34  ;;  %v3584_v42 = vsub.f32 %v10385_v22, %v3328_v13  ;;  %5278 = vmatpush3.bf16.msra.mxu0 %v5277_v53  ;;  %v5279_v50 = vpack.c.bf16 %v3838_v12, %v3837_v54  ;;  %v10387_v41 = vmin.f32 %v6069_v15, %v7366_v62 }
 0x2ae   :  { %v3569_v30 = vsub.f32 %v10386_v9, %v3313_v0  ;;  %v2373_v17 = vpop.permute.xlu1 %2372  ;;  %v2377_v44 = vpop.permute.xlu0 %2376  ;;  %v2054_v15 = vmin.f32 %v6169_v55, %v7366_v62  ;;  %v10388_v32 = vmin.f32 %v6081_v20, %v7366_v62  ;;  %v10389_v58 = vmin.f32 %v6079_v19, %v7366_v62 }
 0x2af   :  { %v3570_v6 = vsub.f32 %v10387_v41, %v3314_v31  ;;  %v3839_v57 = vmax.f32 %v3583_v35, 0.0  ;;  %v3840_v5 = vmax.f32 %v3584_v42, 0.0  ;;  %v3329_v43 = vmax.f32 %v2373_v17, %v7353_v49  ;;  %2628 = vperm.xlu1 %5540, %v5627_v45   ;;  %2632 = vperm.xlu0 %5539, %v5628_v16  }
 0x2b0   :  { %v3330_v53 = vmax.f32 %v2377_v44, %v7353_v49  ;;  %v3571_v8 = vsub.f32 %v10388_v32, %v3315_v26  ;;  %v3572_v0 = vsub.f32 %v10389_v58, %v3316_v3  ;;  %v3317_v31 = vmax.f32 %v7368_v10, %v7353_v49  ;;  %5280 = vmatprep.subr.bf16.mxu0 %v5279_v50 }
 0x2b1   :  { %v3318_v37 = vmax.f32 %v7370_v2, %v7353_v49  ;;  %v10390_v29 = vmin.f32 %v6151_v48, %v7366_v62  ;;  %v10391_v55 = vmin.f32 %v6149_v47, %v7366_v62  ;;  %5282 = vmatpush3.bf16.msra.mxu0 %v5281_v21  ;;  %v5283_v12 = vpack.c.bf16 %v3840_v5, %v3839_v57  ;;  %v5629_v47 = vld [vmem:[%s9973_s1 + $0x2c0] sm:$0xff] }
 0x2b2   :  { %v2053_v19 = vmin.f32 %v6171_v56, %v7366_v62  ;;  %v3825_v34 = vmax.f32 %v3569_v30, 0.0  ;;  %v3826_v13 = vmax.f32 %v3570_v6, 0.0  ;;  %v2381_v10 = vpop.permute.xlu1 %2380  ;;  %v2385_v11 = vpop.permute.xlu0 %2384  ;;  %v5285_v63 = vpack.c.bf16 %v3824_v4, %v3823_v52  ;;  %v5630_v56 = vld [vmem:[%s9973_s1 + $0x2c8] sm:$0xff] }
 0x2b3   :  { %v3585_v54 = vsub.f32 %v10390_v29, %v3329_v43  ;;  %v3586_v20 = vsub.f32 %v10391_v55, %v3330_v53  ;;  %v3331_v3 = vmax.f32 %v2381_v10, %v7353_v49  ;;  %v3332_v48 = vmax.f32 %v2385_v11, %v7353_v49  ;;  %2636 = vperm.xlu1 %5540, %v5629_v47   ;;  %v5631_v53 = vld [vmem:[%s9973_s1 + $0x2d0] sm:$0xff]  ;;  %v10398_v11 = vld [vmem:[#allocation8_spill] sm:$0xff] }
 0x2b4   :  { %2640 = vperm.xlu0 %5539, %v5630_v56   ;;  %v2056_v61 = vmin.f32 %v6179_v59, %v7366_v62  ;;  %v3827_v35 = vmax.f32 %v3571_v8, 0.0  ;;  %v3828_v22 = vmax.f32 %v3572_v0, 0.0  ;;  %v10392_v42 = vmin.f32 %v6091_v24, %v7366_v62  ;;  %5284 = vmatprep.subr.bf16.mxu0 %v5283_v12  ;;  %v7596_v59 = vld [vmem:[%s9972_s0] sm:$0xff] }
 0x2b5   :  { %v3841_v26 = vmax.f32 %v3585_v54, 0.0  ;;  %v3842_v2 = vmax.f32 %v3586_v20, 0.0  ;;  %v10393_v21 = vmin.f32 %v6089_v23, %v7366_v62  ;;  %v3587_v4 = vsub.f32 %v2051_v25, %v3331_v3  ;;  %5286 = vmatpush3.bf16.msra.mxu0 %v5285_v63 }
 0x2b6   :  { %v3573_v50 = vsub.f32 %v10392_v42, %v3317_v31  ;;  %v10394_v9 = vmin.f32 %v6159_v51, %v7366_v62  ;;  %v2055_v24 = vmin.f32 %v6181_v60, %v7366_v62  ;;  %v3319_v6 = vmax.f32 %v7396_v38, %v7353_v49  ;;  %v2389_v25 = vpop.permute.xlu1 %2388  ;;  %v2393_v17 = vpop.permute.xlu0 %2392  ;;  %v5632_v60 = vld [vmem:[%s9973_s1 + $0x2d8] sm:$0xff]  ;;  %v10399_v42 = vld [vmem:[#allocation6_spill] sm:$0xff] }
 0x2b7   :  { %v3574_v52 = vsub.f32 %v10393_v21, %v3318_v37  ;;  %v5287_v41 = vpack.c.bf16 %v3842_v2, %v3841_v26  ;;  %v3320_v23 = vmax.f32 %v7398_v7, %v7353_v49  ;;  %v5289_v51 = vpack.c.bf16 %v3826_v13, %v3825_v34  ;;  %2644 = vperm.xlu1 %5540, %v5631_v53  }
 0x2b8   :  { %v3588_v30 = vsub.f32 %v10394_v9, %v3332_v48  ;;  %v3843_v44 = vmax.f32 %v3587_v4, 0.0  ;;  %v3333_v5 = vmax.f32 %v2389_v25, %v7353_v49  ;;  %v3334_v43 = vmax.f32 %v2393_v17, %v7353_v49  ;;  %2648 = vperm.xlu0 %5539, %v5632_v60   ;;  %v5635_v25 = vld [vmem:[%s9973_s1 + $0x2f0] sm:$0xff]  ;;  %v5636_v17 = vld [vmem:[%s9973_s1 + $0x2f8] sm:$0xff] }
 0x2b9   :  { %v3829_v38 = vmax.f32 %v3573_v50, 0.0  ;;  %5288 = vmatprep.subr.bf16.mxu0 %v5287_v41  ;;  %v5293_v7 = vpack.c.bf16 %v3828_v22, %v3827_v35  ;;  %v7614_v45 = vrot.slane %v7596_v59, %v7452_v40  ;;  %v7618_v16 = vrot.slane %v7596_v59, %v7455_v33 }
 0x2ba   :  { %v3844_v57 = vmax.f32 %v3588_v30, 0.0  ;;  %v3830_v32 = vmax.f32 %v3574_v52, 0.0  ;;  %v3589_v8 = vsub.f32 %v2053_v19, %v3333_v5  ;;  %v3590_v58 = vsub.f32 %v2054_v15, %v3334_v43  ;;  %5290 = vmatpush3.bf16.msra.mxu0 %v5289_v51  ;;  %v2397_v12 = vpop.permute.xlu1 %2396  ;;  %v2401_v34 = vpop.permute.xlu0 %2400  ;;  %v10401_v52 = vld [vmem:[#allocation5_spill] sm:$0xff] }
 0x2bb   :  { %v10395_v31 = vmin.f32 %v6101_v28, %v7366_v62  ;;  %v10396_v29 = vmin.f32 %v6099_v27, %v7366_v62  ;;  %v3321_v55 = vmax.f32 %v7430_v1, %v7353_v49  ;;  %v3322_v20 = vmax.f32 %v7432_v18, %v7353_v49  ;;  %v5633_v28 = vld [vmem:[%s9973_s1 + $0x2e0] sm:$0xff]  ;;  %v5634_v27 = vld [vmem:[%s9973_s1 + $0x2e8] sm:$0xff]  ;;  %v10397_v1 = vld [vmem:[#allocation7_spill] sm:$0xff] }
 0x2bc   :  { %v5291_v0 = vpack.c.bf16 %v3844_v57, %v3843_v44  ;;  %v3845_v19 = vmax.f32 %v3589_v8, 0.0  ;;  %v3846_v15 = vmax.f32 %v3590_v58, 0.0  ;;  %v3335_v13 = vmax.f32 %v2397_v12, %v7353_v49  ;;  %2652 = vperm.xlu1 %5540, %v5633_v28   ;;  %2656 = vperm.xlu0 %5539, %v5634_v27   ;;  %v5637_v58 = vld [vmem:[%s9973_s1 + $0x300] sm:$0xff]  ;;  %v5640_v12 = vld [vmem:[%s9973_s1 + $0x318] sm:$0xff] }
 0x2bd   :  { %v3575_v37 = vsub.f32 %v10395_v31, %v3319_v6  ;;  %v3576_v54 = vsub.f32 %v10396_v29, %v3320_v23  ;;  %v3336_v10 = vmax.f32 %v2401_v34, %v7353_v49  ;;  %v2058_v18 = vmin.f32 %v10397_v1, %v7366_v62  ;;  %v5643_v1 = vld [vmem:[%s9973_s1 + $0x330] sm:$0xff] }
 0x2be   :  { %v2057_v63 = vmin.f32 %v10398_v11, %v7366_v62  ;;  %5292 = vmatprep.subr.bf16.mxu0 %v5291_v0  ;;  %v426_v26 = vmin.f32 %v7614_v45, %v7467_v14  ;;  %v554_v2 = vmax.f32 %v7618_v16, %v7449_v39  ;;  %v3591_v3 = vsub.f32 %v2055_v24, %v3335_v13  ;;  %v2405_v30 = vpop.permute.xlu1 %2404  ;;  %v2409_v41 = vpop.permute.xlu0 %2408  ;;  %v5638_v0 = vld [vmem:[%s9973_s1 + $0x308] sm:$0xff]  ;;  %v5641_v13 = vld [vmem:[%s9973_s1 + $0x320] sm:$0xff] }
 0x2bf   :  { %v3592_v48 = vsub.f32 %v2056_v61, %v3336_v10  ;;  %5294 = vmatpush3.bf16.msra.mxu0 %v5293_v7  ;;  %v5295_v47 = vpack.c.bf16 %v3846_v15, %v3845_v19  ;;  %v5297_v56 = vpack.c.bf16 %v3830_v32, %v3829_v38  ;;  %v3831_v35 = vmax.f32 %v3575_v37, 0.0  ;;  %v5642_v10 = vld [vmem:[%s9973_s1 + $0x328] sm:$0xff] }
 0x2c0   :  { %v3832_v22 = vmax.f32 %v3576_v54, 0.0  ;;  %v10400_v50 = vmin.f32 %v10399_v42, %v7366_v62  ;;  %v10402_v4 = vmin.f32 %v10401_v52, %v7366_v62  ;;  %v3847_v6 = vmax.f32 %v3591_v3, 0.0  ;;  %2660 = vperm.xlu1 %5540, %v5635_v25   ;;  %2664 = vperm.xlu0 %5539, %v5636_v17   ;;  %v10408_v25 = vld [vmem:[#allocation13_spill] sm:$0xff] }
 0x2c1   :  { %v3848_v23 = vmax.f32 %v3592_v48, 0.0  ;;  %v3337_v24 = vmax.f32 %v2405_v30, %v7353_v49  ;;  %v3338_v61 = vmax.f32 %v2409_v41, %v7353_v49  ;;  %5296 = vmatprep.subr.bf16.mxu0 %v5295_v47  ;;  %v618_v51 = vsub.f32 %v426_v26, %v554_v2  ;;  %v5645_v26 = vld [vmem:[%s9973_s1 + $0x340] sm:$0xff]  ;;  %v5646_v2 = vld [vmem:[%s9973_s1 + $0x348] sm:$0xff]  ;;  %v5647_v47 = vld [vmem:[%s9973_s1 + $0x350] sm:$0xff] }
 0x2c2   :  { %v3577_v21 = vsub.f32 %v10400_v50, %v3321_v55  ;;  %v3578_v9 = vsub.f32 %v10402_v4, %v3322_v20  ;;  %v7660_v43 = vpop.permute.xlu1 %2412  ;;  %v7662_v53 = vpop.permute.xlu0 %2416  ;;  %v5301_v60 = vpack.c.bf16 %v3832_v22, %v3831_v35  ;;  %v7672_v37 = vrot.slane %v7596_v59, %v7496_v46  ;;  %v5639_v20 = vld [vmem:[%s9973_s1 + $0x310] sm:$0xff]  ;;  %v10405_v4 = vld [vmem:[#allocation10_spill] sm:$0xff] }
 0x2c3   :  { %v3593_v44 = vsub.f32 %v2057_v63, %v3337_v24  ;;  %v3594_v57 = vsub.f32 %v2058_v18, %v3338_v61  ;;  %5298 = vmatpush3.bf16.msra.mxu0 %v5297_v56  ;;  %v5299_v5 = vpack.c.bf16 %v3848_v23, %v3847_v6  ;;  %v682_v31 = vmax.f32 %v618_v51, 0.0  ;;  %v5644_v18 = vld [vmem:[%s9973_s1 + $0x338] sm:$0xff]  ;;  %v10406_v30 = vld [vmem:[#allocation11_spill] sm:$0xff]  ;;  %v5649_v6 = vld [vmem:[%s9973_s1 + $0x360] sm:$0xff] }
 0x2c4   :  { %v3833_v38 = vmax.f32 %v3577_v21, 0.0  ;;  %v3834_v7 = vmax.f32 %v3578_v9, 0.0  ;;  %2668 = vperm.xlu1 %5540, %v5637_v58   ;;  %2672 = vperm.xlu0 %5539, %v5638_v0   ;;  %10403 = vst [vmem:[#allocation7_spill] sm:$0xff] %v7672_v37  ;;  %v5648_v56 = vld [vmem:[%s9973_s1 + $0x358] sm:$0xff]  ;;  %v3339_v35 = vmax.f32 %v7660_v43, %v7353_v49  ;;  %v3340_v22 = vmax.f32 %v7662_v53, %v7353_v49  ;;  %v10404_v21 = vld [vmem:[#allocation9_spill] sm:$0xff]  ;;  %v5650_v23 = vld [vmem:[%s9973_s1 + $0x368] sm:$0xff] }
 0x2c5   :  { %v3849_v32 = vmax.f32 %v3593_v44, 0.0  ;;  %v3850_v8 = vmax.f32 %v3594_v57, 0.0  ;;  %5300 = vmatprep.subr.bf16.mxu0 %v5299_v5  ;;  %v4139_v59 = vmul.f32 %v7672_v37, %v682_v31  ;;  %v2060_v52 = vmin.f32 %v10404_v21, %v7366_v62  ;;  %v10407_v24 = vld [vmem:[#allocation12_spill] sm:$0xff]  ;;  %v10409_v51 = vld [vmem:[#allocation14_spill] sm:$0xff]  ;;  %v10410_v57 = vld [vmem:[#allocation15_spill] sm:$0xff] }
 0x2c6   :  { %v7674_v54 = vpop.permute.xlu1 %2420  ;;  %v7676_v55 = vpop.permute.xlu0 %2424  ;;  %v5305_v34 = vpack.c.bf16 %v3834_v7, %v3833_v38  ;;  %v2059_v9 = vmin.f32 %v10405_v4, %v7366_v62  ;;  %v2062_v41 = vmin.f32 %v10406_v30, %v7366_v62  ;;  %v2061_v61 = vmin.f32 %v10407_v24, %v7366_v62  ;;  %v10411_v43 = vld [vmem:[#allocation16_spill] sm:$0xff]  ;;  %v10413_v7 = vld [vmem:[#allocation18_spill] sm:$0xff]  ;;  %v5653_v5 = vld [vmem:[%s9973_s1 + $0x380] sm:$0xff] }
 0x2c7   :  { %5302 = vmatpush3.bf16.msra.mxu0 %v5301_v60  ;;  %v5303_v29 = vpack.c.bf16 %v3850_v8, %v3849_v32  ;;  %v10412_v60 = vld [vmem:[#allocation17_spill] sm:$0xff]  ;;  %v10414_v8 = vld [vmem:[#allocation19_spill] sm:$0xff]  ;;  %v10415_v0 = vld [vmem:[#allocation20_spill] sm:$0xff]  ;;  %v3342_v30 = vmax.f32 %v7676_v55, %v7353_v49  ;;  %v10433_v37 = vmin.f32 %v10408_v25, %v7366_v62 }
 0x2c8   :  { %2676 = vperm.xlu1 %5540, %v5639_v20   ;;  %2680 = vperm.xlu0 %5539, %v5640_v12   ;;  %v3595_v12 = vsub.f32 %v2059_v9, %v3339_v35  ;;  %v5652_v35 = vld [vmem:[%s9973_s1 + $0x378] sm:$0xff]  ;;  %v3341_v9 = vmax.f32 %v7674_v54, %v7353_v49  ;;  %v10430_v44 = vld [vmem:[#allocation33_spill] sm:$0xff] }
 0x2c9   :  { %5304 = vmatprep.subr.bf16.mxu0 %v5303_v29  ;;  %v10416_v29 = vld [vmem:[#allocation21_spill] sm:$0xff]  ;;  %v10423_v24 = vld [vmem:[#allocation28_spill] sm:$0xff]  ;;  %v3598_v53 = vsub.f32 %v2062_v41, %v3342_v30 }
 0x2ca   :  { %v7685_v19 = vpop.permute.xlu1 %2428  ;;  %v7687_v15 = vpop.permute.xlu0 %2432 }
 0x2cb   :  { %5306 = vmatpush3.bf16.msra.mxu0 %v5305_v34  ;;  %v3596_v34 = vsub.f32 %v2060_v52, %v3340_v22  ;;  %v10420_v22 = vld [vmem:[#allocation25_spill] sm:$0xff]  ;;  %v10421_v52 = vld [vmem:[#allocation26_spill] sm:$0xff]  ;;  %v3344_v41 = vmax.f32 %v7687_v15, %v7353_v49 }
 0x2cc   :  { %2684 = vperm.xlu1 %5540, %v5641_v13   ;;  %2688 = vperm.xlu0 %5539, %v5642_v10   ;;  %v10417_v10 = vld [vmem:[#allocation22_spill] sm:$0xff]  ;;  %v2076_v21 = vmin.f32 %v10420_v22, %v7366_v62  ;;  %v2075_v4 = vmin.f32 %v10421_v52, %v7366_v62  ;;  %v67_v52 = vld [vmem:[%s9972_s0 + $0x18] sm:$0xff] }
 0x2cd   :  { %v10425_v22 = vld [vmem:[#allocation30_spill] sm:$0xff]  ;;  %v3852_v55 = vmax.f32 %v3596_v34, 0.0  ;;  %v7801_v58 = vrot.slane %v67_v52, %v7452_v40  ;;  %v3597_v34 = vsub.f32 %v2061_v61, %v3341_v9  ;;  %v3600_v31 = vsub.f32 %v10433_v37, %v3344_v41  ;;  %v5657_v37 = vld [vmem:[%s9973_s1 + $0x3a0] sm:$0xff] }
 0x2ce   :  { %4272 = vmatmul.mubr.f32.vlgmr.msra.gmra.mrb[0].mxu0 %v4139_v59  ;;  %v7695_v28 = vpop.permute.xlu1 %2436  ;;  %v7697_v27 = vpop.permute.xlu0 %2440 }
 0x2cf   :  { %10426 = vst [vmem:[#allocation8_spill] sm:$0xff] %v7801_v58 }
 0x2d0   :  { %2692 = vperm.xlu1 %5540, %v5643_v1   ;;  %2696 = vperm.xlu0 %5539, %v5644_v18   ;;  %v10418_v18 = vld [vmem:[#allocation23_spill] sm:$0xff]  ;;  %v3851_v1 = vmax.f32 %v3595_v12, 0.0  ;;  %v5654_v12 = vld [vmem:[%s9973_s1 + $0x388] sm:$0xff] }
 0x2d2   :  { %v7705_v11 = vpop.permute.xlu1 %2444  ;;  %v7707_v63 = vpop.permute.xlu0 %2448  ;;  %v5309_v30 = vpack.c.bf16 %v3852_v55, %v3851_v1  ;;  %v10432_v55 = vmin.f32 %v10409_v51, %v7366_v62 }
 0x2d4   :  { %2700 = vperm.xlu1 %5540, %v5645_v26   ;;  %2704 = vperm.xlu0 %5539, %v5646_v2   ;;  %v10419_v2 = vld [vmem:[#allocation24_spill] sm:$0xff]  ;;  %v429_v26 = vmin.f32 %v7801_v58, %v7467_v14 }
 0x2d6   :  { %v7715_v3 = vpop.permute.xlu1 %2452  ;;  %v7717_v48 = vpop.permute.xlu0 %2456 }
 0x2d8   :  { %2708 = vperm.xlu1 %5540, %v5647_v47   ;;  %2712 = vperm.xlu0 %5539, %v5648_v56   ;;  %v5651_v56 = vld [vmem:[%s9973_s1 + $0x370] sm:$0xff]  ;;  %v3343_v47 = vmax.f32 %v7685_v19, %v7353_v49 }
 0x2d9   :  { %v5655_v19 = vld [vmem:[%s9973_s1 + $0x390] sm:$0xff] }
 0x2da   :  { %v7729_v42 = vpop.permute.xlu1 %2460  ;;  %v7731_v50 = vpop.permute.xlu0 %2464 }
 0x2dc   :  { %2716 = vperm.xlu1 %5540, %v5649_v6   ;;  %2720 = vperm.xlu0 %5539, %v5650_v23   ;;  %v10422_v6 = vld [vmem:[#allocation27_spill] sm:$0xff] }
 0x2dd   :  { %v2078_v23 = vmin.f32 %v10422_v6, %v7366_v62  ;;  %v7804_v6 = vrot.slane %v67_v52, %v7455_v33 }
 0x2de   :  { %v7765_v59 = vpop.permute.xlu1 %2468  ;;  %v7767_v13 = vpop.permute.xlu0 %2472 }
 0x2df   :  { %10427 = vst [vmem:[#allocation6_spill] sm:$0xff] %v7804_v6 }
 0x2e0   :  { %2724 = vperm.xlu1 %5540, %v5651_v56   ;;  %2728 = vperm.xlu0 %5539, %v5652_v35   ;;  %v2077_v56 = vmin.f32 %v10423_v24, %v7366_v62  ;;  %v10424_v35 = vld [vmem:[#allocation29_spill] sm:$0xff]  ;;  %v10428_v24 = vld [vmem:[#allocation31_spill] sm:$0xff] }
 0x2e2   :  { %v2477_v54 = vpop.permute.xlu1 %2476  ;;  %v2481_v20 = vpop.permute.xlu0 %2480 }
 0x2e3   :  { %v3355_v38 = vmax.f32 %v2477_v54, %v7353_v49  ;;  %v3356_v32 = vmax.f32 %v2481_v20, %v7353_v49  ;;  %v557_v54 = vmax.f32 %v7804_v6, %v7449_v39  ;;  %v10429_v20 = vld [vmem:[#allocation32_spill] sm:$0xff] }
 0x2e4   :  { %2732 = vperm.xlu1 %5540, %v5653_v5   ;;  %2736 = vperm.xlu0 %5539, %v5654_v12  }
 0x2e5   :  { %v3611_v5 = vsub.f32 %v2075_v4, %v3355_v38  ;;  %v3612_v17 = vsub.f32 %v2076_v21, %v3356_v32  ;;  %v621_v12 = vsub.f32 %v429_v26, %v557_v54  ;;  %v5656_v38 = vld [vmem:[%s9973_s1 + $0x398] sm:$0xff]  ;;  %v3853_v21 = vmax.f32 %v3597_v34, 0.0 }
 0x2e6   :  { %v2485_v61 = vpop.permute.xlu1 %2484  ;;  %v2489_v9 = vpop.permute.xlu0 %2488  ;;  %v3854_v4 = vmax.f32 %v3598_v53, 0.0  ;;  %v7837_v26 = vrot.slane %v67_v52, %v7496_v46  ;;  %v3599_v54 = vsub.f32 %v10432_v55, %v3343_v47  ;;  %v3346_v53 = vmax.f32 %v7697_v27, %v7353_v49  ;;  %v10434_v27 = vld [vmem:[#allocation34_spill] sm:$0xff] }
 0x2e7   :  { %v3357_v6 = vmax.f32 %v2485_v61, %v7353_v49  ;;  %v3358_v58 = vmax.f32 %v2489_v9, %v7353_v49  ;;  %v3867_v32 = vmax.f32 %v3611_v5, 0.0  ;;  %v3868_v15 = vmax.f32 %v3612_v17, 0.0 }
 0x2e8   :  { %2740 = vperm.xlu1 %5540, %v5655_v19   ;;  %2744 = vperm.xlu0 %5539, %v5656_v38   ;;  %v685_v1 = vmax.f32 %v621_v12, 0.0  ;;  %10431 = vst [vmem:[#allocation5_spill] sm:$0xff] %v7837_v26  ;;  %v3345_v17 = vmax.f32 %v7695_v28, %v7353_v49  ;;  %v5658_v28 = vld [vmem:[%s9973_s1 + $0x3a8] sm:$0xff]  ;;  %v2083_v25 = vmin.f32 %v10434_v27, %v7366_v62  ;;  %v3855_v55 = vmax.f32 %v3599_v54, 0.0 }
 0x2e9   :  { %v3613_v61 = vsub.f32 %v2077_v56, %v3357_v6  ;;  %v3614_v9 = vsub.f32 %v2078_v23, %v3358_v58  ;;  %v5307_v19 = vpack.c.bf16 %v3868_v15, %v3867_v32  ;;  %v3347_v23 = vmax.f32 %v7705_v11, %v7353_v49 }
 0x2ea   :  { %v2493_v34 = vpop.permute.xlu1 %2492  ;;  %v2497_v52 = vpop.permute.xlu0 %2496  ;;  %v4142_v5 = vmul.f32 %v7837_v26, %v685_v1  ;;  %v3348_v56 = vmax.f32 %v7707_v63, %v7353_v49  ;;  %v10435_v6 = vmin.f32 %v10425_v22, %v7366_v62  ;;  %v10436_v38 = vmin.f32 %v10424_v35, %v7366_v62 }
 0x2eb   :  { %v3869_v12 = vmax.f32 %v3613_v61, 0.0  ;;  %v3870_v51 = vmax.f32 %v3614_v9, 0.0  ;;  %v3359_v47 = vmax.f32 %v2493_v34, %v7353_v49  ;;  %v3360_v58 = vmax.f32 %v2497_v52, %v7353_v49  ;;  %5308 = vmatprep.subr.bf16.mxu1 %v5307_v19 }
 0x2ec   :  { %2748 = vperm.xlu1 %5540, %v5657_v37   ;;  %2752 = vperm.xlu0 %5539, %v5658_v28   ;;  %v5313_v1 = vpack.c.bf16 %v3854_v4, %v3853_v21  ;;  %v3856_v61 = vmax.f32 %v3600_v31, 0.0  ;;  %v10437_v11 = vmin.f32 %v10411_v43, %v7366_v62  ;;  %v10438_v63 = vmin.f32 %v10410_v57, %v7366_v62  ;;  %v5659_v31 = vld [vmem:[%s9973_s1 + $0x3b0] sm:$0xff]  ;;  %v5660_v43 = vld [vmem:[%s9973_s1 + $0x3b8] sm:$0xff] }
 0x2ed   :  { %4356 = vmatprep.mubr.f32.mxu1 %v4142_v5  ;;  %v3615_v41 = vsub.f32 %v10435_v6, %v3359_v47  ;;  %v3616_v32 = vsub.f32 %v10436_v38, %v3360_v58  ;;  %5310 = vmatpush3.bf16.msra.mxu1 %v5309_v30  ;;  %v5311_v15 = vpack.c.bf16 %v3870_v51, %v3869_v12  ;;  %v10439_v57 = vld [vmem:[#allocation35_spill] sm:$0xff] }
 0x2ee   :  { %v3601_v9 = vsub.f32 %v10437_v11, %v3345_v17  ;;  %v3602_v19 = vsub.f32 %v10438_v63, %v3346_v53  ;;  %v2501_v34 = vpop.permute.xlu1 %2500  ;;  %v2505_v22 = vpop.permute.xlu0 %2504  ;;  %v2086_v21 = vmin.f32 %v10439_v57, %v7366_v62  ;;  %v10440_v4 = vmin.f32 %v10413_v7, %v7366_v62 }
 0x2ef   :  { %v3871_v52 = vmax.f32 %v3615_v41, 0.0  ;;  %v3872_v5 = vmax.f32 %v3616_v32, 0.0  ;;  %v3361_v35 = vmax.f32 %v2501_v34, %v7353_v49  ;;  %v3362_v30 = vmax.f32 %v2505_v22, %v7353_v49  ;;  %5312 = vmatprep.subr.bf16.mxu1 %v5311_v15  ;;  %v5662_v15 = vld [vmem:[%s9973_s1 + $0x3c8] sm:$0xff] }
 0x2f0   :  { %2756 = vperm.xlu1 %5540, %v5659_v31   ;;  %2760 = vperm.xlu0 %5539, %v5660_v43   ;;  %v3603_v54 = vsub.f32 %v10440_v4, %v3347_v23  ;;  %v10441_v17 = vmin.f32 %v10412_v60, %v7366_v62  ;;  %v3349_v12 = vmax.f32 %v7715_v3, %v7353_v49  ;;  %v10444_v60 = vld [vmem:[#allocation36_spill] sm:$0xff]  ;;  %v3857_v23 = vmax.f32 %v3601_v9, 0.0 }
 0x2f1   :  { %v3350_v51 = vmax.f32 %v7717_v48, %v7353_v49  ;;  %v10442_v47 = vmin.f32 %v10429_v20, %v7366_v62  ;;  %v10443_v37 = vmin.f32 %v10428_v24, %v7366_v62  ;;  %5314 = vmatpush3.bf16.msra.mxu1 %v5313_v1  ;;  %v5315_v28 = vpack.c.bf16 %v3872_v5, %v3871_v52  ;;  %v5661_v24 = vld [vmem:[%s9973_s1 + $0x3c0] sm:$0xff] }
 0x2f2   :  { %v3604_v53 = vsub.f32 %v10441_v17, %v3348_v56  ;;  %v2085_v27 = vmin.f32 %v10444_v60, %v7366_v62  ;;  %v3858_v56 = vmax.f32 %v3602_v19, 0.0  ;;  %v2509_v3 = vpop.permute.xlu1 %2508  ;;  %v2513_v6 = vpop.permute.xlu0 %2512  ;;  %v5317_v41 = vpack.c.bf16 %v3856_v61, %v3855_v55  ;;  %v10445_v1 = vld [vmem:[#allocation37_spill] sm:$0xff] }
 0x2f3   :  { %v3617_v58 = vsub.f32 %v10442_v47, %v3361_v35  ;;  %v3618_v7 = vsub.f32 %v10443_v37, %v3362_v30  ;;  %v3363_v32 = vmax.f32 %v2509_v3, %v7353_v49  ;;  %v3364_v20 = vmax.f32 %v2513_v6, %v7353_v49  ;;  %5316 = vmatprep.subr.bf16.mxu1 %v5315_v28  ;;  %v7926_v30 = vld [vmem:[%s9972_s0 + $0x10] sm:$0xff] }
 0x2f4   :  { %2764 = vperm.xlu1 %5540, %v5661_v24   ;;  %2768 = vperm.xlu0 %5539, %v5662_v15   ;;  %v2088_v11 = vmin.f32 %v10445_v1, %v7366_v62  ;;  %v3859_v55 = vmax.f32 %v3603_v54, 0.0  ;;  %v3860_v61 = vmax.f32 %v3604_v53, 0.0  ;;  %v10446_v9 = vmin.f32 %v10415_v0, %v7366_v62  ;;  %v10449_v0 = vld [vmem:[#allocation38_spill] sm:$0xff]  ;;  %v10455_v15 = vld [vmem:[#allocation40_spill] sm:$0xff] }
 0x2f5   :  { %v3873_v38 = vmax.f32 %v3617_v58, 0.0  ;;  %v3874_v48 = vmax.f32 %v3618_v7, 0.0  ;;  %v10447_v19 = vmin.f32 %v10414_v8, %v7366_v62  ;;  %v3619_v22 = vsub.f32 %v2083_v25, %v3363_v32  ;;  %5318 = vmatpush3.bf16.msra.mxu1 %v5317_v41 }
 0x2f6   :  { %v3605_v63 = vsub.f32 %v10446_v9, %v3349_v12  ;;  %v10448_v52 = vmin.f32 %v10430_v44, %v7366_v62  ;;  %v2087_v31 = vmin.f32 %v10449_v0, %v7366_v62  ;;  %v3351_v43 = vmax.f32 %v7729_v42, %v7353_v49  ;;  %v2517_v25 = vpop.permute.xlu1 %2516  ;;  %v2521_v57 = vpop.permute.xlu0 %2520  ;;  %v5663_v12 = vld [vmem:[%s9973_s1 + $0x3d0] sm:$0xff]  ;;  %v5664_v42 = vld [vmem:[%s9973_s1 + $0x3d8] sm:$0xff] }
 0x2f7   :  { %v3606_v34 = vsub.f32 %v10447_v19, %v3350_v51  ;;  %v5319_v35 = vpack.c.bf16 %v3874_v48, %v3873_v38  ;;  %v3352_v8 = vmax.f32 %v7731_v50, %v7353_v49  ;;  %v5321_v44 = vpack.c.bf16 %v3858_v56, %v3857_v23 }
 0x2f8   :  { %v3620_v5 = vsub.f32 %v10448_v52, %v3364_v20  ;;  %v3875_v4 = vmax.f32 %v3619_v22, 0.0  ;;  %v3365_v17 = vmax.f32 %v2517_v25, %v7353_v49  ;;  %v3366_v53 = vmax.f32 %v2521_v57, %v7353_v49  ;;  %2772 = vperm.xlu1 %5540, %v5663_v12   ;;  %2776 = vperm.xlu0 %5539, %v5664_v42  }
 0x2f9   :  { %v3861_v50 = vmax.f32 %v3605_v63, 0.0  ;;  %5320 = vmatprep.subr.bf16.mxu1 %v5319_v35  ;;  %v5325_v51 = vpack.c.bf16 %v3860_v61, %v3859_v55  ;;  %v7944_v47 = vrot.slane %v7926_v30, %v7452_v40  ;;  %v7948_v58 = vrot.slane %v7926_v30, %v7455_v33 }
 0x2fa   :  { %v3876_v54 = vmax.f32 %v3620_v5, 0.0  ;;  %v3862_v37 = vmax.f32 %v3606_v34, 0.0  ;;  %v3621_v7 = vsub.f32 %v2085_v27, %v3365_v17  ;;  %v3622_v28 = vsub.f32 %v2086_v21, %v3366_v53  ;;  %5322 = vmatpush3.bf16.msra.mxu1 %v5321_v44  ;;  %v2525_v48 = vpop.permute.xlu1 %2524  ;;  %v2529_v32 = vpop.permute.xlu0 %2528 }
 0x2fb   :  { %10450 = vst [vmem:[#allocation9_spill] sm:$0xff] %v7944_v47  ;;  %10451 = vst [vmem:[#allocation10_spill] sm:$0xff] %v7948_v58  ;;  %v10452_v23 = vmin.f32 %v10417_v10, %v7366_v62  ;;  %v10453_v3 = vmin.f32 %v10416_v29, %v7366_v62  ;;  %v3353_v41 = vmax.f32 %v7765_v59, %v7353_v49  ;;  %v5665_v10 = vld [vmem:[%s9973_s1 + $0x3e0] sm:$0xff]  ;;  %v5666_v29 = vld [vmem:[%s9973_s1 + $0x3e8] sm:$0xff] }
 0x2fc   :  { %v5323_v60 = vpack.c.bf16 %v3876_v54, %v3875_v4  ;;  %v3354_v38 = vmax.f32 %v7767_v13, %v7353_v49  ;;  %v3877_v27 = vmax.f32 %v3621_v7, 0.0  ;;  %v3878_v21 = vmax.f32 %v3622_v28, 0.0  ;;  %2780 = vperm.xlu1 %5540, %v5665_v10   ;;  %2784 = vperm.xlu0 %5539, %v5666_v29   ;;  %v10454_v59 = vld [vmem:[#allocation39_spill] sm:$0xff]  ;;  %v5674_v10 = vld [vmem:[%s9973_s1 + $0x428] sm:$0xff] }
 0x2fd   :  { %v3607_v56 = vsub.f32 %v10452_v23, %v3351_v43  ;;  %v3608_v6 = vsub.f32 %v10453_v3, %v3352_v8  ;;  %v3367_v20 = vmax.f32 %v2525_v48, %v7353_v49  ;;  %v3368_v24 = vmax.f32 %v2529_v32, %v7353_v49  ;;  %v5667_v4 = vld [vmem:[%s9973_s1 + $0x3f0] sm:$0xff]  ;;  %v5670_v23 = vld [vmem:[%s9973_s1 + $0x408] sm:$0xff]  ;;  %v5672_v32 = vld [vmem:[%s9973_s1 + $0x418] sm:$0xff] }
 0x2fe   :  { %v2090_v13 = vmin.f32 %v10454_v59, %v7366_v62  ;;  %v2089_v1 = vmin.f32 %v10455_v15, %v7366_v62  ;;  %5324 = vmatprep.subr.bf16.mxu1 %v5323_v60  ;;  %v428_v55 = vmin.f32 %v7944_v47, %v7467_v14  ;;  %v556_v61 = vmax.f32 %v7948_v58, %v7449_v39  ;;  %v2533_v8 = vpop.permute.xlu1 %2532  ;;  %v2537_v25 = vpop.permute.xlu0 %2536  ;;  %v5669_v60 = vld [vmem:[%s9973_s1 + $0x400] sm:$0xff]  ;;  %v5671_v48 = vld [vmem:[%s9973_s1 + $0x410] sm:$0xff] }
 0x2ff   :  { %v3623_v9 = vsub.f32 %v2087_v31, %v3367_v20  ;;  %v3624_v63 = vsub.f32 %v2088_v11, %v3368_v24  ;;  %5326 = vmatpush3.bf16.msra.mxu1 %v5325_v51  ;;  %v5327_v19 = vpack.c.bf16 %v3878_v21, %v3877_v27  ;;  %v5329_v34 = vpack.c.bf16 %v3862_v37, %v3861_v50  ;;  %v5673_v24 = vld [vmem:[%s9973_s1 + $0x420] sm:$0xff] }
 0x300   :  { %v3863_v22 = vmax.f32 %v3607_v56, 0.0  ;;  %v3864_v52 = vmax.f32 %v3608_v6, 0.0  ;;  %v10456_v5 = vmin.f32 %v10419_v2, %v7366_v62  ;;  %v10457_v0 = vmin.f32 %v10418_v18, %v7366_v62  ;;  %2788 = vperm.xlu1 %5540, %v5667_v4   ;;  %v5668_v2 = vld [vmem:[%s9973_s1 + $0x3f8] sm:$0xff] }
 0x301   :  { %v3879_v57 = vmax.f32 %v3623_v9, 0.0  ;;  %v3880_v44 = vmax.f32 %v3624_v63, 0.0  ;;  %v3369_v31 = vmax.f32 %v2533_v8, %v7353_v49  ;;  %v3370_v11 = vmax.f32 %v2537_v25, %v7353_v49  ;;  %2792 = vperm.xlu0 %5539, %v5668_v2   ;;  %5328 = vmatprep.subr.bf16.mxu1 %v5327_v19  ;;  %v10461_v63 = vld [vmem:[#allocation43_spill] sm:$0xff]  ;;  %v10469_v2 = vld [vmem:[#allocation50_spill] sm:$0xff]  ;;  %v10488_v19 = vld [vmem:[#allocation65_spill] sm:$0xff] }
 0x302   :  { %v3609_v35 = vsub.f32 %v10456_v5, %v3353_v41  ;;  %v3610_v43 = vsub.f32 %v10457_v0, %v3354_v38  ;;  %v620_v18 = vsub.f32 %v428_v55, %v556_v61  ;;  %v7990_v12 = vpop.permute.xlu1 %2540  ;;  %v7992_v42 = vpop.permute.xlu0 %2544  ;;  %v5333_v50 = vpack.c.bf16 %v3864_v52, %v3863_v22  ;;  %v5676_v55 = vld [vmem:[%s9973_s1 + $0x438] sm:$0xff]  ;;  %v10460_v61 = vld [vmem:[#allocation42_spill] sm:$0xff]  ;;  %v10463_v52 = vld [vmem:[#allocation233_spill] sm:$0xff] }
 0x303   :  { %v3625_v54 = vsub.f32 %v2089_v1, %v3369_v31  ;;  %v3626_v17 = vsub.f32 %v2090_v13, %v3370_v11  ;;  %5330 = vmatpush3.bf16.msra.mxu1 %v5329_v34  ;;  %v5331_v53 = vpack.c.bf16 %v3880_v44, %v3879_v57  ;;  %v8002_v3 = vrot.slane %v7926_v30, %v7496_v46  ;;  %v10459_v13 = vld [vmem:[#allocation41_spill] sm:$0xff]  ;;  %v5675_v1 = vld [vmem:[%s9973_s1 + $0x430] sm:$0xff]  ;;  %v10462_v34 = vld [vmem:[#allocation44_spill] sm:$0xff] }
 0x304   :  { %v3865_v51 = vmax.f32 %v3609_v35, 0.0  ;;  %v3866_v37 = vmax.f32 %v3610_v43, 0.0  ;;  %2796 = vperm.xlu1 %5540, %v5669_v60   ;;  %v684_v56 = vmax.f32 %v620_v18, 0.0  ;;  %v2092_v15 = vmin.f32 %v10459_v13, %v7366_v62  ;;  %v10464_v35 = vld [vmem:[#allocation45_spill] sm:$0xff]  ;;  %v10465_v43 = vld [vmem:[#allocation46_spill] sm:$0xff]  ;;  %v10466_v25 = vld [vmem:[#allocation47_spill] sm:$0xff] }
 0x305   :  { %v3881_v7 = vmax.f32 %v3625_v54, 0.0  ;;  %v3882_v28 = vmax.f32 %v3626_v17, 0.0  ;;  %2800 = vperm.xlu0 %5539, %v5670_v23   ;;  %5332 = vmatprep.subr.bf16.mxu1 %v5331_v53  ;;  %10458 = vst [vmem:[#allocation11_spill] sm:$0xff] %v8002_v3  ;;  %v2091_v9 = vmin.f32 %v10460_v61, %v7366_v62  ;;  %v338_v5 = vadd.s32 8, %v10463_v52  ;;  %v10467_v44 = vld [vmem:[#allocation48_spill] sm:$0xff]  ;;  %v10468_v11 = vld [vmem:[#allocation49_spill] sm:$0xff] }
 0x306   :  { %v8004_v41 = vpop.permute.xlu1 %2548  ;;  %v8006_v38 = vpop.permute.xlu0 %2552  ;;  %v5337_v27 = vpack.c.bf16 %v3866_v37, %v3865_v51  ;;  %v4141_v30 = vmul.f32 %v8002_v3, %v684_v56  ;;  %v10470_v54 = vld [vmem:[#allocation51_spill] sm:$0xff]  ;;  %v10471_v37 = vld [vmem:[#allocation52_spill] sm:$0xff]  ;;  %v3371_v23 = vmax.f32 %v7990_v12, %v7353_v49  ;;  %v5677_v56 = vld [vmem:[%s9973_s1 + $0x440] sm:$0xff]  ;;  %v339_v12 = vadd.s32 16, %v10463_v52 }
 0x307   :  { %5334 = vmatpush3.bf16.msra.mxu1 %v5333_v50  ;;  %v5335_v6 = vpack.c.bf16 %v3882_v28, %v3881_v7  ;;  %v342_v51 = vcvt.s32.f32 %v338_v5  ;;  %v10478_v61 = vld [vmem:[#allocation59_spill] sm:$0xff]  ;;  %v10482_v18 = vld [vmem:[#allocation62_spill] sm:$0xff]  ;;  %v3374_v58 = vmax.f32 %v8006_v38, %v7353_v49  ;;  %v5681_v22 = vld [vmem:[%s9973_s1 + $0x460] sm:$0xff] }
 0x308   :  { %2804 = vperm.xlu1 %5540, %v5671_v48   ;;  %v10473_v48 = vld [vmem:[#allocation54_spill] sm:$0xff]  ;;  %v343_v4 = vcvt.s32.f32 %v339_v12  ;;  %v10483_v31 = vld [vmem:[#allocation63_spill] sm:$0xff]  ;;  %v3627_v5 = vsub.f32 %v2091_v9, %v3371_v23  ;;  %v340_v9 = vadd.s32 24, %v10463_v52  ;;  %v10487_v23 = vld [vmem:[#allocation64_spill] sm:$0xff] }
 0x309   :  { %2808 = vperm.xlu0 %5539, %v5672_v32   ;;  %5336 = vmatprep.subr.bf16.mxu1 %v5335_v6  ;;  %v5678_v6 = vld [vmem:[%s9973_s1 + $0x448] sm:$0xff]  ;;  %v5679_v60 = vld [vmem:[%s9973_s1 + $0x450] sm:$0xff] }
 0x30a   :  { %v8015_v21 = vpop.permute.xlu1 %2556  ;;  %v8017_v20 = vpop.permute.xlu0 %2560  ;;  %v10484_v13 = vld [vmem:[#allocation234_spill] sm:$0xff]  ;;  %v8114_v0 = vmul.f32 2.0, %v343_v4 }
 0x30b   :  { %5338 = vmatpush3.bf16.msra.mxu1 %v5337_v27 }
 0x30c   :  { %2812 = vperm.xlu1 %5540, %v5673_v24   ;;  %v8078_v24 = vmul.f32 2.0, %v342_v51  ;;  %v10480_v51 = vld [vmem:[#allocation61_spill] sm:$0xff]  ;;  %10486 = vst [vmem:[#allocation14_spill] sm:$0xff] %v8114_v0 }
 0x30d   :  { %2816 = vperm.xlu0 %5539, %v5674_v10   ;;  %v10476_v10 = vld [vmem:[#allocation57_spill] sm:$0xff] }
 0x30e   :  { %4357 = vmatmul.mubr.f32.vlgmr.msra.gmra.mrb[0].mxu1 %v4141_v30  ;;  %v8025_v29 = vpop.permute.xlu1 %2564  ;;  %v8027_v59 = vpop.permute.xlu0 %2568  ;;  %10475 = vst [vmem:[#allocation12_spill] sm:$0xff] %v8078_v24  ;;  %v8098_v7 = vadd.f32 2.0, %v8078_v24  ;;  %v5680_v30 = vld [vmem:[%s9973_s1 + $0x458] sm:$0xff]  ;;  %v570_v52 = vmax.f32 %v7618_v16, %v8078_v24 }
 0x310   :  { %2820 = vperm.xlu1 %5540, %v5675_v1   ;;  %v10477_v1 = vld [vmem:[#allocation58_spill] sm:$0xff]  ;;  %10481 = vst [vmem:[#allocation13_spill] sm:$0xff] %v8098_v7  ;;  %v443_v12 = vmin.f32 %v10484_v13, %v8098_v7 }
 0x311   :  { %2824 = vperm.xlu0 %5539, %v5676_v55   ;;  %v10485_v55 = vld [vmem:[#allocation235_spill] sm:$0xff] }
 0x312   :  { %v8058_v53 = vpop.permute.xlu1 %2572  ;;  %v8060_v50 = vpop.permute.xlu0 %2576  ;;  %v571_v57 = vmax.f32 %v10485_v55, %v8078_v24 }
 0x314   :  { %2828 = vperm.xlu1 %5540, %v5677_v56   ;;  %v3372_v56 = vmax.f32 %v7992_v42, %v7353_v49  ;;  %v635_v4 = vsub.f32 %v443_v12, %v571_v57  ;;  %v8132_v42 = vadd.f32 2.0, %v8114_v0  ;;  %v5682_v57 = vld [vmem:[%s9973_s1 + $0x468] sm:$0xff]  ;;  %v344_v12 = vcvt.s32.f32 %v340_v9 }
 0x315   :  { %2832 = vperm.xlu0 %5539, %v5678_v6   ;;  %v10479_v6 = vld [vmem:[#allocation60_spill] sm:$0xff] }
 0x316   :  { %v8093_v32 = vpop.permute.xlu1 %2580  ;;  %v8095_v17 = vpop.permute.xlu0 %2584  ;;  %v3628_v8 = vsub.f32 %v2092_v15, %v3372_v56  ;;  %10489 = vst [vmem:[#allocation15_spill] sm:$0xff] %v8132_v42  ;;  %v10490_v15 = vld [vmem:[#allocation66_spill] sm:$0xff]  ;;  %v3883_v56 = vmax.f32 %v3627_v5, 0.0  ;;  %v699_v47 = vmax.f32 %v635_v4, 0.0  ;;  %v587_v5 = vmax.f32 %v10485_v55, %v8114_v0 }
 0x317   :  { %v458_v9 = vmin.f32 %v7614_v45, %v8132_v42 }
 0x318   :  { %2836 = vperm.xlu1 %5540, %v5679_v60   ;;  %v3373_v60 = vmax.f32 %v8004_v41, %v7353_v49  ;;  %v459_v41 = vmin.f32 %v10484_v13, %v8132_v42  ;;  %v3884_v38 = vmax.f32 %v3628_v8, 0.0  ;;  %v586_v8 = vmax.f32 %v7618_v16, %v8114_v0 }
 0x319   :  { %2840 = vperm.xlu0 %5539, %v5680_v30   ;;  %v442_v30 = vmin.f32 %v7614_v45, %v8098_v7  ;;  %v10491_v7 = vmin.f32 %v10462_v34, %v7366_v62  ;;  %v10494_v34 = vld [vmem:[#allocation67_spill] sm:$0xff]  ;;  %v3376_v42 = vmax.f32 %v8017_v20, %v7353_v49 }
 0x31a   :  { %v8125_v3 = vpop.permute.xlu1 %2588  ;;  %v8127_v26 = vpop.permute.xlu0 %2592  ;;  %v651_v28 = vsub.f32 %v459_v41, %v587_v5  ;;  %v10496_v41 = vld [vmem:[#allocation7_spill] sm:$0xff]  ;;  %v8184_v0 = vpack.c.bf16 %v3884_v38, %v3883_v56  ;;  %v69_v38 = vld [vmem:[%s9972_s0 + $0x28] sm:$0xff] }
 0x31b   :  { %v634_v24 = vsub.f32 %v442_v30, %v570_v52  ;;  %v8151_v27 = vsub.f32 %v10491_v7, %v3373_v60  ;;  %v4156_v52 = vmul.f32 %v7507_v36, %v699_v47  ;;  %v5683_v47 = vld [vmem:[%s9973_s1 + $0x470] sm:$0xff] }
 0x31c   :  { %2844 = vperm.xlu1 %5540, %v5681_v22   ;;  %v3375_v22 = vmax.f32 %v8015_v21, %v7353_v49  ;;  %v10495_v21 = vmin.f32 %v10461_v63, %v7366_v62  ;;  %v715_v7 = vmax.f32 %v651_v28, 0.0  ;;  %v650_v63 = vsub.f32 %v458_v9, %v586_v8 }
 0x31d   :  { %2848 = vperm.xlu0 %5539, %v5682_v57   ;;  %v698_v57 = vmax.f32 %v634_v24, 0.0  ;;  %v5684_v24 = vld [vmem:[%s9973_s1 + $0x478] sm:$0xff]  ;;  %4276 = vmatprep.mubr.f32.mxu0 %v4156_v52 }
 0x31e   :  { %v8157_v4 = vpop.permute.xlu1 %2596  ;;  %v8159_v30 = vpop.permute.xlu0 %2600  ;;  %v8169_v60 = vsub.f32 %v10495_v21, %v3374_v58  ;;  %v8180_v58 = vmul.f32 2.0, %v344_v12  ;;  %v10498_v21 = vld [vmem:[#allocation68_spill] sm:$0xff]  ;;  %v4172_v28 = vmul.f32 %v7507_v36, %v715_v7  ;;  %v714_v9 = vmax.f32 %v650_v63, 0.0 }
 0x31f   :  { %10492 = vst [vmem:[#allocation16_spill] sm:$0xff] %v8157_v4  ;;  %10493 = vst [vmem:[#allocation17_spill] sm:$0xff] %v8159_v30  ;;  %v4155_v5 = vmul.f32 %v10496_v41, %v698_v57  ;;  %v8261_v30 = vrot.slane %v69_v38, %v7496_v46 }
 0x320   :  { %2852 = vperm.xlu1 %5540, %v5683_v47   ;;  %10497 = vst [vmem:[#allocation18_spill] sm:$0xff] %v8180_v58  ;;  %v10499_v47 = vmin.f32 %v10465_v43, %v7366_v62  ;;  %v8194_v12 = vadd.f32 2.0, %v8180_v58  ;;  %v603_v56 = vmax.f32 %v10485_v55, %v8180_v58  ;;  %v3886_v43 = vmax.f32 %v8169_v60, 0.0  ;;  %v5686_v55 = vld [vmem:[%s9973_s1 + $0x488] sm:$0xff] }
 0x321   :  { %2856 = vperm.xlu0 %5539, %v5684_v24   ;;  %4277 = vmatmul.mubr.f32.gmra.mrb[2].mxu0 %v4155_v5  ;;  %v5685_v5 = vld [vmem:[%s9973_s1 + $0x480] sm:$0xff]  ;;  %v4171_v60 = vmul.f32 %v10496_v41, %v714_v9  ;;  %v602_v63 = vmax.f32 %v7618_v16, %v8180_v58  ;;  %10507 = vst [vmem:[#allocation21_spill] sm:$0xff] %v8261_v30 }
 0x322   :  { %v8190_v4 = vsub.f32 %v10499_v47, %v3375_v22  ;;  %v2605_v24 = vpop.permute.xlu1 %2604  ;;  %v2609_v52 = vpop.permute.xlu0 %2608  ;;  %10500 = vst [vmem:[#allocation19_spill] sm:$0xff] %v8194_v12  ;;  %v10501_v22 = vmin.f32 %v10464_v35, %v7366_v62  ;;  %4281 = vmatprep.mubr.f32.mxu0 %v4172_v28  ;;  %v475_v35 = vmin.f32 %v10484_v13, %v8194_v12 }
 0x323   :  { %v3387_v8 = vmax.f32 %v2605_v24, %v7353_v49  ;;  %v3388_v7 = vmax.f32 %v2609_v52, %v7353_v49  ;;  %v3377_v47 = vmax.f32 %v8025_v29, %v7353_v49  ;;  %v10502_v24 = vmin.f32 %v10477_v1, %v7366_v62 }
 0x324   :  { %v8205_v57 = vsub.f32 %v10501_v22, %v3376_v42  ;;  %2860 = vperm.xlu1 %5540, %v5685_v5   ;;  %v474_v42 = vmin.f32 %v7614_v45, %v8194_v12  ;;  %v10503_v28 = vmin.f32 %v10476_v10, %v7366_v62  ;;  %v8231_v22 = vrot.slane %v69_v38, %v7452_v40 }
 0x325   :  { %2864 = vperm.xlu0 %5539, %v5686_v55   ;;  %v3643_v52 = vsub.f32 %v10502_v24, %v3387_v8  ;;  %v3378_v45 = vmax.f32 %v8027_v59, %v7353_v49  ;;  %4282 = vmatmul.mubr.f32.gmra.mrb[4].mxu0 %v4171_v60  ;;  %v667_v16 = vsub.f32 %v475_v35, %v603_v56  ;;  %v5688_v59 = vld [vmem:[%s9973_s1 + $0x498] sm:$0xff] }
 0x326   :  { %v3644_v9 = vsub.f32 %v10503_v28, %v3388_v7  ;;  %v2613_v13 = vpop.permute.xlu1 %2612  ;;  %v2617_v5 = vpop.permute.xlu0 %2616  ;;  %v666_v55 = vsub.f32 %v474_v42, %v602_v63  ;;  %v8236_v29 = vrot.slane %v69_v38, %v7455_v33  ;;  %v5687_v7 = vld [vmem:[%s9973_s1 + $0x490] sm:$0xff]  ;;  %v431_v35 = vmin.f32 %v8231_v22, %v7467_v14 }
 0x327   :  { %v3899_v1 = vmax.f32 %v3643_v52, 0.0  ;;  %v3389_v24 = vmax.f32 %v2613_v13, %v7353_v49  ;;  %v3390_v10 = vmax.f32 %v2617_v5, %v7353_v49  ;;  %v731_v56 = vmax.f32 %v667_v16, 0.0 }
 0x328   :  { %10504 = vst [vmem:[#allocation20_spill] sm:$0xff] %v8236_v29  ;;  %v3900_v8 = vmax.f32 %v3644_v9, 0.0  ;;  %2868 = vperm.xlu1 %5540, %v5687_v7   ;;  %v730_v60 = vmax.f32 %v666_v55, 0.0  ;;  %v559_v42 = vmax.f32 %v8236_v29, %v7449_v39  ;;  %v3379_v63 = vmax.f32 %v8058_v53, %v7353_v49 }
 0x329   :  { %2872 = vperm.xlu0 %5539, %v5688_v59   ;;  %v10505_v52 = vmin.f32 %v10479_v6, %v7366_v62  ;;  %v10506_v9 = vmin.f32 %v10478_v61, %v7366_v62  ;;  %v4188_v7 = vmul.f32 %v7507_v36, %v731_v56  ;;  %v5689_v61 = vld [vmem:[%s9973_s1 + $0x4a0] sm:$0xff]  ;;  %v5690_v36 = vld [vmem:[%s9973_s1 + $0x4a8] sm:$0xff]  ;;  %v3888_v56 = vmax.f32 %v8205_v57, 0.0 }
 0x32a   :  { %v5339_v5 = vpack.c.bf16 %v3900_v8, %v3899_v1  ;;  %v2621_v16 = vpop.permute.xlu1 %2620  ;;  %v2625_v55 = vpop.permute.xlu0 %2624  ;;  %v4187_v59 = vmul.f32 %v10496_v41, %v730_v60  ;;  %v623_v20 = vsub.f32 %v431_v35, %v559_v42  ;;  %v10508_v41 = vmax.f32 %v8151_v27, 0.0 }
 0x32b   :  { %v3645_v28 = vsub.f32 %v10505_v52, %v3389_v24  ;;  %v3646_v13 = vsub.f32 %v10506_v9, %v3390_v10  ;;  %v3391_v6 = vmax.f32 %v2621_v16, %v7353_v49  ;;  %v3392_v24 = vmax.f32 %v2625_v55, %v7353_v49  ;;  %4286 = vmatprep.mubr.f32.mxu0 %v4188_v7 }
 0x32c   :  { %2876 = vperm.xlu1 %5540, %v5689_v61   ;;  %v5345_v38 = vpack.c.bf16 %v3886_v43, %v10508_v41  ;;  %v3887_v1 = vmax.f32 %v8190_v4, 0.0  ;;  %v3380_v8 = vmax.f32 %v8060_v50, %v7353_v49  ;;  %5340 = vmatprep.subr.bf16.mxu0 %v5339_v5  ;;  %v687_v10 = vmax.f32 %v623_v20, 0.0 }
 0x32d   :  { %v3901_v53 = vmax.f32 %v3645_v28, 0.0  ;;  %v3902_v29 = vmax.f32 %v3646_v13, 0.0  ;;  %2880 = vperm.xlu0 %5539, %v5690_v36   ;;  %v10509_v60 = vmin.f32 %v10482_v18, %v7366_v62  ;;  %v10510_v42 = vmin.f32 %v10480_v51, %v7366_v62  ;;  %5342 = vmatpush3.bf16.msra.mxu0 %v8184_v0 }
 0x32e   :  { %v10511_v4 = vmin.f32 %v10467_v44, %v7366_v62  ;;  %v10512_v20 = vmin.f32 %v10466_v25, %v7366_v62  ;;  %v10513_v57 = vmin.f32 %v10469_v2, %v7366_v62  ;;  %v2629_v28 = vpop.permute.xlu1 %2628  ;;  %v2633_v9 = vpop.permute.xlu0 %2632  ;;  %4287 = vmatmul.mubr.f32.gmra.mrb[6].mxu0 %v4187_v59  ;;  %v4144_v51 = vmul.f32 %v8261_v30, %v687_v10  ;;  %v5691_v25 = vld [vmem:[%s9973_s1 + $0x4b0] sm:$0xff]  ;;  %v5692_v2 = vld [vmem:[%s9973_s1 + $0x4b8] sm:$0xff] }
 0x32f   :  { %v3647_v35 = vsub.f32 %v10509_v60, %v3391_v6  ;;  %v3648_v52 = vsub.f32 %v10510_v42, %v3392_v24  ;;  %v5343_v27 = vpack.c.bf16 %v3902_v29, %v3901_v53  ;;  %v3393_v13 = vmax.f32 %v2629_v28, %v7353_v49 }
 0x330   :  { %v3633_v50 = vsub.f32 %v10511_v4, %v3377_v47  ;;  %v3634_v43 = vsub.f32 %v10512_v20, %v3378_v45  ;;  %v8293_v18 = vsub.f32 %v10513_v57, %v3379_v63  ;;  %v3394_v44 = vmax.f32 %v2633_v9, %v7353_v49  ;;  %2884 = vperm.xlu1 %5540, %v5691_v25   ;;  %v10514_v47 = vld [vmem:[#allocation69_spill] sm:$0xff]  ;;  %v5696_v25 = vld [vmem:[%s9973_s1 + $0x4d8] sm:$0xff] }
 0x331   :  { %v3903_v0 = vmax.f32 %v3647_v35, 0.0  ;;  %v3904_v29 = vmax.f32 %v3648_v52, 0.0  ;;  %2888 = vperm.xlu0 %5539, %v5692_v2   ;;  %v2120_v45 = vmin.f32 %v10514_v47, %v7366_v62  ;;  %v10515_v63 = vmin.f32 %v10468_v11, %v7366_v62  ;;  %5344 = vmatprep.subr.bf16.mxu0 %v5343_v27  ;;  %v5699_v47 = vld [vmem:[%s9973_s1 + $0x4f0] sm:$0xff] }
 0x332   :  { %v3381_v16 = vmax.f32 %v8093_v32, %v7353_v49  ;;  %4441 = vmatprep.mubr.f32.mxu0 %v4144_v51  ;;  %v3382_v55 = vmax.f32 %v8095_v17, %v7353_v49  ;;  %v10516_v7 = vmin.f32 %v10487_v23, %v7366_v62  ;;  %v10517_v53 = vmin.f32 %v10483_v31, %v7366_v62  ;;  %v2637_v41 = vpop.permute.xlu1 %2636  ;;  %v5693_v31 = vld [vmem:[%s9973_s1 + $0x4c0] sm:$0xff] }
 0x333   :  { %v3636_v5 = vsub.f32 %v10515_v63, %v3380_v8  ;;  %5346 = vmatpush3.bf16.msra.mxu0 %v5345_v38  ;;  %v5347_v24 = vpack.c.bf16 %v3904_v29, %v3903_v0  ;;  %v5349_v11 = vpack.c.bf16 %v3888_v56, %v3887_v1  ;;  %v3889_v61 = vmax.f32 %v3633_v50, 0.0  ;;  %v2641_v8 = vpop.permute.xlu0 %2640  ;;  %v5694_v38 = vld [vmem:[%s9973_s1 + $0x4c8] sm:$0xff]  ;;  %v8331_v1 = vld [vmem:[%s9972_s0 + $0x20] sm:$0xff] }
 0x334   :  { %v3649_v59 = vsub.f32 %v10516_v7, %v3393_v13  ;;  %v3650_v6 = vsub.f32 %v10517_v53, %v3394_v44  ;;  %v3890_v36 = vmax.f32 %v3634_v43, 0.0  ;;  %v3891_v32 = vmax.f32 %v8293_v18, 0.0  ;;  %2892 = vperm.xlu1 %5540, %v5693_v31   ;;  %v5695_v44 = vld [vmem:[%s9973_s1 + $0x4d0] sm:$0xff] }
 0x335   :  { %v3395_v17 = vmax.f32 %v2637_v41, %v7353_v49  ;;  %v3396_v23 = vmax.f32 %v2641_v8, %v7353_v49  ;;  %2896 = vperm.xlu0 %5539, %v5694_v38   ;;  %v3892_v56 = vmax.f32 %v3636_v5, 0.0  ;;  %v10518_v35 = vmin.f32 %v10471_v37, %v7366_v62  ;;  %5348 = vmatprep.subr.bf16.mxu0 %v5347_v24  ;;  %v10531_v41 = vld [vmem:[#allocation17_spill] sm:$0xff] }
 0x336   :  { %v3905_v10 = vmax.f32 %v3649_v59, 0.0  ;;  %v3906_v60 = vmax.f32 %v3650_v6, 0.0  ;;  %v3383_v52 = vmax.f32 %v8125_v3, %v7353_v49  ;;  %v3384_v27 = vmax.f32 %v8127_v26, %v7353_v49  ;;  %v10522_v3 = vld [vmem:[#allocation70_spill] sm:$0xff]  ;;  %v2645_v26 = vpop.permute.xlu1 %2644 }
 0x337   :  { %v3637_v42 = vsub.f32 %v10518_v35, %v3381_v16  ;;  %v10519_v4 = vmin.f32 %v10470_v54, %v7366_v62  ;;  %v10520_v20 = vmin.f32 %v10490_v15, %v7366_v62  ;;  %v10521_v57 = vmin.f32 %v10488_v19, %v7366_v62  ;;  %5350 = vmatpush3.bf16.msra.mxu0 %v5349_v11  ;;  %v2649_v51 = vpop.permute.xlu0 %2648  ;;  %v5698_v35 = vld [vmem:[%s9973_s1 + $0x4e8] sm:$0xff] }
 0x338   :  { %v5351_v18 = vpack.c.bf16 %v3906_v60, %v3905_v10  ;;  %v2119_v28 = vmin.f32 %v10522_v3, %v7366_v62  ;;  %v5353_v9 = vpack.c.bf16 %v3890_v36, %v3889_v61  ;;  %v8353_v54 = vrot.slane %v8331_v1, %v7452_v40  ;;  %2900 = vperm.xlu1 %5540, %v5695_v44  }
 0x339   :  { %v3638_v50 = vsub.f32 %v10519_v4, %v3382_v55  ;;  %v3651_v43 = vsub.f32 %v10520_v20, %v3395_v17  ;;  %v3652_v37 = vsub.f32 %v10521_v57, %v3396_v23  ;;  %v8357_v15 = vrot.slane %v8331_v1, %v7455_v33  ;;  %2904 = vperm.xlu0 %5539, %v5696_v25   ;;  %v10526_v55 = vld [vmem:[#allocation53_spill] sm:$0xff] }
 0x33a   :  { %10523 = vst [vmem:[#allocation22_spill] sm:$0xff] %v8353_v54  ;;  %v3397_v19 = vmax.f32 %v2645_v26, %v7353_v49  ;;  %v3398_v13 = vmax.f32 %v2649_v51, %v7353_v49  ;;  %v5357_v2 = vpack.c.bf16 %v3892_v56, %v3891_v32  ;;  %v3893_v63 = vmax.f32 %v3637_v42, 0.0  ;;  %5352 = vmatprep.subr.bf16.mxu0 %v5351_v18  ;;  %v10530_v32 = vld [vmem:[#allocation16_spill] sm:$0xff]  ;;  %v5697_v56 = vld [vmem:[%s9973_s1 + $0x4e0] sm:$0xff]  ;;  %v10535_v51 = vld [vmem:[#allocation55_spill] sm:$0xff] }
 0x33b   :  { %10524 = vst [vmem:[#allocation23_spill] sm:$0xff] %v8357_v15  ;;  %v3907_v0 = vmax.f32 %v3651_v43, 0.0  ;;  %v3908_v29 = vmax.f32 %v3652_v37, 0.0  ;;  %v10525_v5 = vmin.f32 %v10473_v48, %v7366_v62  ;;  %v10527_v7 = vmin.f32 %v10526_v55, %v7366_v62  ;;  %5354 = vmatpush3.bf16.msra.mxu0 %v5353_v9  ;;  %v2653_v10 = vpop.permute.xlu1 %2652  ;;  %v2657_v60 = vpop.permute.xlu0 %2656  ;;  %v10532_v42 = vld [vmem:[#allocation56_spill] sm:$0xff] }
 0x33c   :  { %v3894_v53 = vmax.f32 %v3638_v50, 0.0  ;;  %v10528_v6 = vmin.f32 %v10498_v21, %v7366_v62  ;;  %v10529_v11 = vmin.f32 %v10494_v34, %v7366_v62  ;;  %v3385_v48 = vmax.f32 %v10530_v32, %v7353_v49  ;;  %2908 = vperm.xlu1 %5540, %v5697_v56   ;;  %v10534_v43 = vld [vmem:[#allocation72_spill] sm:$0xff] }
 0x33d   :  { %v3639_v16 = vsub.f32 %v10525_v5, %v3383_v52  ;;  %v3640_v59 = vsub.f32 %v10527_v7, %v3384_v27  ;;  %v5355_v36 = vpack.c.bf16 %v3908_v29, %v3907_v0  ;;  %v3386_v8 = vmax.f32 %v10531_v41, %v7353_v49  ;;  %2912 = vperm.xlu0 %5539, %v5698_v35   ;;  %v10533_v27 = vld [vmem:[#allocation71_spill] sm:$0xff]  ;;  %v10538_v55 = vld [vmem:[#allocation8_spill] sm:$0xff] }
 0x33e   :  { %v3653_v24 = vsub.f32 %v10528_v6, %v3397_v19  ;;  %v3654_v61 = vsub.f32 %v10529_v11, %v3398_v13  ;;  %v430_v17 = vmin.f32 %v8353_v54, %v7467_v14  ;;  %v558_v21 = vmax.f32 %v8357_v15, %v7449_v39 }
 0x33f   :  { %v3399_v34 = vmax.f32 %v2653_v10, %v7353_v49  ;;  %v3400_v38 = vmax.f32 %v2657_v60, %v7353_v49  ;;  %v2105_v52 = vmin.f32 %v10532_v42, %v7366_v62  ;;  %v2122_v4 = vmin.f32 %v10533_v27, %v7366_v62  ;;  %5356 = vmatprep.subr.bf16.mxu0 %v5355_v36  ;;  %v2661_v19 = vpop.permute.xlu1 %2660  ;;  %v2665_v13 = vpop.permute.xlu0 %2664  ;;  %v10541_v36 = vld [vmem:[#allocation9_spill] sm:$0xff]  ;;  %v10544_v27 = vld [vmem:[#allocation15_spill] sm:$0xff] }
 0x340   :  { %v3909_v23 = vmax.f32 %v3653_v24, 0.0  ;;  %v3910_v31 = vmax.f32 %v3654_v61, 0.0  ;;  %v3895_v50 = vmax.f32 %v3639_v16, 0.0  ;;  %v3896_v20 = vmax.f32 %v3640_v59, 0.0  ;;  %5358 = vmatpush3.bf16.msra.mxu0 %v5357_v2  ;;  %2916 = vperm.xlu1 %5540, %v5699_v47   ;;  %v10539_v59 = vld [vmem:[#allocation12_spill] sm:$0xff] }
 0x341   :  { %v2121_v57 = vmin.f32 %v10534_v43, %v7366_v62  ;;  %v3655_v37 = vsub.f32 %v2119_v28, %v3399_v34  ;;  %v3656_v18 = vsub.f32 %v2120_v45, %v3400_v38  ;;  %v5361_v9 = vpack.c.bf16 %v3894_v53, %v3893_v63  ;;  %v5700_v45 = vld [vmem:[%s9973_s1 + $0x4f8] sm:$0xff]  ;;  %v10537_v63 = vld [vmem:[#allocation13_spill] sm:$0xff]  ;;  %v10540_v53 = vld [vmem:[#allocation6_spill] sm:$0xff] }
 0x342   :  { %v5359_v3 = vpack.c.bf16 %v3910_v31, %v3909_v23  ;;  %v3641_v26 = vsub.f32 %v2105_v52, %v3385_v48  ;;  %v10536_v0 = vmin.f32 %v10535_v51, %v7366_v62  ;;  %v622_v44 = vsub.f32 %v430_v17, %v558_v21  ;;  %2920 = vperm.xlu0 %5539, %v5700_v45   ;;  %v10542_v17 = vld [vmem:[#allocation10_spill] sm:$0xff]  ;;  %v5701_v34 = vld [vmem:[%s9973_s1 + $0x500] sm:$0xff] }
 0x343   :  { %v3911_v25 = vmax.f32 %v3655_v37, 0.0  ;;  %v3912_v5 = vmax.f32 %v3656_v18, 0.0  ;;  %v3401_v16 = vmax.f32 %v2661_v19, %v7353_v49  ;;  %v3402_v28 = vmax.f32 %v2665_v13, %v7353_v49  ;;  %v8423_v10 = vpop.permute.xlu0 %2672  ;;  %v5702_v38 = vld [vmem:[%s9973_s1 + $0x508] sm:$0xff]  ;;  %v5704_v19 = vld [vmem:[%s9973_s1 + $0x518] sm:$0xff] }
 0x344   :  { %v3642_v29 = vsub.f32 %v10536_v0, %v3386_v8  ;;  %v5365_v2 = vpack.c.bf16 %v3896_v20, %v3895_v50  ;;  %5360 = vmatprep.subr.bf16.mxu0 %v5359_v3  ;;  %v445_v7 = vmin.f32 %v10538_v55, %v10537_v63  ;;  %v573_v6 = vmax.f32 %v10540_v53, %v10539_v59  ;;  %v8421_v8 = vpop.permute.xlu1 %2668  ;;  %v10545_v50 = vld [vmem:[#allocation14_spill] sm:$0xff] }
 0x345   :  { %v3657_v24 = vsub.f32 %v2121_v57, %v3401_v16  ;;  %v3658_v11 = vsub.f32 %v2122_v4, %v3402_v28  ;;  %5362 = vmatpush3.bf16.msra.mxu0 %v5361_v9  ;;  %v5363_v61 = vpack.c.bf16 %v3912_v5, %v3911_v25  ;;  %v444_v32 = vmin.f32 %v10541_v36, %v10537_v63 }
 0x346   :  { %v3897_v48 = vmax.f32 %v3641_v26, 0.0  ;;  %v3898_v41 = vmax.f32 %v3642_v29, 0.0  ;;  %v637_v60 = vsub.f32 %v445_v7, %v573_v6  ;;  %v572_v21 = vmax.f32 %v10542_v17, %v10539_v59  ;;  %2924 = vperm.xlu1 %5540, %v5701_v34   ;;  %2928 = vperm.xlu0 %5539, %v5702_v38   ;;  %v5703_v29 = vld [vmem:[%s9973_s1 + $0x510] sm:$0xff]  ;;  %v5708_v38 = vld [vmem:[%s9973_s1 + $0x598] sm:$0xff] }
 0x347   :  { %v3913_v23 = vmax.f32 %v3657_v24, 0.0  ;;  %v3914_v31 = vmax.f32 %v3658_v11, 0.0  ;;  %v686_v56 = vmax.f32 %v622_v44, 0.0  ;;  %v8435_v35 = vrot.slane %v8331_v1, %v7496_v46  ;;  %5364 = vmatprep.subr.bf16.mxu0 %v5363_v61  ;;  %v8445_v18 = vpop.permute.xlu0 %2680  ;;  %v10546_v1 = vld [vmem:[#allocation5_spill] sm:$0xff]  ;;  %v10547_v44 = vld [vmem:[#allocation11_spill] sm:$0xff]  ;;  %v5706_v61 = vld [vmem:[%s9973_s1 + $0x588] sm:$0xff] }
 0x348   :  { %v701_v42 = vmax.f32 %v637_v60, 0.0  ;;  %v636_v52 = vsub.f32 %v444_v32, %v572_v21  ;;  %v461_v4 = vmin.f32 %v10538_v55, %v10544_v27  ;;  %v589_v20 = vmax.f32 %v10540_v53, %v10545_v50  ;;  %v8443_v37 = vpop.permute.xlu1 %2676  ;;  %v5707_v34 = vld [vmem:[%s9973_s1 + $0x590] sm:$0xff] }
 0x349   :  { %10543 = vst [vmem:[#allocation24_spill] sm:$0xff] %v8435_v35  ;;  %5366 = vmatpush3.bf16.msra.mxu0 %v5365_v2  ;;  %v5367_v43 = vpack.c.bf16 %v3914_v31, %v3913_v23  ;;  %v460_v57 = vmin.f32 %v10541_v36, %v10544_v27  ;;  %v588_v51 = vmax.f32 %v10542_v17, %v10545_v50 }
 0x34a   :  { %v4158_v3 = vmul.f32 %v10546_v1, %v701_v42  ;;  %v700_v9 = vmax.f32 %v636_v52, 0.0  ;;  %v653_v26 = vsub.f32 %v461_v4, %v589_v20  ;;  %v5369_v0 = vpack.c.bf16 %v3898_v41, %v3897_v48  ;;  %2932 = vperm.xlu1 %5540, %v5703_v29   ;;  %2936 = vperm.xlu0 %5539, %v5704_v19   ;;  %v5711_v19 = vld [vmem:[%s9973_s1 + $0x520] sm:$0xff] }
 0x34b   :  { %v4143_v13 = vmul.f32 %v8435_v35, %v686_v56  ;;  %5368 = vmatprep.subr.bf16.mxu0 %v5367_v43  ;;  %v652_v16 = vsub.f32 %v460_v57, %v588_v51  ;;  %v477_v28 = vmin.f32 %v10538_v55, %v8194_v12  ;;  %v605_v47 = vmax.f32 %v10540_v53, %v8180_v58  ;;  %v8464_v2 = vpop.permute.xlu0 %2688  ;;  %v71_v55 = vld [vmem:[%s9972_s0 + $0x38] sm:$0xff]  ;;  %v5705_v53 = vld [vmem:[%s9973_s1 + $0x580] sm:$0xff] }
 0x34c   :  { %4361 = vmatprep.mubr.f32.mxu1 %v4158_v3  ;;  %v4157_v25 = vmul.f32 %v10547_v44, %v700_v9  ;;  %v717_v5 = vmax.f32 %v653_v26, 0.0  ;;  %v8462_v45 = vpop.permute.xlu1 %2684  ;;  %v476_v24 = vmin.f32 %v10541_v36, %v8194_v12  ;;  %v604_v11 = vmax.f32 %v10542_v17, %v8180_v58  ;;  %v5710_v9 = vld [vmem:[%s9973_s1 + $0x5a8] sm:$0xff] }
 0x34d   :  { %5370 = vmatpush3.bf16.msra.mxu0 %v5369_v0  ;;  %v716_v6 = vmax.f32 %v652_v16, 0.0  ;;  %v669_v32 = vsub.f32 %v477_v28, %v605_v47  ;;  %v8482_v41 = vrot.slane %v71_v55, %v7452_v40  ;;  %v8489_v31 = vrot.slane %v71_v55, %v7455_v33  ;;  %v10553_v28 = vld [vmem:[#allocation75_spill] sm:$0xff] }
 0x34e   :  { %4362 = vmatmul.mubr.f32.gmra.mrb[2].mxu1 %v4157_v25  ;;  %v4174_v7 = vmul.f32 %v10546_v1, %v717_v5  ;;  %2988 = vperm.xlu1 %5540, %v5705_v53   ;;  %v668_v48 = vsub.f32 %v476_v24, %v604_v11  ;;  %v8508_v3 = vrot.slane %v71_v55, %v7496_v46  ;;  %v10552_v5 = vld [vmem:[#allocation74_spill] sm:$0xff]  ;;  %v10554_v24 = vld [vmem:[#allocation76_spill] sm:$0xff]  ;;  %v10555_v55 = vld [vmem:[#allocation77_spill] sm:$0xff] }
 0x34f   :  { %2992 = vperm.xlu0 %5539, %v5706_v61   ;;  %v4173_v36 = vmul.f32 %v10547_v44, %v716_v6  ;;  %10548 = vst [vmem:[#allocation25_spill] sm:$0xff] %v8482_v41  ;;  %v8486_v17 = vpop.permute.xlu0 %2696  ;;  %v733_v21 = vmax.f32 %v669_v32, 0.0  ;;  %10549 = vst [vmem:[#allocation26_spill] sm:$0xff] %v8489_v31  ;;  %v433_v52 = vmin.f32 %v8482_v41, %v7467_v14  ;;  %v10556_v61 = vld [vmem:[#allocation78_spill] sm:$0xff]  ;;  %v5713_v32 = vld [vmem:[%s9973_s1 + $0x5b0] sm:$0xff] }
 0x350   :  { %4442 = vmatmul.mubr.f32.vlgmr.msra.gmra.mrb[8].mxu0 %v4143_v13  ;;  %4366 = vmatprep.mubr.f32.mxu1 %v4174_v7  ;;  %v8484_v60 = vpop.permute.xlu1 %2692  ;;  %v732_v23 = vmax.f32 %v668_v48, 0.0  ;;  %v561_v4 = vmax.f32 %v8489_v31, %v7449_v39  ;;  %10550 = vst [vmem:[#allocation27_spill] sm:$0xff] %v8508_v3  ;;  %v5712_v13 = vld [vmem:[%s9973_s1 + $0x528] sm:$0xff]  ;;  %v2123_v16 = vmin.f32 %v10552_v5, %v7366_v62  ;;  %v5714_v48 = vld [vmem:[%s9973_s1 + $0x5b8] sm:$0xff] }
 0x351   :  { %v4190_v56 = vmul.f32 %v10546_v1, %v733_v21  ;;  %v5709_v1 = vld [vmem:[%s9973_s1 + $0x5a0] sm:$0xff]  ;;  %v2126_v47 = vmin.f32 %v10553_v28, %v7366_v62  ;;  %v2125_v11 = vmin.f32 %v10554_v24, %v7366_v62  ;;  %v2128_v53 = vmin.f32 %v10555_v55, %v7366_v62  ;;  %v10557_v21 = vld [vmem:[#allocation79_spill] sm:$0xff] }
 0x352   :  { %4367 = vmatmul.mubr.f32.gmra.mrb[4].mxu1 %v4173_v36  ;;  %2996 = vperm.xlu1 %5540, %v5707_v34   ;;  %v4189_v42 = vmul.f32 %v10547_v44, %v732_v23  ;;  %v625_v57 = vsub.f32 %v433_v52, %v561_v4  ;;  %v10551_v44 = vld [vmem:[#allocation73_spill] sm:$0xff]  ;;  %v2127_v36 = vmin.f32 %v10556_v61, %v7366_v62  ;;  %v10558_v34 = vld [vmem:[#allocation80_spill] sm:$0xff]  ;;  %v10560_v52 = vld [vmem:[#allocation82_spill] sm:$0xff] }
 0x353   :  { %3000 = vperm.xlu0 %5539, %v5708_v38   ;;  %v8505_v43 = vpop.permute.xlu0 %2704  ;;  %4371 = vmatprep.mubr.f32.mxu1 %v4190_v56  ;;  %v2124_v25 = vmin.f32 %v10551_v44, %v7366_v62  ;;  %v10559_v56 = vld [vmem:[#allocation81_spill] sm:$0xff]  ;;  %v3403_v5 = vmax.f32 %v8421_v8, %v7353_v49  ;;  %v3404_v28 = vmax.f32 %v8423_v10, %v7353_v49  ;;  %v5715_v10 = vld [vmem:[%s9973_s1 + $0x530] sm:$0xff]  ;;  %v10570_v23 = vld [vmem:[#allocation92_spill] sm:$0xff] }
 0x354   :  { %v8503_v20 = vpop.permute.xlu1 %2700  ;;  %v689_v26 = vmax.f32 %v625_v57, 0.0  ;;  %v10561_v57 = vld [vmem:[#allocation83_spill] sm:$0xff]  ;;  %v3405_v24 = vmax.f32 %v8443_v37, %v7353_v49  ;;  %v3406_v55 = vmax.f32 %v8445_v18, %v7353_v49  ;;  %v10567_v8 = vld [vmem:[#allocation89_spill] sm:$0xff]  ;;  %v5716_v37 = vld [vmem:[%s9973_s1 + $0x538] sm:$0xff] }
 0x355   :  { %v10568_v18 = vld [vmem:[#allocation90_spill] sm:$0xff]  ;;  %v10571_v38 = vld [vmem:[#allocation93_spill] sm:$0xff]  ;;  %v3659_v58 = vsub.f32 %v2123_v16, %v3403_v5 }
 0x356   :  { %3004 = vperm.xlu1 %5540, %v5709_v1   ;;  %4372 = vmatmul.mubr.f32.gmra.mrb[6].mxu1 %v4189_v42  ;;  %v4146_v29 = vmul.f32 %v8508_v3, %v689_v26  ;;  %v2140_v26 = vmin.f32 %v10567_v8, %v7366_v62  ;;  %v2139_v42 = vmin.f32 %v10568_v18, %v7366_v62  ;;  %v10573_v18 = vld [vmem:[#allocation95_spill] sm:$0xff]  ;;  %v5717_v3 = vld [vmem:[%s9973_s1 + $0x5c0] sm:$0xff] }
 0x357   :  { %3008 = vperm.xlu0 %5539, %v5710_v9   ;;  %v8518_v0 = vpop.permute.xlu0 %2712  ;;  %v10562_v9 = vld [vmem:[#allocation84_spill] sm:$0xff]  ;;  %v3407_v1 = vmax.f32 %v8462_v45, %v7353_v49  ;;  %v3408_v8 = vmax.f32 %v8464_v2, %v7353_v49  ;;  %v3661_v12 = vsub.f32 %v2125_v11, %v3405_v24  ;;  %v3662_v35 = vsub.f32 %v2126_v47, %v3406_v55  ;;  %v10575_v16 = vld [vmem:[#allocation97_spill] sm:$0xff]  ;;  %v10576_v11 = vld [vmem:[#allocation98_spill] sm:$0xff] }
 0x358   :  { %v8516_v51 = vpop.permute.xlu1 %2708  ;;  %4526 = vmatprep.mubr.f32.mxu1 %v4146_v29  ;;  %v10563_v29 = vld [vmem:[#allocation85_spill] sm:$0xff]  ;;  %v10574_v2 = vld [vmem:[#allocation96_spill] sm:$0xff]  ;;  %v3915_v31 = vmax.f32 %v3659_v58, 0.0  ;;  %v8626_v47 = vld [vmem:[%s9972_s0 + $0x30] sm:$0xff] }
 0x359   :  { %v3664_v24 = vsub.f32 %v2128_v53, %v3408_v8  ;;  %v3917_v44 = vmax.f32 %v3661_v12, 0.0  ;;  %v5719_v58 = vld [vmem:[%s9973_s1 + $0x540] sm:$0xff]  ;;  %v5720_v12 = vld [vmem:[%s9973_s1 + $0x548] sm:$0xff] }
 0x35a   :  { %2940 = vperm.xlu1 %5540, %v5711_v19   ;;  %v10569_v19 = vld [vmem:[#allocation91_spill] sm:$0xff] }
 0x35b   :  { %2944 = vperm.xlu0 %5539, %v5712_v13   ;;  %v8535_v6 = vpop.permute.xlu0 %2720  ;;  %v10564_v13 = vld [vmem:[#allocation86_spill] sm:$0xff]  ;;  %v2142_v4 = vmin.f32 %v10569_v19, %v7366_v62  ;;  %v3660_v19 = vsub.f32 %v2124_v25, %v3404_v28  ;;  %v3663_v28 = vsub.f32 %v2127_v36, %v3407_v1 }
 0x35c   :  { %v8533_v7 = vpop.permute.xlu1 %2716  ;;  %v5718_v25 = vld [vmem:[%s9973_s1 + $0x5c8] sm:$0xff] }
 0x35e   :  { %3012 = vperm.xlu1 %5540, %v5713_v32  }
 0x35f   :  { %3016 = vperm.xlu0 %5539, %v5714_v48   ;;  %v8575_v32 = vpop.permute.xlu0 %2728  ;;  %v3916_v48 = vmax.f32 %v3660_v19, 0.0  ;;  %v8642_v19 = vrot.slane %v8626_v47, %v7452_v40 }
 0x360   :  { %v8573_v61 = vpop.permute.xlu1 %2724 }
 0x362   :  { %2948 = vperm.xlu1 %5540, %v5715_v10   ;;  %v2141_v10 = vmin.f32 %v10570_v23, %v7366_v62 }
 0x363   :  { %2952 = vperm.xlu0 %5539, %v5716_v37   ;;  %v10572_v37 = vld [vmem:[#allocation94_spill] sm:$0xff]  ;;  %v2737_v30 = vpop.permute.xlu0 %2736 }
 0x364   :  { %v2733_v45 = vpop.permute.xlu1 %2732  ;;  %v3420_v27 = vmax.f32 %v2737_v30, %v7353_v49  ;;  %v10577_v30 = vld [vmem:[#allocation99_spill] sm:$0xff] }
 0x365   :  { %v3419_v23 = vmax.f32 %v2733_v45, %v7353_v49  ;;  %v10578_v45 = vld [vmem:[#allocation100_spill] sm:$0xff] }
 0x366   :  { %3020 = vperm.xlu1 %5540, %v5717_v3   ;;  %v3676_v50 = vsub.f32 %v2140_v26, %v3420_v27  ;;  %v3920_v27 = vmax.f32 %v3664_v24, 0.0  ;;  %v5373_v24 = vpack.c.bf16 %v3916_v48, %v3915_v31 }
 0x367   :  { %3024 = vperm.xlu0 %5539, %v5718_v25   ;;  %v3675_v3 = vsub.f32 %v2139_v42, %v3419_v23  ;;  %v3918_v25 = vmax.f32 %v3662_v35, 0.0  ;;  %v2745_v54 = vpop.permute.xlu0 %2744  ;;  %v3919_v35 = vmax.f32 %v3663_v28, 0.0  ;;  %v3409_v42 = vmax.f32 %v8484_v60, %v7353_v49  ;;  %v10579_v23 = vld [vmem:[#allocation101_spill] sm:$0xff] }
 0x368   :  { %v2741_v15 = vpop.permute.xlu1 %2740  ;;  %v3932_v36 = vmax.f32 %v3676_v50, 0.0  ;;  %v3422_v8 = vmax.f32 %v2745_v54, %v7353_v49 }
 0x369   :  { %v3931_v53 = vmax.f32 %v3675_v3, 0.0  ;;  %v3421_v1 = vmax.f32 %v2741_v15, %v7353_v49  ;;  %v3410_v15 = vmax.f32 %v8486_v17, %v7353_v49  ;;  %v2152_v3 = vmin.f32 %v10579_v23, %v7366_v62 }
 0x36a   :  { %2956 = vperm.xlu1 %5540, %v5719_v58   ;;  %v3678_v54 = vsub.f32 %v2142_v4, %v3422_v8  ;;  %v10580_v58 = vld [vmem:[#allocation102_spill] sm:$0xff]  ;;  %v5381_v31 = vpack.c.bf16 %v3920_v27, %v3919_v35  ;;  %v10584_v35 = vmin.f32 %v10571_v38, %v7366_v62 }
 0x36b   :  { %2960 = vperm.xlu0 %5539, %v5720_v12   ;;  %v3677_v50 = vsub.f32 %v2141_v10, %v3421_v1  ;;  %v5371_v26 = vpack.c.bf16 %v3932_v36, %v3931_v53  ;;  %v2151_v28 = vmin.f32 %v10580_v58, %v7366_v62  ;;  %v5377_v12 = vpack.c.bf16 %v3918_v25, %v3917_v44  ;;  %v2753_v60 = vpop.permute.xlu0 %2752  ;;  %v5721_v10 = vld [vmem:[%s9973_s1 + $0x5d0] sm:$0xff]  ;;  %v5722_v53 = vld [vmem:[%s9973_s1 + $0x5d8] sm:$0xff] }
 0x36c   :  { %v2749_v55 = vpop.permute.xlu1 %2748  ;;  %v3934_v5 = vmax.f32 %v3678_v54, 0.0  ;;  %v3424_v4 = vmax.f32 %v2753_v60, %v7353_v49  ;;  %v10581_v44 = vmin.f32 %v10558_v34, %v7366_v62  ;;  %v8664_v36 = vrot.slane %v8626_v47, %v7455_v33 }
 0x36d   :  { %v3933_v41 = vmax.f32 %v3677_v50, 0.0  ;;  %v3423_v17 = vmax.f32 %v2749_v55, %v7353_v49  ;;  %v10582_v55 = vmin.f32 %v10557_v21, %v7366_v62  ;;  %5372 = vmatprep.subr.bf16.mxu1 %v5371_v26  ;;  %v10583_v1 = vmin.f32 %v10572_v37, %v7366_v62 }
 0x36e   :  { %3028 = vperm.xlu1 %5540, %v5721_v10   ;;  %v3665_v48 = vsub.f32 %v10581_v44, %v3409_v42  ;;  %v3680_v27 = vsub.f32 %v10584_v35, %v3424_v4  ;;  %5374 = vmatpush3.bf16.msra.mxu1 %v5373_v24  ;;  %v432_v42 = vmin.f32 %v8642_v19, %v7467_v14 }
 0x36f   :  { %3032 = vperm.xlu0 %5539, %v5722_v53   ;;  %v3666_v25 = vsub.f32 %v10582_v55, %v3410_v15  ;;  %v3679_v8 = vsub.f32 %v10583_v1, %v3423_v17  ;;  %v5375_v34 = vpack.c.bf16 %v3934_v5, %v3933_v41  ;;  %v3411_v21 = vmax.f32 %v8503_v20, %v7353_v49  ;;  %v2761_v38 = vpop.permute.xlu0 %2760  ;;  %v5723_v20 = vld [vmem:[%s9973_s1 + $0x550] sm:$0xff] }
 0x370   :  { %v3412_v15 = vmax.f32 %v8505_v43, %v7353_v49  ;;  %v3413_v50 = vmax.f32 %v8516_v51, %v7353_v49  ;;  %v3414_v37 = vmax.f32 %v8518_v0, %v7353_v49  ;;  %v2757_v54 = vpop.permute.xlu1 %2756  ;;  %v3936_v24 = vmax.f32 %v3680_v27, 0.0  ;;  %v5724_v43 = vld [vmem:[%s9973_s1 + $0x558] sm:$0xff] }
 0x371   :  { %v3935_v26 = vmax.f32 %v3679_v8, 0.0  ;;  %v3425_v41 = vmax.f32 %v2757_v54, %v7353_v49  ;;  %v3426_v5 = vmax.f32 %v2761_v38, %v7353_v49  ;;  %v3921_v51 = vmax.f32 %v3665_v48, 0.0  ;;  %5376 = vmatprep.subr.bf16.mxu1 %v5375_v34 }
 0x372   :  { %2964 = vperm.xlu1 %5540, %v5723_v20   ;;  %v3922_v0 = vmax.f32 %v3666_v25, 0.0  ;;  %v3415_v60 = vmax.f32 %v8533_v7, %v7353_v49  ;;  %v560_v17 = vmax.f32 %v8664_v36, %v7449_v39  ;;  %v3416_v4 = vmax.f32 %v8535_v6, %v7353_v49  ;;  %5378 = vmatpush3.bf16.msra.mxu1 %v5377_v12 }
 0x373   :  { %2968 = vperm.xlu0 %5539, %v5724_v43   ;;  %v10585_v10 = vmin.f32 %v10574_v2, %v7366_v62  ;;  %v10586_v44 = vmin.f32 %v10573_v18, %v7366_v62  ;;  %v5379_v48 = vpack.c.bf16 %v3936_v24, %v3935_v26  ;;  %v10587_v7 = vmin.f32 %v10560_v52, %v7366_v62  ;;  %v2769_v34 = vpop.permute.xlu0 %2768 }
 0x374   :  { %v10588_v1 = vmin.f32 %v10559_v56, %v7366_v62  ;;  %v10589_v6 = vmin.f32 %v10562_v9, %v7366_v62  ;;  %v10590_v2 = vmin.f32 %v10561_v57, %v7366_v62  ;;  %v2765_v18 = vpop.permute.xlu1 %2764  ;;  %v3428_v52 = vmax.f32 %v2769_v34, %v7353_v49  ;;  %v5725_v56 = vld [vmem:[%s9973_s1 + $0x5e0] sm:$0xff]  ;;  %v5726_v9 = vld [vmem:[%s9973_s1 + $0x5e8] sm:$0xff]  ;;  %v10591_v57 = vld [vmem:[#allocation103_spill] sm:$0xff] }
 0x375   :  { %v3681_v53 = vsub.f32 %v10585_v10, %v3425_v41  ;;  %v3682_v55 = vsub.f32 %v10586_v44, %v3426_v5  ;;  %v3667_v25 = vsub.f32 %v10587_v7, %v3411_v21  ;;  %v3427_v38 = vmax.f32 %v2765_v18, %v7353_v49  ;;  %5380 = vmatprep.subr.bf16.mxu1 %v5379_v48 }
 0x376   :  { %v3668_v8 = vsub.f32 %v10588_v1, %v3412_v15  ;;  %v3669_v35 = vsub.f32 %v10589_v6, %v3413_v50  ;;  %v3670_v27 = vsub.f32 %v10590_v2, %v3414_v37  ;;  %3036 = vperm.xlu1 %5540, %v5725_v56   ;;  %v2154_v21 = vmin.f32 %v10591_v57, %v7366_v62 }
 0x377   :  { %v3937_v12 = vmax.f32 %v3681_v53, 0.0  ;;  %v3938_v54 = vmax.f32 %v3682_v55, 0.0  ;;  %3040 = vperm.xlu0 %5539, %v5726_v9   ;;  %v5385_v15 = vpack.c.bf16 %v3922_v0, %v3921_v51  ;;  %v10592_v50 = vmin.f32 %v10564_v13, %v7366_v62  ;;  %5382 = vmatpush3.bf16.msra.mxu1 %v5381_v31  ;;  %v10596_v31 = vld [vmem:[#allocation104_spill] sm:$0xff] }
 0x378   :  { %v8727_v26 = vsub.f32 %v432_v42, %v560_v17  ;;  %v10593_v24 = vmin.f32 %v10563_v29, %v7366_v62  ;;  %v10594_v5 = vmin.f32 %v10576_v11, %v7366_v62  ;;  %v10595_v43 = vmin.f32 %v10575_v16, %v7366_v62  ;;  %v2773_v42 = vpop.permute.xlu1 %2772  ;;  %v2777_v17 = vpop.permute.xlu0 %2776  ;;  %v5727_v11 = vld [vmem:[%s9973_s1 + $0x560] sm:$0xff]  ;;  %v5728_v16 = vld [vmem:[%s9973_s1 + $0x568] sm:$0xff] }
 0x379   :  { %v3671_v37 = vsub.f32 %v10592_v50, %v3415_v60  ;;  %v5383_v51 = vpack.c.bf16 %v3938_v54, %v3937_v12  ;;  %v3923_v0 = vmax.f32 %v3667_v25, 0.0  ;;  %v3924_v13 = vmax.f32 %v3668_v8, 0.0 }
 0x37a   :  { %v3672_v41 = vsub.f32 %v10593_v24, %v3416_v4  ;;  %v3683_v20 = vsub.f32 %v10594_v5, %v3427_v38  ;;  %v3684_v10 = vsub.f32 %v10595_v43, %v3428_v52  ;;  %v3925_v60 = vmax.f32 %v3669_v35, 0.0  ;;  %2972 = vperm.xlu1 %5540, %v5727_v11   ;;  %v10600_v24 = vld [vmem:[#allocation22_spill] sm:$0xff]  ;;  %v10601_v5 = vld [vmem:[#allocation23_spill] sm:$0xff] }
 0x37b   :  { %v3926_v53 = vmax.f32 %v3670_v27, 0.0  ;;  %v3429_v29 = vmax.f32 %v2773_v42, %v7353_v49  ;;  %v3430_v4 = vmax.f32 %v2777_v17, %v7353_v49  ;;  %2976 = vperm.xlu0 %5539, %v5728_v16   ;;  %v2153_v48 = vmin.f32 %v10596_v31, %v7366_v62  ;;  %5384 = vmatprep.subr.bf16.mxu1 %v5383_v51  ;;  %v10604_v42 = vld [vmem:[#allocation87_spill] sm:$0xff]  ;;  %v5732_v31 = vld [vmem:[%s9973_s1 + $0x578] sm:$0xff] }
 0x37c   :  { %v3939_v44 = vmax.f32 %v3683_v20, 0.0  ;;  %v3940_v55 = vmax.f32 %v3684_v10, 0.0  ;;  %v3927_v7 = vmax.f32 %v3671_v37, 0.0  ;;  %v688_v25 = vmax.f32 %v8727_v26, 0.0  ;;  %5386 = vmatpush3.bf16.msra.mxu1 %v5385_v15  ;;  %v2781_v38 = vpop.permute.xlu1 %2780  ;;  %v2785_v52 = vpop.permute.xlu0 %2784  ;;  %v10599_v15 = vld [vmem:[#allocation20_spill] sm:$0xff] }
 0x37d   :  { %v8751_v1 = vrot.slane %v8626_v47, %v7496_v46  ;;  %v3928_v8 = vmax.f32 %v3672_v41, 0.0  ;;  %v10597_v6 = vmin.f32 %v10578_v45, %v7366_v62  ;;  %v10598_v2 = vmin.f32 %v10577_v30, %v7366_v62  ;;  %v5729_v30 = vld [vmem:[%s9973_s1 + $0x5f0] sm:$0xff] }
 0x37e   :  { %v5387_v18 = vpack.c.bf16 %v3940_v55, %v3939_v44  ;;  %v5389_v34 = vpack.c.bf16 %v3924_v13, %v3923_v0  ;;  %v5393_v12 = vpack.c.bf16 %v3926_v53, %v3925_v60  ;;  %v3417_v54 = vmax.f32 %v8573_v61, %v7353_v49  ;;  %3044 = vperm.xlu1 %5540, %v5729_v30   ;;  %v5730_v61 = vld [vmem:[%s9973_s1 + $0x5f8] sm:$0xff] }
 0x37f   :  { %v3685_v35 = vsub.f32 %v10597_v6, %v3429_v29  ;;  %v3686_v27 = vsub.f32 %v10598_v2, %v3430_v4  ;;  %v3418_v47 = vmax.f32 %v8575_v32, %v7353_v49  ;;  %v3431_v45 = vmax.f32 %v2781_v38, %v7353_v49  ;;  %3048 = vperm.xlu0 %5539, %v5730_v61   ;;  %v10602_v13 = vld [vmem:[#allocation88_spill] sm:$0xff]  ;;  %v10606_v6 = vld [vmem:[#allocation15_spill] sm:$0xff]  ;;  %v10607_v2 = vld [vmem:[#allocation14_spill] sm:$0xff] }
 0x380   :  { %v3432_v50 = vmax.f32 %v2785_v52, %v7353_v49  ;;  %5388 = vmatprep.subr.bf16.mxu1 %v5387_v18  ;;  %v447_v32 = vmin.f32 %v8231_v22, %v10537_v63  ;;  %v575_v37 = vmax.f32 %v10599_v15, %v10539_v59  ;;  %v446_v41 = vmin.f32 %v10600_v24, %v10537_v63  ;;  %v2789_v55 = vpop.permute.xlu1 %2788  ;;  %v2793_v29 = vpop.permute.xlu0 %2792 }
 0x381   :  { %v3941_v56 = vmax.f32 %v3685_v35, 0.0  ;;  %v3942_v9 = vmax.f32 %v3686_v27, 0.0  ;;  %v574_v20 = vmax.f32 %v10601_v5, %v10539_v59  ;;  %v5397_v43 = vpack.c.bf16 %v3928_v8, %v3927_v7  ;;  %5390 = vmatpush3.bf16.msra.mxu1 %v5389_v34 }
 0x382   :  { %v3687_v10 = vsub.f32 %v2151_v28, %v3431_v45  ;;  %v3688_v51 = vsub.f32 %v2152_v3, %v3432_v50  ;;  %v10603_v60 = vmin.f32 %v10602_v13, %v7366_v62  ;;  %v10605_v17 = vmin.f32 %v10604_v42, %v7366_v62  ;;  %v5731_v3 = vld [vmem:[%s9973_s1 + $0x570] sm:$0xff]  ;;  %v10609_v45 = vld [vmem:[#allocation24_spill] sm:$0xff] }
 0x383   :  { %v5391_v0 = vpack.c.bf16 %v3942_v9, %v3941_v56  ;;  %v639_v4 = vsub.f32 %v447_v32, %v575_v37  ;;  %v638_v11 = vsub.f32 %v446_v41, %v574_v20  ;;  %v3433_v16 = vmax.f32 %v2789_v55, %v7353_v49  ;;  %2980 = vperm.xlu1 %5540, %v5731_v3   ;;  %v10608_v56 = vld [vmem:[#allocation21_spill] sm:$0xff]  ;;  %v5734_v37 = vld [vmem:[%s9973_s1 + $0x688] sm:$0xff] }
 0x384   :  { %v3673_v53 = vsub.f32 %v10603_v60, %v3417_v54  ;;  %v3674_v44 = vsub.f32 %v10605_v17, %v3418_v47  ;;  %v3943_v58 = vmax.f32 %v3687_v10, 0.0  ;;  %v3944_v28 = vmax.f32 %v3688_v51, 0.0  ;;  %2984 = vperm.xlu0 %5539, %v5732_v31   ;;  %v8808_v38 = vpop.permute.xlu1 %2796  ;;  %v8810_v52 = vpop.permute.xlu0 %2800  ;;  %v5733_v32 = vld [vmem:[%s9973_s1 + $0x680] sm:$0xff]  ;;  %v10610_v10 = vld [vmem:[#allocation19_spill] sm:$0xff] }
 0x385   :  { %v3434_v23 = vmax.f32 %v2793_v29, %v7353_v49  ;;  %5392 = vmatprep.subr.bf16.mxu1 %v5391_v0  ;;  %v703_v7 = vmax.f32 %v639_v4, 0.0  ;;  %v702_v8 = vmax.f32 %v638_v11, 0.0  ;;  %v463_v35 = vmin.f32 %v8231_v22, %v10606_v6  ;;  %v10611_v0 = vld [vmem:[#allocation18_spill] sm:$0xff]  ;;  %v10612_v29 = vld [vmem:[#allocation25_spill] sm:$0xff] }
 0x386   :  { %v591_v27 = vmax.f32 %v10599_v15, %v10607_v2  ;;  %v3689_v18 = vsub.f32 %v2153_v48, %v3433_v16  ;;  %5394 = vmatpush3.bf16.msra.mxu1 %v5393_v12  ;;  %v5395_v54 = vpack.c.bf16 %v3944_v28, %v3943_v58  ;;  %v462_v47 = vmin.f32 %v10600_v24, %v10606_v6  ;;  %v10613_v16 = vld [vmem:[#allocation26_spill] sm:$0xff] }
 0x387   :  { %v3690_v34 = vsub.f32 %v2154_v21, %v3434_v23  ;;  %v4160_v9 = vmul.f32 %v10608_v56, %v703_v7  ;;  %v4159_v50 = vmul.f32 %v10609_v45, %v702_v8  ;;  %v590_v48 = vmax.f32 %v10601_v5, %v10607_v2  ;;  %3116 = vperm.xlu1 %5540, %v5733_v32   ;;  %v10616_v32 = vld [vmem:[#allocation105_spill] sm:$0xff] }
 0x388   :  { %v655_v30 = vsub.f32 %v463_v35, %v591_v27  ;;  %v3929_v61 = vmax.f32 %v3673_v53, 0.0  ;;  %v3930_v57 = vmax.f32 %v3674_v44, 0.0  ;;  %v3945_v21 = vmax.f32 %v3689_v18, 0.0  ;;  %3120 = vperm.xlu0 %5539, %v5734_v37   ;;  %5396 = vmatprep.subr.bf16.mxu1 %v5395_v54  ;;  %v8826_v53 = vpop.permute.xlu1 %2804  ;;  %v8828_v42 = vpop.permute.xlu0 %2808  ;;  %v73_v18 = vld [vmem:[%s9972_s0 + $0x48] sm:$0xff]  ;;  %v10637_v37 = vld [vmem:[#allocation124_spill] sm:$0xff] }
 0x389   :  { %v3946_v12 = vmax.f32 %v3690_v34, 0.0  ;;  %4446 = vmatprep.mubr.f32.mxu0 %v4160_v9  ;;  %v654_v20 = vsub.f32 %v462_v47, %v590_v48  ;;  %v479_v51 = vmin.f32 %v8231_v22, %v10610_v10  ;;  %v607_v13 = vmax.f32 %v10599_v15, %v10611_v0  ;;  %v5735_v22 = vld [vmem:[%s9973_s1 + $0x600] sm:$0xff]  ;;  %v5736_v15 = vld [vmem:[%s9973_s1 + $0x608] sm:$0xff]  ;;  %v10614_v48 = vld [vmem:[#allocation27_spill] sm:$0xff] }
 0x38a   :  { %v719_v41 = vmax.f32 %v655_v30, 0.0  ;;  %5398 = vmatpush3.bf16.msra.mxu1 %v5397_v43  ;;  %4447 = vmatmul.mubr.f32.gmra.mrb[10].mxu0 %v4159_v50  ;;  %v449_v4 = vmin.f32 %v10612_v29, %v10537_v63  ;;  %v5401_v11 = vpack.c.bf16 %v3930_v57, %v3929_v61  ;;  %v4145_v43 = vmul.f32 %v8751_v1, %v688_v25 }
 0x38b   :  { %v5399_v60 = vpack.c.bf16 %v3946_v12, %v3945_v21  ;;  %v718_v44 = vmax.f32 %v654_v20, 0.0  ;;  %v671_v55 = vsub.f32 %v479_v51, %v607_v13  ;;  %3052 = vperm.xlu1 %5540, %v5735_v22   ;;  %v577_v23 = vmax.f32 %v10613_v16, %v10539_v59  ;;  %v5740_v20 = vld [vmem:[%s9973_s1 + $0x708] sm:$0xff]  ;;  %v10638_v13 = vld [vmem:[#allocation125_spill] sm:$0xff] }
 0x38c   :  { %v4176_v17 = vmul.f32 %v10608_v56, %v719_v41  ;;  %3056 = vperm.xlu0 %5539, %v5736_v15   ;;  %v478_v3 = vmin.f32 %v10600_v24, %v10610_v10  ;;  %v606_v31 = vmax.f32 %v10601_v5, %v10611_v0  ;;  %v8849_v7 = vpop.permute.xlu1 %2812  ;;  %v8851_v26 = vpop.permute.xlu0 %2816  ;;  %v448_v35 = vmin.f32 %v8642_v19, %v10537_v63  ;;  %v5737_v24 = vld [vmem:[%s9973_s1 + $0x780] sm:$0xff]  ;;  %v5738_v5 = vld [vmem:[%s9973_s1 + $0x788] sm:$0xff] }
 0x38d   :  { %5400 = vmatprep.subr.bf16.mxu1 %v5399_v60  ;;  %v4175_v58 = vmul.f32 %v10609_v45, %v718_v44  ;;  %v735_v28 = vmax.f32 %v671_v55, 0.0  ;;  %v641_v8 = vsub.f32 %v449_v4, %v577_v23  ;;  %v576_v27 = vmax.f32 %v8664_v36, %v10539_v59  ;;  %v5739_v41 = vld [vmem:[%s9973_s1 + $0x700] sm:$0xff]  ;;  %v10617_v51 = vld [vmem:[#allocation106_spill] sm:$0xff]  ;;  %v10618_v55 = vld [vmem:[#allocation107_spill] sm:$0xff] }
 0x38e   :  { %4451 = vmatprep.mubr.f32.mxu0 %v4176_v17  ;;  %5402 = vmatpush3.bf16.msra.mxu1 %v5401_v11  ;;  %v670_v54 = vsub.f32 %v478_v3, %v606_v31  ;;  %v593_v9 = vmax.f32 %v10613_v16, %v10607_v2  ;;  %v8877_v12 = vrot.slane %v73_v18, %v7452_v40  ;;  %v10619_v11 = vld [vmem:[#allocation108_spill] sm:$0xff]  ;;  %v10620_v15 = vld [vmem:[#allocation109_spill] sm:$0xff]  ;;  %v10636_v4 = vld [vmem:[#allocation123_spill] sm:$0xff] }
 0x38f   :  { %4452 = vmatmul.mubr.f32.gmra.mrb[12].mxu0 %v4175_v58  ;;  %v4192_v25 = vmul.f32 %v10608_v56, %v735_v28  ;;  %3244 = vperm.xlu1 %5540, %v5737_v24   ;;  %v705_v34 = vmax.f32 %v641_v8, 0.0  ;;  %v640_v47 = vsub.f32 %v448_v35, %v576_v27  ;;  %v465_v56 = vmin.f32 %v10612_v29, %v10606_v6  ;;  %v10622_v8 = vld [vmem:[#allocation110_spill] sm:$0xff]  ;;  %v10623_v27 = vld [vmem:[#allocation111_spill] sm:$0xff]  ;;  %v10634_v24 = vld [vmem:[#allocation121_spill] sm:$0xff] }
 0x390   :  { %3248 = vperm.xlu0 %5539, %v5738_v5   ;;  %v8871_v50 = vpop.permute.xlu1 %2820  ;;  %v8873_v30 = vpop.permute.xlu0 %2824  ;;  %v734_v57 = vmax.f32 %v670_v54, 0.0  ;;  %10615 = vst [vmem:[#allocation28_spill] sm:$0xff] %v8877_v12  ;;  %v8898_v58 = vrot.slane %v73_v18, %v7455_v33  ;;  %v435_v3 = vmin.f32 %v8877_v12, %v7467_v14  ;;  %v464_v31 = vmin.f32 %v8642_v19, %v10606_v6  ;;  %v10624_v5 = vld [vmem:[#allocation112_spill] sm:$0xff]  ;;  %v5741_v54 = vld [vmem:[%s9973_s1 + $0x690] sm:$0xff] }
 0x391   :  { %4527 = vmatmul.mubr.f32.vlgmr.msra.gmra.mrb[8].mxu1 %v4145_v43  ;;  %4456 = vmatprep.mubr.f32.mxu0 %v4192_v25  ;;  %v4162_v61 = vmul.f32 %v10614_v48, %v705_v34  ;;  %v704_v21 = vmax.f32 %v640_v47, 0.0  ;;  %v657_v44 = vsub.f32 %v465_v56, %v593_v9  ;;  %v592_v25 = vmax.f32 %v8664_v36, %v10607_v2  ;;  %v5742_v47 = vld [vmem:[%s9973_s1 + $0x698] sm:$0xff]  ;;  %v10625_v56 = vld [vmem:[#allocation113_spill] sm:$0xff]  ;;  %v10630_v9 = vld [vmem:[#allocation118_spill] sm:$0xff] }
 0x392   :  { %v4191_v60 = vmul.f32 %v10609_v45, %v734_v57  ;;  %10621 = vst [vmem:[#allocation29_spill] sm:$0xff] %v8898_v58  ;;  %v563_v57 = vmax.f32 %v8898_v58, %v7449_v39  ;;  %v5743_v34 = vld [vmem:[%s9973_s1 + $0x610] sm:$0xff]  ;;  %v481_v35 = vmin.f32 %v10612_v29, %v10610_v10  ;;  %v480_v2 = vmin.f32 %v8642_v19, %v10610_v10  ;;  %v5746_v19 = vld [vmem:[%s9973_s1 + $0x798] sm:$0xff] }
 0x393   :  { %3180 = vperm.xlu1 %5540, %v5739_v41   ;;  %4531 = vmatprep.mubr.f32.mxu1 %v4162_v61  ;;  %v4161_v17 = vmul.f32 %v8751_v1, %v704_v21  ;;  %v721_v45 = vmax.f32 %v657_v44, 0.0  ;;  %v656_v21 = vsub.f32 %v464_v31, %v592_v25  ;;  %v10626_v41 = vld [vmem:[#allocation114_spill] sm:$0xff]  ;;  %v10628_v44 = vld [vmem:[#allocation116_spill] sm:$0xff]  ;;  %v8942_v25 = vrot.slane %v73_v18, %v7496_v46 }
 0x394   :  { %3184 = vperm.xlu0 %5539, %v5740_v20   ;;  %v8900_v28 = vpop.permute.xlu1 %2828  ;;  %v8902_v23 = vpop.permute.xlu0 %2832  ;;  %4457 = vmatmul.mubr.f32.gmra.mrb[14].mxu0 %v4191_v60  ;;  %v10627_v60 = vld [vmem:[#allocation115_spill] sm:$0xff]  ;;  %v627_v31 = vsub.f32 %v435_v3, %v563_v57  ;;  %v5744_v18 = vld [vmem:[%s9973_s1 + $0x618] sm:$0xff]  ;;  %v10635_v3 = vld [vmem:[#allocation122_spill] sm:$0xff]  ;;  %v3435_v58 = vmax.f32 %v8808_v38, %v7353_v49  ;;  %v10649_v12 = vmin.f32 %v10617_v51, %v7366_v62 }
 0x395   :  { %4532 = vmatmul.mubr.f32.gmra.mrb[10].mxu1 %v4161_v17  ;;  %v4178_v61 = vmul.f32 %v10614_v48, %v721_v45  ;;  %10631 = vst [vmem:[#allocation30_spill] sm:$0xff] %v8942_v25  ;;  %v720_v20 = vmax.f32 %v656_v21, 0.0  ;;  %v10650_v59 = vmin.f32 %v10616_v32, %v7366_v62  ;;  %v10651_v32 = vld [vmem:[#allocation134_spill] sm:$0xff]  ;;  %v10658_v63 = vmin.f32 %v10635_v3, %v7366_v62 }
 0x396   :  { %v691_v57 = vmax.f32 %v627_v31, 0.0  ;;  %v75_v31 = vld [vmem:[%s9972_s0 + $0x58] sm:$0xff] }
 0x397   :  { %3124 = vperm.xlu1 %5540, %v5741_v54   ;;  %4536 = vmatprep.mubr.f32.mxu1 %v4178_v61  ;;  %v4177_v21 = vmul.f32 %v8751_v1, %v720_v20  ;;  %v10639_v20 = vld [vmem:[#allocation126_spill] sm:$0xff]  ;;  %v3436_v61 = vmax.f32 %v8810_v52, %v7353_v49  ;;  %v8998_v38 = vrot.slane %v75_v31, %v7452_v40  ;;  %v10642_v52 = vld [vmem:[#allocation129_spill] sm:$0xff] }
 0x398   :  { %3128 = vperm.xlu0 %5539, %v5742_v47   ;;  %v10629_v47 = vld [vmem:[#allocation117_spill] sm:$0xff]  ;;  %v8937_v45 = vpop.permute.xlu1 %2836  ;;  %v8939_v43 = vpop.permute.xlu0 %2840  ;;  %v4148_v22 = vmul.f32 %v8942_v25, %v691_v57  ;;  %v5745_v57 = vld [vmem:[%s9973_s1 + $0x790] sm:$0xff]  ;;  %v10643_v25 = vld [vmem:[#allocation130_spill] sm:$0xff]  ;;  %v3691_v54 = vsub.f32 %v10649_v12, %v3435_v58  ;;  %v9050_v58 = vrot.slane %v75_v31, %v7496_v46 }
 0x399   :  { %4537 = vmatmul.mubr.f32.gmra.mrb[12].mxu1 %v4177_v21  ;;  %v10646_v21 = vld [vmem:[#allocation132_spill] sm:$0xff]  ;;  %v437_v10 = vmin.f32 %v8998_v38, %v7467_v14 }
 0x39a   :  { %4611 = vmatprep.mubr.f32.mxu0 %v4148_v22  ;;  %v3692_v22 = vsub.f32 %v10650_v59, %v3436_v61 }
 0x39b   :  { %3060 = vperm.xlu1 %5540, %v5743_v34   ;;  %v10640_v34 = vld [vmem:[#allocation127_spill] sm:$0xff] }
 0x39c   :  { %3064 = vperm.xlu0 %5539, %v5744_v18   ;;  %v609_v18 = vmax.f32 %v10613_v16, %v10611_v0  ;;  %v8974_v29 = vpop.permute.xlu1 %2844  ;;  %v8976_v6 = vpop.permute.xlu0 %2848  ;;  %v608_v16 = vmax.f32 %v8664_v36, %v10611_v0  ;;  %v10641_v36 = vld [vmem:[#allocation128_spill] sm:$0xff] }
 0x39e   :  { %v673_v17 = vsub.f32 %v481_v35, %v609_v18  ;;  %v672_v0 = vsub.f32 %v480_v2, %v608_v16 }
 0x39f   :  { %3252 = vperm.xlu1 %5540, %v5745_v57  }
 0x3a0   :  { %3256 = vperm.xlu0 %5539, %v5746_v19   ;;  %v9007_v19 = vrot.slane %v75_v31, %v7455_v33  ;;  %v9011_v35 = vpop.permute.xlu1 %2852  ;;  %v9013_v2 = vpop.permute.xlu0 %2856  ;;  %v737_v18 = vmax.f32 %v673_v17, 0.0  ;;  %v736_v16 = vmax.f32 %v672_v0, 0.0  ;;  %v5748_v0 = vld [vmem:[%s9973_s1 + $0x718] sm:$0xff]  ;;  %v3437_v17 = vmax.f32 %v8826_v53, %v7353_v49 }
 0x3a1   :  { %10647 = vst [vmem:[#allocation32_spill] sm:$0xff] %v9013_v2  ;;  %v5747_v2 = vld [vmem:[%s9973_s1 + $0x710] sm:$0xff]  ;;  %v3439_v53 = vmax.f32 %v8849_v7, %v7353_v49  ;;  %v5749_v7 = vld [vmem:[%s9973_s1 + $0x6a0] sm:$0xff]  ;;  %v3948_v31 = vmax.f32 %v3692_v22, 0.0 }
 0x3a2   :  { %10645 = vst [vmem:[#allocation31_spill] sm:$0xff] %v9007_v19  ;;  %v4194_v51 = vmul.f32 %v10614_v48, %v737_v18  ;;  %v4193_v12 = vmul.f32 %v8751_v1, %v736_v16  ;;  %v565_v59 = vmax.f32 %v9007_v19, %v7449_v39  ;;  %v3440_v1 = vmax.f32 %v8851_v26, %v7353_v49  ;;  %v5750_v26 = vld [vmem:[%s9973_s1 + $0x6a8] sm:$0xff] }
 0x3a3   :  { %3188 = vperm.xlu1 %5540, %v5747_v2   ;;  %v10657_v2 = vmin.f32 %v10618_v55, %v7366_v62  ;;  %v3441_v55 = vmax.f32 %v8871_v50, %v7353_v49  ;;  %v10662_v50 = vld [vmem:[#allocation139_spill] sm:$0xff] }
 0x3a4   :  { %3192 = vperm.xlu0 %5539, %v5748_v0   ;;  %v3438_v0 = vmax.f32 %v8828_v42, %v7353_v49  ;;  %v2861_v48 = vpop.permute.xlu1 %2860  ;;  %v2865_v18 = vpop.permute.xlu0 %2864  ;;  %4541 = vmatprep.mubr.f32.mxu1 %v4194_v51  ;;  %v629_v16 = vsub.f32 %v437_v10, %v565_v59  ;;  %v3947_v10 = vmax.f32 %v3691_v54, 0.0  ;;  %v10655_v51 = vmin.f32 %v10619_v11, %v7366_v62 }
 0x3a5   :  { %v3451_v57 = vmax.f32 %v2861_v48, %v7353_v49  ;;  %v3452_v42 = vmax.f32 %v2865_v18, %v7353_v49  ;;  %4542 = vmatmul.mubr.f32.gmra.mrb[14].mxu1 %v4193_v12  ;;  %v10656_v18 = vld [vmem:[#allocation138_spill] sm:$0xff]  ;;  %v10659_v54 = vmin.f32 %v10634_v24, %v7366_v62  ;;  %v10660_v11 = vmin.f32 %v10622_v8, %v7366_v62  ;;  %v5751_v8 = vld [vmem:[%s9973_s1 + $0x620] sm:$0xff] }
 0x3a6   :  { %v3693_v59 = vsub.f32 %v10655_v51, %v3437_v17  ;;  %v693_v48 = vmax.f32 %v629_v16, 0.0  ;;  %v2187_v61 = vmin.f32 %v10656_v18, %v7366_v62  ;;  %v10661_v12 = vmin.f32 %v10620_v15, %v7366_v62  ;;  %v5752_v15 = vld [vmem:[%s9973_s1 + $0x628] sm:$0xff] }
 0x3a7   :  { %3132 = vperm.xlu1 %5540, %v5749_v7   ;;  %v3694_v7 = vsub.f32 %v10657_v2, %v3438_v0  ;;  %v3707_v19 = vsub.f32 %v10658_v63, %v3451_v57  ;;  %v3708_v22 = vsub.f32 %v10659_v54, %v3452_v42  ;;  %v3695_v17 = vsub.f32 %v10660_v11, %v3439_v53 }
 0x3a8   :  { %3136 = vperm.xlu0 %5539, %v5750_v26   ;;  %v3696_v16 = vsub.f32 %v10661_v12, %v3440_v1  ;;  %v2869_v2 = vpop.permute.xlu1 %2868  ;;  %v2873_v0 = vpop.permute.xlu0 %2872  ;;  %v4150_v3 = vmul.f32 %v9050_v58, %v693_v48  ;;  %v5405_v26 = vpack.c.bf16 %v3948_v31, %v3947_v10  ;;  %v3949_v51 = vmax.f32 %v3693_v59, 0.0 }
 0x3a9   :  { %v3963_v63 = vmax.f32 %v3707_v19, 0.0  ;;  %v3964_v57 = vmax.f32 %v3708_v22, 0.0  ;;  %v3453_v24 = vmax.f32 %v2869_v2, %v7353_v49  ;;  %v3454_v42 = vmax.f32 %v2873_v0, %v7353_v49  ;;  %v10663_v19 = vld [vmem:[#allocation140_spill] sm:$0xff] }
 0x3aa   :  { %v2189_v1 = vmin.f32 %v10663_v19, %v7366_v62  ;;  %4696 = vmatprep.mubr.f32.mxu1 %v4150_v3  ;;  %v3950_v48 = vmax.f32 %v3694_v7, 0.0  ;;  %v10664_v54 = vmin.f32 %v10637_v37, %v7366_v62  ;;  %v10665_v11 = vmin.f32 %v10636_v4, %v7366_v62 }
 0x3ab   :  { %3068 = vperm.xlu1 %5540, %v5751_v8   ;;  %v5403_v2 = vpack.c.bf16 %v3964_v57, %v3963_v63  ;;  %v3951_v0 = vmax.f32 %v3695_v17, 0.0  ;;  %v3952_v8 = vmax.f32 %v3696_v16, 0.0  ;;  %v3442_v10 = vmax.f32 %v8873_v30, %v7353_v49  ;;  %v5753_v17 = vld [vmem:[%s9973_s1 + $0x7a0] sm:$0xff] }
 0x3ac   :  { %3072 = vperm.xlu0 %5539, %v5752_v15   ;;  %v3709_v22 = vsub.f32 %v10664_v54, %v3453_v24  ;;  %v3710_v12 = vsub.f32 %v10665_v11, %v3454_v42  ;;  %v10666_v15 = vmin.f32 %v10624_v5, %v7366_v62  ;;  %v2877_v31 = vpop.permute.xlu1 %2876  ;;  %v2881_v59 = vpop.permute.xlu0 %2880  ;;  %v5754_v5 = vld [vmem:[%s9973_s1 + $0x7a8] sm:$0xff]  ;;  %v10667_v30 = vld [vmem:[#allocation153_spill] sm:$0xff]  ;;  %v3443_v57 = vmax.f32 %v8900_v28, %v7353_v49  ;;  %v10669_v42 = vld [vmem:[#allocation155_spill] sm:$0xff] }
 0x3ad   :  { %v3455_v3 = vmax.f32 %v2877_v31, %v7353_v49  ;;  %v3456_v4 = vmax.f32 %v2881_v59, %v7353_v49  ;;  %v2204_v16 = vmin.f32 %v10667_v30, %v7366_v62  ;;  %v3444_v24 = vmax.f32 %v8902_v23, %v7353_v49  ;;  %5404 = vmatprep.subr.bf16.mxu0 %v5403_v2  ;;  %v9137_v28 = vld [vmem:[%s9972_s0 + $0x40] sm:$0xff] }
 0x3ae   :  { %v9106_v53 = vsub.f32 %v10666_v15, %v3441_v55  ;;  %v3965_v7 = vmax.f32 %v3709_v22, 0.0  ;;  %v3966_v37 = vmax.f32 %v3710_v12, 0.0  ;;  %v10668_v55 = vld [vmem:[#allocation154_spill] sm:$0xff]  ;;  %v2206_v54 = vmin.f32 %v10669_v42, %v7366_v62  ;;  %5406 = vmatpush3.bf16.msra.mxu0 %v5405_v26  ;;  %v5773_v42 = vld [vmem:[%s9973_s1 + $0x6d0] sm:$0xff] }
 0x3af   :  { %3260 = vperm.xlu1 %5540, %v5753_v17   ;;  %v2203_v63 = vmin.f32 %v10668_v55, %v7366_v62  ;;  %v10670_v22 = vmin.f32 %v10639_v20, %v7366_v62  ;;  %v10671_v12 = vmin.f32 %v10638_v13, %v7366_v62  ;;  %v5409_v23 = vpack.c.bf16 %v3950_v48, %v3949_v51 }
 0x3b0   :  { %3264 = vperm.xlu0 %5539, %v5754_v5   ;;  %v5407_v31 = vpack.c.bf16 %v3966_v37, %v3965_v7  ;;  %v5413_v2 = vpack.c.bf16 %v3952_v8, %v3951_v0  ;;  %v3953_v59 = vmax.f32 %v9106_v53, 0.0  ;;  %v10672_v17 = vmin.f32 %v10623_v27, %v7366_v62  ;;  %v2889_v5 = vpop.permute.xlu0 %2888  ;;  %v5755_v37 = vld [vmem:[%s9973_s1 + $0x720] sm:$0xff]  ;;  %v5756_v53 = vld [vmem:[%s9973_s1 + $0x728] sm:$0xff] }
 0x3b1   :  { %v3711_v11 = vsub.f32 %v10670_v22, %v3455_v3  ;;  %v3712_v15 = vsub.f32 %v10671_v12, %v3456_v4  ;;  %v2885_v3 = vpop.permute.xlu1 %2884  ;;  %v3458_v7 = vmax.f32 %v2889_v5, %v7353_v49  ;;  %v10673_v27 = vmin.f32 %v10626_v41, %v7366_v62 }
 0x3b2   :  { %v3698_v20 = vsub.f32 %v10672_v17, %v3442_v10  ;;  %v3457_v26 = vmax.f32 %v2885_v3, %v7353_v49  ;;  %v10674_v48 = vmin.f32 %v10625_v56, %v7366_v62  ;;  %5408 = vmatprep.subr.bf16.mxu0 %v5407_v31  ;;  %v9159_v8 = vrot.slane %v9137_v28, %v7452_v40 }
 0x3b3   :  { %v3967_v22 = vmax.f32 %v3711_v11, 0.0  ;;  %v3968_v13 = vmax.f32 %v3712_v15, 0.0  ;;  %3196 = vperm.xlu1 %5540, %v5755_v37   ;;  %v3699_v51 = vsub.f32 %v10673_v27, %v3443_v57  ;;  %v9163_v10 = vrot.slane %v9137_v28, %v7455_v33  ;;  %5410 = vmatpush3.bf16.msra.mxu0 %v5409_v23  ;;  %v5757_v23 = vld [vmem:[%s9973_s1 + $0x6b0] sm:$0xff] }
 0x3b4   :  { %3200 = vperm.xlu0 %5539, %v5756_v53   ;;  %v3700_v0 = vsub.f32 %v10674_v48, %v3444_v24  ;;  %v3445_v4 = vmax.f32 %v8937_v45, %v7353_v49  ;;  %v10675_v41 = vmin.f32 %v10641_v36, %v7366_v62  ;;  %v10676_v56 = vmin.f32 %v10640_v34, %v7366_v62  ;;  %v2897_v3 = vpop.permute.xlu0 %2896 }
 0x3b5   :  { %v5411_v11 = vpack.c.bf16 %v3968_v13, %v3967_v22  ;;  %v3954_v12 = vmax.f32 %v3698_v20, 0.0  ;;  %v3446_v15 = vmax.f32 %v8939_v43, %v7353_v49  ;;  %v3447_v31 = vmax.f32 %v8974_v29, %v7353_v49  ;;  %v2893_v17 = vpop.permute.xlu1 %2892  ;;  %v5758_v43 = vld [vmem:[%s9973_s1 + $0x6b8] sm:$0xff] }
 0x3b6   :  { %v3713_v57 = vsub.f32 %v10675_v41, %v3457_v26  ;;  %v3714_v24 = vsub.f32 %v10676_v56, %v3458_v7  ;;  %v3448_v45 = vmax.f32 %v8976_v6, %v7353_v49  ;;  %v3459_v26 = vmax.f32 %v2893_v17, %v7353_v49 }
 0x3b7   :  { %v3460_v34 = vmax.f32 %v2897_v3, %v7353_v49  ;;  %3140 = vperm.xlu1 %5540, %v5757_v23   ;;  %v3955_v29 = vmax.f32 %v3699_v51, 0.0  ;;  %v3956_v6 = vmax.f32 %v3700_v0, 0.0  ;;  %5412 = vmatprep.subr.bf16.mxu0 %v5411_v11  ;;  %v434_v20 = vmin.f32 %v9159_v8, %v7467_v14 }
 0x3b8   :  { %v3969_v36 = vmax.f32 %v3713_v57, 0.0  ;;  %v3970_v5 = vmax.f32 %v3714_v24, 0.0  ;;  %3144 = vperm.xlu0 %5539, %v5758_v43   ;;  %v562_v22 = vmax.f32 %v9163_v10, %v7449_v39  ;;  %v10677_v13 = vmin.f32 %v10628_v44, %v7366_v62  ;;  %5414 = vmatpush3.bf16.msra.mxu0 %v5413_v2  ;;  %v2905_v11 = vpop.permute.xlu0 %2904 }
 0x3b9   :  { %v10678_v37 = vmin.f32 %v10643_v25, %v7366_v62  ;;  %v10679_v27 = vmin.f32 %v10642_v52, %v7366_v62  ;;  %v5417_v0 = vpack.c.bf16 %v3954_v12, %v3953_v59  ;;  %v10680_v41 = vmin.f32 %v10627_v60, %v7366_v62  ;;  %v2901_v24 = vpop.permute.xlu1 %2900  ;;  %v5759_v60 = vld [vmem:[%s9973_s1 + $0x630] sm:$0xff] }
 0x3ba   :  { %v3701_v7 = vsub.f32 %v10677_v13, %v3445_v4  ;;  %v5415_v48 = vpack.c.bf16 %v3970_v5, %v3969_v36  ;;  %v10681_v56 = vmin.f32 %v10630_v9, %v7366_v62  ;;  %v10682_v4 = vmin.f32 %v10629_v47, %v7366_v62  ;;  %v5760_v9 = vld [vmem:[%s9973_s1 + $0x638] sm:$0xff]  ;;  %v10684_v5 = vld [vmem:[#allocation131_spill] sm:$0xff] }
 0x3bb   :  { %v3715_v53 = vsub.f32 %v10678_v37, %v3459_v26  ;;  %v3716_v51 = vsub.f32 %v10679_v27, %v3460_v34  ;;  %v3702_v57 = vsub.f32 %v10680_v41, %v3446_v15  ;;  %v3461_v2 = vmax.f32 %v2901_v24, %v7353_v49  ;;  %3076 = vperm.xlu1 %5540, %v5759_v60   ;;  %v5762_v27 = vld [vmem:[%s9973_s1 + $0x7b8] sm:$0xff]  ;;  %v10689_v41 = vld [vmem:[#allocation13_spill] sm:$0xff] }
 0x3bc   :  { %v3703_v44 = vsub.f32 %v10681_v56, %v3447_v31  ;;  %v3704_v25 = vsub.f32 %v10682_v4, %v3448_v45  ;;  %v3462_v59 = vmax.f32 %v2905_v11, %v7353_v49  ;;  %3080 = vperm.xlu0 %5539, %v5760_v9   ;;  %v5421_v47 = vpack.c.bf16 %v3956_v6, %v3955_v29  ;;  %v10686_v6 = vld [vmem:[#allocation32_spill] sm:$0xff]  ;;  %v10692_v4 = vld [vmem:[#allocation29_spill] sm:$0xff]  ;;  %v10696_v9 = vld [vmem:[#allocation31_spill] sm:$0xff] }
 0x3bd   :  { %v3971_v17 = vmax.f32 %v3715_v53, 0.0  ;;  %v3972_v52 = vmax.f32 %v3716_v51, 0.0  ;;  %v3449_v12 = vmax.f32 %v9011_v35, %v7353_v49  ;;  %5416 = vmatprep.subr.bf16.mxu0 %v5415_v48  ;;  %v9219_v15 = vsub.f32 %v434_v20, %v562_v22  ;;  %v2909_v22 = vpop.permute.xlu1 %2908  ;;  %v5761_v53 = vld [vmem:[%s9973_s1 + $0x7b0] sm:$0xff]  ;;  %v10687_v51 = vld [vmem:[#allocation120_spill] sm:$0xff] }
 0x3be   :  { %v9223_v31 = vrot.slane %v9137_v28, %v7496_v46  ;;  %v3957_v45 = vmax.f32 %v3701_v7, 0.0  ;;  %v10683_v3 = vmin.f32 %v10646_v21, %v7366_v62  ;;  %v10685_v26 = vmin.f32 %v10684_v5, %v7366_v62  ;;  %5418 = vmatpush3.bf16.msra.mxu0 %v5417_v0  ;;  %v2913_v28 = vpop.permute.xlu0 %2912 }
 0x3bf   :  { %v5419_v23 = vpack.c.bf16 %v3972_v52, %v3971_v17  ;;  %v3958_v43 = vmax.f32 %v3702_v57, 0.0  ;;  %v3959_v35 = vmax.f32 %v3703_v44, 0.0  ;;  %v3960_v29 = vmax.f32 %v3704_v25, 0.0  ;;  %3268 = vperm.xlu1 %5540, %v5761_v53   ;;  %v10690_v57 = vld [vmem:[#allocation28_spill] sm:$0xff]  ;;  %v10694_v52 = vld [vmem:[#allocation133_spill] sm:$0xff] }
 0x3c0   :  { %v3717_v36 = vsub.f32 %v10683_v3, %v3461_v2  ;;  %v3718_v34 = vsub.f32 %v10685_v26, %v3462_v59  ;;  %v3450_v20 = vmax.f32 %v10686_v6, %v7353_v49  ;;  %v3463_v37 = vmax.f32 %v2909_v22, %v7353_v49  ;;  %3272 = vperm.xlu0 %5539, %v5762_v27   ;;  %v10691_v44 = vld [vmem:[#allocation12_spill] sm:$0xff] }
 0x3c1   :  { %v3464_v21 = vmax.f32 %v2913_v28, %v7353_v49  ;;  %v10688_v48 = vmin.f32 %v10687_v51, %v7366_v62  ;;  %5420 = vmatprep.subr.bf16.mxu0 %v5419_v23  ;;  %v451_v56 = vmin.f32 %v10690_v57, %v10689_v41  ;;  %v579_v25 = vmax.f32 %v10692_v4, %v10691_v44  ;;  %v10699_v53 = vld [vmem:[#allocation136_spill] sm:$0xff] }
 0x3c2   :  { %v3973_v13 = vmax.f32 %v3717_v36, 0.0  ;;  %v3974_v7 = vmax.f32 %v3718_v34, 0.0  ;;  %v453_v24 = vmin.f32 %v8998_v38, %v10689_v41  ;;  %v10693_v11 = vmin.f32 %v10651_v32, %v7366_v62  ;;  %5422 = vmatpush3.bf16.msra.mxu0 %v5421_v47  ;;  %v10697_v36 = vld [vmem:[#allocation119_spill] sm:$0xff]  ;;  %v2917_v34 = vpop.permute.xlu1 %2916  ;;  %v2921_v23 = vpop.permute.xlu0 %2920 }
 0x3c3   :  { %v9244_v0 = vsub.f32 %v10688_v48, %v3449_v12  ;;  %v10695_v2 = vmin.f32 %v10694_v52, %v7366_v62  ;;  %v581_v12 = vmax.f32 %v10696_v9, %v10691_v44  ;;  %v5425_v3 = vpack.c.bf16 %v3958_v43, %v3957_v45  ;;  %v5763_v45 = vld [vmem:[%s9973_s1 + $0x730] sm:$0xff]  ;;  %v5764_v43 = vld [vmem:[%s9973_s1 + $0x738] sm:$0xff] }
 0x3c4   :  { %v3719_v17 = vsub.f32 %v10693_v11, %v3463_v37  ;;  %v5423_v60 = vpack.c.bf16 %v3974_v7, %v3973_v13  ;;  %v10698_v5 = vmin.f32 %v10697_v36, %v7366_v62  ;;  %v450_v32 = vmin.f32 %v9159_v8, %v10689_v41  ;;  %3204 = vperm.xlu1 %5540, %v5763_v45   ;;  %v10701_v48 = vld [vmem:[#allocation135_spill] sm:$0xff] }
 0x3c5   :  { %v3720_v59 = vsub.f32 %v10695_v2, %v3464_v21  ;;  %v578_v6 = vmax.f32 %v9163_v10, %v10691_v44  ;;  %v3465_v47 = vmax.f32 %v2917_v34, %v7353_v49  ;;  %v3466_v13 = vmax.f32 %v2921_v23, %v7353_v49  ;;  %3208 = vperm.xlu0 %5539, %v5764_v43   ;;  %v10703_v2 = vld [vmem:[#allocation15_spill] sm:$0xff] }
 0x3c6   :  { %v3706_v26 = vsub.f32 %v10698_v5, %v3450_v20  ;;  %v3975_v22 = vmax.f32 %v3719_v17, 0.0  ;;  %v5429_v20 = vpack.c.bf16 %v3960_v29, %v3959_v35  ;;  %v3961_v7 = vmax.f32 %v9244_v0, 0.0  ;;  %5424 = vmatprep.subr.bf16.mxu0 %v5423_v60  ;;  %v2925_v35 = vpop.permute.xlu1 %2924  ;;  %v2929_v29 = vpop.permute.xlu0 %2928 }
 0x3c7   :  { %v3976_v28 = vmax.f32 %v3720_v59, 0.0  ;;  %v643_v37 = vsub.f32 %v451_v56, %v579_v25  ;;  %v645_v21 = vsub.f32 %v453_v24, %v581_v12  ;;  %v10700_v27 = vmin.f32 %v10699_v53, %v7366_v62  ;;  %5426 = vmatpush3.bf16.msra.mxu0 %v5425_v3  ;;  %v10704_v56 = vld [vmem:[#allocation14_spill] sm:$0xff]  ;;  %v5765_v3 = vld [vmem:[%s9973_s1 + $0x6c0] sm:$0xff] }
 0x3c8   :  { %v10702_v11 = vmin.f32 %v10701_v48, %v7366_v62  ;;  %v467_v59 = vmin.f32 %v10690_v57, %v10703_v2  ;;  %v3962_v36 = vmax.f32 %v3706_v26, 0.0  ;;  %v642_v0 = vsub.f32 %v450_v32, %v578_v6  ;;  %3148 = vperm.xlu1 %5540, %v5765_v3   ;;  %v5766_v26 = vld [vmem:[%s9973_s1 + $0x6c8] sm:$0xff] }
 0x3c9   :  { %v3721_v51 = vsub.f32 %v10700_v27, %v3465_v47  ;;  %v5427_v52 = vpack.c.bf16 %v3976_v28, %v3975_v22  ;;  %v709_v60 = vmax.f32 %v645_v21, 0.0  ;;  %v595_v25 = vmax.f32 %v10692_v4, %v10704_v56  ;;  %3152 = vperm.xlu0 %5539, %v5766_v26   ;;  %v10705_v28 = vld [vmem:[#allocation156_spill] sm:$0xff]  ;;  %v10706_v21 = vld [vmem:[#allocation157_spill] sm:$0xff] }
 0x3ca   :  { %v3722_v17 = vsub.f32 %v10702_v11, %v3466_v13  ;;  %v3467_v5 = vmax.f32 %v2925_v35, %v7353_v49  ;;  %v3468_v34 = vmax.f32 %v2929_v29, %v7353_v49  ;;  %v690_v23 = vmax.f32 %v9219_v15, 0.0  ;;  %v2933_v15 = vpop.permute.xlu1 %2932  ;;  %v2937_v27 = vpop.permute.xlu0 %2936  ;;  %v5767_v35 = vld [vmem:[%s9973_s1 + $0x640] sm:$0xff]  ;;  %v5768_v29 = vld [vmem:[%s9973_s1 + $0x648] sm:$0xff] }
 0x3cb   :  { %v3977_v24 = vmax.f32 %v3721_v51, 0.0  ;;  %5428 = vmatprep.subr.bf16.mxu0 %v5427_v52  ;;  %v9296_v32 = vmul.f32 %v9050_v58, %v709_v60  ;;  %v659_v6 = vsub.f32 %v467_v59, %v595_v25  ;;  %v466_v22 = vmin.f32 %v9159_v8, %v10703_v2 }
 0x3cc   :  { %v3978_v12 = vmax.f32 %v3722_v17, 0.0  ;;  %v2205_v47 = vmin.f32 %v10705_v28, %v7366_v62  ;;  %5430 = vmatpush3.bf16.msra.mxu0 %v5429_v20  ;;  %v707_v45 = vmax.f32 %v643_v37, 0.0  ;;  %v594_v43 = vmax.f32 %v9163_v10, %v10704_v56  ;;  %v10707_v37 = vld [vmem:[#allocation137_spill] sm:$0xff]  ;;  %3084 = vperm.xlu1 %5540, %v5767_v35  }
 0x3cd   :  { %v2208_v53 = vmin.f32 %v10706_v21, %v7366_v62  ;;  %v706_v51 = vmax.f32 %v642_v0, 0.0  ;;  %v469_v48 = vmin.f32 %v8998_v38, %v10703_v2  ;;  %v597_v11 = vmax.f32 %v10696_v9, %v10704_v56  ;;  %3088 = vperm.xlu0 %5539, %v5768_v29   ;;  %v10709_v0 = vld [vmem:[#allocation158_spill] sm:$0xff] }
 0x3ce   :  { %v5431_v13 = vpack.c.bf16 %v3978_v12, %v3977_v24  ;;  %v5433_v17 = vpack.c.bf16 %v3962_v36, %v3961_v7  ;;  %v3723_v20 = vsub.f32 %v2187_v61, %v3467_v5  ;;  %v10708_v52 = vmin.f32 %v10707_v37, %v7366_v62  ;;  %v10710_v24 = vld [vmem:[#allocation30_spill] sm:$0xff]  ;;  %v10711_v5 = vld [vmem:[#allocation19_spill] sm:$0xff]  ;;  %v2989_v26 = vpop.permute.xlu1 %2988 }
 0x3cf   :  { %v4147_v7 = vmul.f32 %v9223_v31, %v690_v23  ;;  %v723_v36 = vmax.f32 %v659_v6, 0.0  ;;  %v658_v18 = vsub.f32 %v466_v22, %v594_v43  ;;  %v661_v61 = vsub.f32 %v469_v48, %v597_v11  ;;  %v10712_v22 = vld [vmem:[#allocation18_spill] sm:$0xff] }
 0x3d0   :  { %v3724_v59 = vsub.f32 %v10708_v52, %v3468_v34  ;;  %5432 = vmatprep.subr.bf16.mxu0 %v5431_v13  ;;  %v2207_v60 = vmin.f32 %v10709_v0, %v7366_v62  ;;  %v3469_v25 = vmax.f32 %v2933_v15, %v7353_v49  ;;  %v4164_v12 = vmul.f32 %v10710_v24, %v707_v45  ;;  %v2993_v13 = vpop.permute.xlu0 %2992  ;;  %v5770_v45 = vld [vmem:[%s9973_s1 + $0x7c8] sm:$0xff] }
 0x3d1   :  { %5434 = vmatpush3.bf16.msra.mxu0 %v5433_v17  ;;  %v483_v34 = vmin.f32 %v10690_v57, %v10711_v5  ;;  %v3470_v3 = vmax.f32 %v2937_v27, %v7353_v49  ;;  %v4163_v23 = vmul.f32 %v9223_v31, %v706_v51  ;;  %v725_v6 = vmax.f32 %v661_v61, 0.0  ;;  %v5769_v57 = vld [vmem:[%s9973_s1 + $0x7c0] sm:$0xff]  ;;  %3280 = vperm.xlu0 %5539, %v5770_v45  }
 0x3d2   :  { %v611_v43 = vmax.f32 %v10692_v4, %v10712_v22  ;;  %v3979_v48 = vmax.f32 %v3723_v20, 0.0  ;;  %v3980_v11 = vmax.f32 %v3724_v59, 0.0  ;;  %v3483_v15 = vmax.f32 %v2989_v26, %v7353_v49  ;;  %3276 = vperm.xlu1 %5540, %v5769_v57  }
 0x3d3   :  { %v3484_v17 = vmax.f32 %v2993_v13, %v7353_v49  ;;  %v4180_v27 = vmul.f32 %v10710_v24, %v723_v36  ;;  %v722_v4 = vmax.f32 %v658_v18, 0.0  ;;  %v9343_v51 = vmul.f32 %v9050_v58, %v725_v6  ;;  %v2997_v36 = vpop.permute.xlu1 %2996 }
 0x3d4   :  { %4612 = vmatmul.mubr.f32.vlgmr.msra.gmra.mrb[16].mxu0 %v4147_v7  ;;  %v675_v20 = vsub.f32 %v483_v34, %v611_v43  ;;  %v3725_v37 = vsub.f32 %v2189_v1, %v3469_v25  ;;  %v3739_v52 = vsub.f32 %v2203_v63, %v3483_v15  ;;  %v482_v35 = vmin.f32 %v9159_v8, %v10711_v5  ;;  %v3001_v18 = vpop.permute.xlu0 %3000  ;;  %v5772_v8 = vld [vmem:[%s9973_s1 + $0x748] sm:$0xff] }
 0x3d5   :  { %v3740_v59 = vsub.f32 %v2204_v16, %v3484_v17  ;;  %4616 = vmatprep.mubr.f32.mxu0 %v4164_v12  ;;  %v10713_v29 = vmin.f32 %v10662_v50, %v7366_v62  ;;  %v610_v1 = vmax.f32 %v9163_v10, %v10712_v22  ;;  %v485_v55 = vmin.f32 %v8998_v38, %v10711_v5  ;;  %v5771_v50 = vld [vmem:[%s9973_s1 + $0x740] sm:$0xff] }
 0x3d6   :  { %v739_v19 = vmax.f32 %v675_v20, 0.0  ;;  %v3995_v63 = vmax.f32 %v3739_v52, 0.0  ;;  %v3485_v16 = vmax.f32 %v2997_v36, %v7353_v49  ;;  %v3486_v61 = vmax.f32 %v3001_v18, %v7353_v49  ;;  %3212 = vperm.xlu1 %5540, %v5771_v50   ;;  %3216 = vperm.xlu0 %5539, %v5772_v8   ;;  %v10714_v20 = vld [vmem:[#allocation141_spill] sm:$0xff]  ;;  %v10715_v52 = vld [vmem:[#allocation142_spill] sm:$0xff]  ;;  %v5775_v36 = vld [vmem:[%s9973_s1 + $0x650] sm:$0xff] }
 0x3d7   :  { %v3726_v7 = vsub.f32 %v10713_v29, %v3470_v3  ;;  %v3996_v30 = vmax.f32 %v3740_v59, 0.0  ;;  %v5437_v10 = vpack.c.bf16 %v3980_v11, %v3979_v48  ;;  %v4179_v38 = vmul.f32 %v9223_v31, %v722_v4  ;;  %v3005_v43 = vpop.permute.xlu1 %3004  ;;  %v5776_v18 = vld [vmem:[%s9973_s1 + $0x658] sm:$0xff] }
 0x3d8   :  { %4617 = vmatmul.mubr.f32.gmra.mrb[18].mxu0 %v4163_v23  ;;  %v674_v25 = vsub.f32 %v482_v35, %v610_v1  ;;  %v613_v12 = vmax.f32 %v10696_v9, %v10712_v22  ;;  %v3741_v34 = vsub.f32 %v2205_v47, %v3485_v16  ;;  %v3742_v3 = vsub.f32 %v2206_v54, %v3486_v61  ;;  %v3009_v48 = vpop.permute.xlu0 %3008  ;;  %v5774_v54 = vld [vmem:[%s9973_s1 + $0x6d8] sm:$0xff] }
 0x3d9   :  { %v5435_v26 = vpack.c.bf16 %v3996_v30, %v3995_v63  ;;  %4621 = vmatprep.mubr.f32.mxu0 %v4180_v27  ;;  %v4196_v13 = vmul.f32 %v10710_v24, %v739_v19  ;;  %v3981_v6 = vmax.f32 %v3725_v37, 0.0  ;;  %v3982_v23 = vmax.f32 %v3726_v7, 0.0  ;;  %v10717_v30 = vld [vmem:[#allocation160_spill] sm:$0xff] }
 0x3da   :  { %v738_v11 = vmax.f32 %v674_v25, 0.0  ;;  %v677_v15 = vsub.f32 %v485_v55, %v613_v12  ;;  %v3997_v17 = vmax.f32 %v3741_v34, 0.0  ;;  %v3998_v9 = vmax.f32 %v3742_v3, 0.0  ;;  %3156 = vperm.xlu1 %5540, %v5773_v42   ;;  %3160 = vperm.xlu0 %5539, %v5774_v54   ;;  %v10716_v55 = vld [vmem:[#allocation159_spill] sm:$0xff]  ;;  %v5778_v34 = vld [vmem:[%s9973_s1 + $0x7d8] sm:$0xff] }
 0x3db   :  { %v3487_v57 = vmax.f32 %v3005_v43, %v7353_v49  ;;  %v3488_v28 = vmax.f32 %v3009_v48, %v7353_v49  ;;  %5436 = vmatprep.subr.bf16.mxu1 %v5435_v26  ;;  %v2192_v37 = vmin.f32 %v10714_v20, %v7366_v62  ;;  %v2191_v59 = vmin.f32 %v10715_v52, %v7366_v62  ;;  %v5777_v12 = vld [vmem:[%s9973_s1 + $0x7d0] sm:$0xff]  ;;  %v10719_v43 = vld [vmem:[#allocation144_spill] sm:$0xff]  ;;  %v10721_v20 = vld [vmem:[#allocation162_spill] sm:$0xff] }
 0x3dc   :  { %4622 = vmatmul.mubr.f32.gmra.mrb[20].mxu0 %v4179_v38  ;;  %v4195_v47 = vmul.f32 %v9223_v31, %v738_v11  ;;  %v741_v24 = vmax.f32 %v677_v15, 0.0  ;;  %5438 = vmatpush3.bf16.msra.mxu1 %v5437_v10  ;;  %v5439_v4 = vpack.c.bf16 %v3998_v9, %v3997_v17  ;;  %v5441_v35 = vpack.c.bf16 %v3982_v23, %v3981_v6  ;;  %v2941_v31 = vpop.permute.xlu1 %2940  ;;  %v2945_v29 = vpop.permute.xlu0 %2944  ;;  %v10718_v6 = vld [vmem:[#allocation143_spill] sm:$0xff]  ;;  %v5780_v54 = vld [vmem:[%s9973_s1 + $0x758] sm:$0xff] }
 0x3dd   :  { %v3743_v45 = vsub.f32 %v2207_v60, %v3487_v57  ;;  %v3744_v27 = vsub.f32 %v2208_v53, %v3488_v28  ;;  %4626 = vmatprep.mubr.f32.mxu0 %v4196_v13  ;;  %v3471_v21 = vmax.f32 %v2941_v31, %v7353_v49  ;;  %v3472_v53 = vmax.f32 %v2945_v29, %v7353_v49  ;;  %v5779_v42 = vld [vmem:[%s9973_s1 + $0x750] sm:$0xff] }
 0x3de   :  { %v9401_v7 = vmul.f32 %v9050_v58, %v741_v24  ;;  %3092 = vperm.xlu1 %5540, %v5775_v36   ;;  %3096 = vperm.xlu0 %5539, %v5776_v18   ;;  %v2210_v63 = vmin.f32 %v10716_v55, %v7366_v62  ;;  %v2209_v16 = vmin.f32 %v10717_v30, %v7366_v62 }
 0x3df   :  { %v3999_v0 = vmax.f32 %v3743_v45, 0.0  ;;  %v4000_v60 = vmax.f32 %v3744_v27, 0.0  ;;  %5440 = vmatprep.subr.bf16.mxu1 %v5439_v4  ;;  %v3727_v58 = vsub.f32 %v2191_v59, %v3471_v21  ;;  %v3728_v19 = vsub.f32 %v2192_v37, %v3472_v53  ;;  %v10720_v27 = vld [vmem:[#allocation161_spill] sm:$0xff]  ;;  %v5782_v21 = vld [vmem:[%s9973_s1 + $0x6e8] sm:$0xff] }
 0x3e0   :  { %4627 = vmatmul.mubr.f32.gmra.mrb[22].mxu0 %v4195_v47  ;;  %5442 = vmatpush3.bf16.msra.mxu1 %v5441_v35  ;;  %v3013_v61 = vpop.permute.xlu1 %3012  ;;  %v3017_v50 = vpop.permute.xlu0 %3016  ;;  %v2194_v23 = vmin.f32 %v10718_v6, %v7366_v62  ;;  %v2193_v48 = vmin.f32 %v10719_v43, %v7366_v62  ;;  %v2212_v4 = vmin.f32 %v10720_v27, %v7366_v62  ;;  %v10727_v27 = vld [vmem:[#allocation148_spill] sm:$0xff] }
 0x3e1   :  { %v5443_v1 = vpack.c.bf16 %v4000_v60, %v3999_v0  ;;  %v3983_v8 = vmax.f32 %v3727_v58, 0.0  ;;  %v3984_v10 = vmax.f32 %v3728_v19, 0.0  ;;  %v3489_v38 = vmax.f32 %v3013_v61, %v7353_v49  ;;  %v5781_v60 = vld [vmem:[%s9973_s1 + $0x6e0] sm:$0xff] }
 0x3e2   :  { %v3490_v25 = vmax.f32 %v3017_v50, %v7353_v49  ;;  %3284 = vperm.xlu1 %5540, %v5777_v12   ;;  %3288 = vperm.xlu0 %5539, %v5778_v34   ;;  %v2211_v37 = vmin.f32 %v10721_v20, %v7366_v62  ;;  %v10722_v58 = vld [vmem:[#allocation145_spill] sm:$0xff] }
 0x3e3   :  { %5444 = vmatprep.subr.bf16.mxu1 %v5443_v1  ;;  %v5445_v3 = vpack.c.bf16 %v3984_v10, %v3983_v8  ;;  %v3745_v26 = vsub.f32 %v2209_v16, %v3489_v38  ;;  %v2196_v19 = vmin.f32 %v10722_v58, %v7366_v62  ;;  %v10723_v1 = vld [vmem:[#allocation146_spill] sm:$0xff]  ;;  %v5783_v10 = vld [vmem:[%s9973_s1 + $0x660] sm:$0xff] }
 0x3e4   :  { %v3746_v13 = vsub.f32 %v2210_v63, %v3490_v25  ;;  %v2949_v11 = vpop.permute.xlu1 %2948  ;;  %v2953_v15 = vpop.permute.xlu0 %2952  ;;  %v2195_v55 = vmin.f32 %v10723_v1, %v7366_v62  ;;  %v5784_v38 = vld [vmem:[%s9973_s1 + $0x668] sm:$0xff]  ;;  %v10728_v58 = vld [vmem:[#allocation165_spill] sm:$0xff] }
 0x3e5   :  { %v4001_v17 = vmax.f32 %v3745_v26, 0.0  ;;  %v3473_v57 = vmax.f32 %v2949_v11, %v7353_v49  ;;  %v3474_v28 = vmax.f32 %v2953_v15, %v7353_v49  ;;  %5446 = vmatpush3.bf16.msra.mxu1 %v5445_v3  ;;  %v10724_v3 = vld [vmem:[#allocation163_spill] sm:$0xff]  ;;  %v10729_v1 = vld [vmem:[#allocation166_spill] sm:$0xff] }
 0x3e6   :  { %v4002_v9 = vmax.f32 %v3746_v13, 0.0  ;;  %3220 = vperm.xlu1 %5540, %v5779_v42   ;;  %3224 = vperm.xlu0 %5539, %v5780_v54   ;;  %v2214_v26 = vmin.f32 %v10724_v3, %v7366_v62  ;;  %v10725_v13 = vld [vmem:[#allocation164_spill] sm:$0xff] }
 0x3e7   :  { %v3729_v47 = vsub.f32 %v2193_v48, %v3473_v57  ;;  %v3730_v24 = vsub.f32 %v2194_v23, %v3474_v28  ;;  %v2213_v6 = vmin.f32 %v10725_v13, %v7366_v62  ;;  %v5786_v57 = vld [vmem:[%s9973_s1 + $0x7e8] sm:$0xff]  ;;  %v9474_v28 = vld [vmem:[%s9972_s0 + $0x50] sm:$0xff] }
 0x3e8   :  { %v5447_v45 = vpack.c.bf16 %v4002_v9, %v4001_v17  ;;  %v3021_v52 = vpop.permute.xlu1 %3020  ;;  %v3025_v59 = vpop.permute.xlu0 %3024  ;;  %v5785_v9 = vld [vmem:[%s9973_s1 + $0x7e0] sm:$0xff] }
 0x3e9   :  { %v3985_v35 = vmax.f32 %v3729_v47, 0.0  ;;  %v3986_v31 = vmax.f32 %v3730_v24, 0.0  ;;  %v3491_v29 = vmax.f32 %v3021_v52, %v7353_v49  ;;  %v3492_v0 = vmax.f32 %v3025_v59, %v7353_v49  ;;  %v10726_v24 = vld [vmem:[#allocation147_spill] sm:$0xff] }
 0x3ea   :  { %3164 = vperm.xlu1 %5540, %v5781_v60   ;;  %3168 = vperm.xlu0 %5539, %v5782_v21   ;;  %v9482_v52 = vrot.slane %v9474_v28, %v7452_v40  ;;  %v9486_v59 = vrot.slane %v9474_v28, %v7455_v33  ;;  %v5787_v60 = vld [vmem:[%s9973_s1 + $0x760] sm:$0xff]  ;;  %v5788_v21 = vld [vmem:[%s9973_s1 + $0x768] sm:$0xff] }
 0x3eb   :  { %5448 = vmatprep.subr.bf16.mxu1 %v5447_v45  ;;  %v5449_v53 = vpack.c.bf16 %v3986_v31, %v3985_v35  ;;  %v3747_v36 = vsub.f32 %v2211_v37, %v3491_v29  ;;  %v3748_v18 = vsub.f32 %v2212_v4, %v3492_v0  ;;  %v2198_v45 = vmin.f32 %v10726_v24, %v7366_v62 }
 0x3ec   :  { %v2957_v63 = vpop.permute.xlu1 %2956  ;;  %v2961_v30 = vpop.permute.xlu0 %2960  ;;  %v2197_v4 = vmin.f32 %v10727_v27, %v7366_v62 }
 0x3ed   :  { %v4003_v16 = vmax.f32 %v3747_v36, 0.0  ;;  %v4004_v61 = vmax.f32 %v3748_v18, 0.0  ;;  %v3475_v50 = vmax.f32 %v2957_v63, %v7353_v49  ;;  %v3476_v8 = vmax.f32 %v2961_v30, %v7353_v49  ;;  %5450 = vmatpush3.bf16.msra.mxu1 %v5449_v53 }
 0x3ee   :  { %3100 = vperm.xlu1 %5540, %v5783_v10   ;;  %3104 = vperm.xlu0 %5539, %v5784_v38  }
 0x3ef   :  { %v3731_v25 = vsub.f32 %v2195_v55, %v3475_v50  ;;  %v3732_v12 = vsub.f32 %v2196_v19, %v3476_v8  ;;  %v5451_v34 = vpack.c.bf16 %v4004_v61, %v4003_v16  ;;  %v2216_v19 = vmin.f32 %v10728_v58, %v7366_v62 }
 0x3f0   :  { %v3029_v23 = vpop.permute.xlu1 %3028  ;;  %v3033_v43 = vpop.permute.xlu0 %3032  ;;  %v2215_v55 = vmin.f32 %v10729_v1, %v7366_v62  ;;  %v436_v16 = vmin.f32 %v9482_v52, %v7467_v14  ;;  %v564_v61 = vmax.f32 %v9486_v59, %v7449_v39 }
 0x3f1   :  { %v3987_v48 = vmax.f32 %v3731_v25, 0.0  ;;  %v3988_v11 = vmax.f32 %v3732_v12, 0.0  ;;  %v3493_v15 = vmax.f32 %v3029_v23, %v7353_v49  ;;  %v3494_v17 = vmax.f32 %v3033_v43, %v7353_v49  ;;  %5452 = vmatprep.subr.bf16.mxu1 %v5451_v34  ;;  %v5789_v25 = vld [vmem:[%s9973_s1 + $0x6f0] sm:$0xff]  ;;  %v5790_v12 = vld [vmem:[%s9973_s1 + $0x6f8] sm:$0xff]  ;;  %v10730_v34 = vld [vmem:[#allocation149_spill] sm:$0xff] }
 0x3f2   :  { %3292 = vperm.xlu1 %5540, %v5785_v9   ;;  %3296 = vperm.xlu0 %5539, %v5786_v57   ;;  %v2200_v3 = vmin.f32 %v10730_v34, %v7366_v62  ;;  %v10734_v9 = vld [vmem:[#allocation167_spill] sm:$0xff]  ;;  %v5794_v34 = vld [vmem:[%s9973_s1 + $0x7f8] sm:$0xff] }
 0x3f3   :  { %v5453_v42 = vpack.c.bf16 %v3988_v11, %v3987_v48  ;;  %v3749_v54 = vsub.f32 %v2213_v6, %v3493_v15  ;;  %v3750_v47 = vsub.f32 %v2214_v26, %v3494_v17  ;;  %v10731_v26 = vld [vmem:[#allocation150_spill] sm:$0xff]  ;;  %v10732_v48 = vld [vmem:[#allocation151_spill] sm:$0xff]  ;;  %v10733_v15 = vld [vmem:[#allocation152_spill] sm:$0xff]  ;;  %v2218_v57 = vmin.f32 %v10734_v9, %v7366_v62 }
 0x3f4   :  { %v2965_v20 = vpop.permute.xlu1 %2964  ;;  %v2969_v37 = vpop.permute.xlu0 %2968  ;;  %v2199_v13 = vmin.f32 %v10731_v26, %v7366_v62  ;;  %v2202_v11 = vmin.f32 %v10732_v48, %v7366_v62  ;;  %v2201_v17 = vmin.f32 %v10733_v15, %v7366_v62  ;;  %v9566_v26 = vrot.slane %v9474_v28, %v7496_v46 }
 0x3f5   :  { %v4005_v35 = vmax.f32 %v3749_v54, 0.0  ;;  %v4006_v31 = vmax.f32 %v3750_v47, 0.0  ;;  %v3477_v29 = vmax.f32 %v2965_v20, %v7353_v49  ;;  %v3478_v0 = vmax.f32 %v2969_v37, %v7353_v49  ;;  %5454 = vmatpush3.bf16.msra.mxu1 %v5453_v42  ;;  %v5791_v20 = vld [vmem:[%s9973_s1 + $0x670] sm:$0xff]  ;;  %v5792_v37 = vld [vmem:[%s9973_s1 + $0x678] sm:$0xff] }
 0x3f6   :  { %3228 = vperm.xlu1 %5540, %v5787_v60   ;;  %3232 = vperm.xlu0 %5539, %v5788_v21   ;;  %v9522_v47 = vsub.f32 %v436_v16, %v564_v61  ;;  %v10735_v21 = vld [vmem:[#allocation168_spill] sm:$0xff] }
 0x3f7   :  { %v3733_v53 = vsub.f32 %v2197_v4, %v3477_v29  ;;  %v3734_v36 = vsub.f32 %v2198_v45, %v3478_v0  ;;  %v5455_v18 = vpack.c.bf16 %v4006_v31, %v4005_v35  ;;  %v77_v35 = vld [vmem:[%s9972_s0 + $0x68] sm:$0xff]  ;;  %v452_v31 = vmin.f32 %v9482_v52, %v10689_v41 }
 0x3f8   :  { %v3037_v63 = vpop.permute.xlu1 %3036  ;;  %v3041_v30 = vpop.permute.xlu0 %3040  ;;  %v580_v29 = vmax.f32 %v9486_v59, %v10691_v44  ;;  %v9540_v0 = vrot.slane %v77_v35, %v7452_v40  ;;  %v9543_v60 = vrot.slane %v77_v35, %v7455_v33 }
 0x3f9   :  { %v3989_v50 = vmax.f32 %v3733_v53, 0.0  ;;  %v3990_v8 = vmax.f32 %v3734_v36, 0.0  ;;  %v3495_v10 = vmax.f32 %v3037_v63, %v7353_v49  ;;  %v3496_v38 = vmax.f32 %v3041_v30, %v7353_v49  ;;  %5456 = vmatprep.subr.bf16.mxu1 %v5455_v18 }
 0x3fa   :  { %3172 = vperm.xlu1 %5540, %v5789_v25   ;;  %3176 = vperm.xlu0 %5539, %v5790_v12   ;;  %v2217_v53 = vmin.f32 %v10735_v21, %v7366_v62  ;;  %v439_v61 = vmin.f32 %v9540_v0, %v7467_v14  ;;  %v5793_v12 = vld [vmem:[%s9973_s1 + $0x7f0] sm:$0xff]  ;;  %v455_v28 = vmin.f32 %v9540_v0, %v10689_v41 }
 0x3fb   :  { %v5457_v6 = vpack.c.bf16 %v3990_v8, %v3989_v50  ;;  %v3751_v23 = vsub.f32 %v2215_v55, %v3495_v10  ;;  %v3752_v43 = vsub.f32 %v2216_v19, %v3496_v38  ;;  %v10736_v19 = vld [vmem:[#allocation169_spill] sm:$0xff]  ;;  %v10737_v55 = vld [vmem:[#allocation170_spill] sm:$0xff]  ;;  %v567_v50 = vmax.f32 %v9543_v60, %v7449_v39 }
 0x3fc   :  { %v2973_v42 = vpop.permute.xlu1 %2972  ;;  %v2977_v54 = vpop.permute.xlu0 %2976  ;;  %v2220_v1 = vmin.f32 %v10736_v19, %v7366_v62  ;;  %v2219_v63 = vmin.f32 %v10737_v55, %v7366_v62  ;;  %v10742_v19 = vld [vmem:[#allocation201_spill] sm:$0xff] }
 0x3fd   :  { %v4007_v24 = vmax.f32 %v3751_v23, 0.0  ;;  %v4008_v45 = vmax.f32 %v3752_v43, 0.0  ;;  %v3479_v27 = vmax.f32 %v2973_v42, %v7353_v49  ;;  %v3480_v4 = vmax.f32 %v2977_v54, %v7353_v49  ;;  %5458 = vmatpush3.bf16.msra.mxu1 %v5457_v6 }
 0x3fe   :  { %3108 = vperm.xlu1 %5540, %v5791_v20   ;;  %3112 = vperm.xlu0 %5539, %v5792_v37   ;;  %v631_v6 = vsub.f32 %v439_v61, %v567_v50  ;;  %v468_v42 = vmin.f32 %v9482_v52, %v10703_v2 }
 0x3ff   :  { %v3735_v36 = vsub.f32 %v2199_v13, %v3479_v27  ;;  %v3736_v18 = vsub.f32 %v2200_v3, %v3480_v4  ;;  %v5459_v58 = vpack.c.bf16 %v4008_v45, %v4007_v24  ;;  %v692_v3 = vmax.f32 %v9522_v47, 0.0 }
 0x400   :  { %v3045_v30 = vpop.permute.xlu1 %3044  ;;  %v3049_v16 = vpop.permute.xlu0 %3048  ;;  %v9568_v13 = vsub.f32 %v452_v31, %v580_v29  ;;  %v596_v45 = vmax.f32 %v9486_v59, %v10704_v56  ;;  %v695_v27 = vmax.f32 %v631_v6, 0.0  ;;  %v9575_v47 = vrot.slane %v77_v35, %v7496_v46  ;;  %v5795_v31 = vld [vmem:[%s9973_s1 + $0x770] sm:$0xff]  ;;  %v5796_v29 = vld [vmem:[%s9973_s1 + $0x778] sm:$0xff]  ;;  %v10738_v35 = vld [vmem:[#allocation185_spill] sm:$0xff] }
 0x401   :  { %v3991_v8 = vmax.f32 %v3735_v36, 0.0  ;;  %v3992_v10 = vmax.f32 %v3736_v18, 0.0  ;;  %v3497_v38 = vmax.f32 %v3045_v30, %v7353_v49  ;;  %v3498_v25 = vmax.f32 %v3049_v16, %v7353_v49  ;;  %5460 = vmatprep.subr.bf16.mxu1 %v5459_v58 }
 0x402   :  { %3300 = vperm.xlu1 %5540, %v5793_v12   ;;  %3304 = vperm.xlu0 %5539, %v5794_v34   ;;  %v2236_v21 = vmin.f32 %v10738_v35, %v7366_v62  ;;  %v4152_v18 = vmul.f32 %v9575_v47, %v695_v27  ;;  %v583_v58 = vmax.f32 %v9543_v60, %v10691_v44  ;;  %v10740_v35 = vld [vmem:[#allocation217_spill] sm:$0xff] }
 0x403   :  { %v5461_v23 = vpack.c.bf16 %v3992_v10, %v3991_v8  ;;  %v3753_v43 = vsub.f32 %v2217_v53, %v3497_v38  ;;  %v3754_v9 = vsub.f32 %v2218_v57, %v3498_v25  ;;  %v10739_v53 = vld [vmem:[#allocation186_spill] sm:$0xff]  ;;  %v4149_v50 = vmul.f32 %v9566_v26, %v692_v3  ;;  %v9604_v8 = vld [vmem:[%s9972_s0 + $0x78] sm:$0xff] }
 0x404   :  { %v2981_v54 = vpop.permute.xlu1 %2980  ;;  %v2985_v24 = vpop.permute.xlu0 %2984  ;;  %v2235_v36 = vmin.f32 %v10739_v53, %v7366_v62  ;;  %v708_v25 = vmax.f32 %v9568_v13, 0.0  ;;  %v660_v12 = vsub.f32 %v468_v42, %v596_v45  ;;  %4781 = vmatprep.mubr.f32.mxu0 %v4152_v18  ;;  %v647_v15 = vsub.f32 %v455_v28, %v583_v58  ;;  %v10741_v53 = vld [vmem:[#allocation218_spill] sm:$0xff] }
 0x405   :  { %v4009_v4 = vmax.f32 %v3753_v43, 0.0  ;;  %v4010_v20 = vmax.f32 %v3754_v9, 0.0  ;;  %v3481_v37 = vmax.f32 %v2981_v54, %v7353_v49  ;;  %v3482_v57 = vmax.f32 %v2985_v24, %v7353_v49  ;;  %5462 = vmatpush3.bf16.msra.mxu1 %v5461_v23 }
 0x406   :  { %3236 = vperm.xlu1 %5540, %v5795_v31   ;;  %3240 = vperm.xlu0 %5539, %v5796_v29   ;;  %v484_v6 = vmin.f32 %v9482_v52, %v10711_v5  ;;  %v711_v23 = vmax.f32 %v647_v15, 0.0  ;;  %v599_v13 = vmax.f32 %v9543_v60, %v10704_v56  ;;  %v9617_v43 = vrot.slane %v9604_v8, %v7452_v40 }
 0x407   :  { %v3737_v30 = vsub.f32 %v2201_v17, %v3481_v37  ;;  %v3738_v16 = vsub.f32 %v2202_v11, %v3482_v57  ;;  %v5463_v61 = vpack.c.bf16 %v4010_v20, %v4009_v4  ;;  %v471_v17 = vmin.f32 %v9540_v0, %v10703_v2 }
 0x408   :  { %v3117_v10 = vpop.permute.xlu1 %3116  ;;  %v3121_v38 = vpop.permute.xlu0 %3120  ;;  %v9621_v24 = vrot.slane %v9604_v8, %v7455_v33  ;;  %v612_v52 = vmax.f32 %v9486_v59, %v10712_v22  ;;  %v9626_v28 = vmul.f32 %v9575_v47, %v711_v23  ;;  %v441_v20 = vmin.f32 %v9617_v43, %v7467_v14 }
 0x409   :  { %v3993_v48 = vmax.f32 %v3737_v30, 0.0  ;;  %v3994_v11 = vmax.f32 %v3738_v16, 0.0  ;;  %v3515_v34 = vmax.f32 %v3117_v10, %v7353_v49  ;;  %v3516_v3 = vmax.f32 %v3121_v38, %v7353_v49  ;;  %5464 = vmatprep.subr.bf16.mxu1 %v5463_v61 }
 0x40a   :  { %v663_v4 = vsub.f32 %v471_v17, %v599_v13  ;;  %v2267_v59 = vmin.f32 %v10741_v53, %v7366_v62  ;;  %v569_v18 = vmax.f32 %v9621_v24, %v7449_v39  ;;  %v724_v61 = vmax.f32 %v660_v12, 0.0 }
 0x40b   :  { %v5465_v9 = vpack.c.bf16 %v3994_v11, %v3993_v48  ;;  %v3771_v42 = vsub.f32 %v2235_v36, %v3515_v34  ;;  %v3772_v54 = vsub.f32 %v2236_v21, %v3516_v3  ;;  %v2268_v21 = vmin.f32 %v10740_v35, %v7366_v62 }
 0x40c   :  { %v3053_v45 = vpop.permute.xlu1 %3052  ;;  %v3057_v27 = vpop.permute.xlu0 %3056  ;;  %v727_v36 = vmax.f32 %v663_v4, 0.0  ;;  %v4165_v15 = vmul.f32 %v9566_v26, %v708_v25  ;;  %v676_v17 = vsub.f32 %v484_v6, %v612_v52  ;;  %v633_v11 = vsub.f32 %v441_v20, %v569_v18 }
 0x40d   :  { %v4027_v37 = vmax.f32 %v3771_v42, 0.0  ;;  %v4028_v57 = vmax.f32 %v3772_v54, 0.0  ;;  %v3499_v31 = vmax.f32 %v3053_v45, %v7353_v49  ;;  %v3500_v29 = vmax.f32 %v3057_v27, %v7353_v49  ;;  %5466 = vmatpush3.bf16.msra.mxu1 %v5465_v9 }
 0x40e   :  { %v9646_v48 = vmul.f32 %v9575_v47, %v727_v36  ;;  %v4181_v13 = vmul.f32 %v9566_v26, %v724_v61  ;;  %v740_v54 = vmax.f32 %v676_v17, 0.0  ;;  %v697_v45 = vmax.f32 %v633_v11, 0.0 }
 0x40f   :  { %v3755_v58 = vsub.f32 %v2219_v63, %v3499_v31  ;;  %v3756_v30 = vsub.f32 %v2220_v1, %v3500_v29  ;;  %v5467_v16 = vpack.c.bf16 %v4028_v57, %v4027_v37  ;;  %v2252_v1 = vmin.f32 %v10742_v19, %v7366_v62  ;;  %v10744_v57 = vld [vmem:[#allocation187_spill] sm:$0xff] }
 0x410   :  { %v3245_v10 = vpop.permute.xlu1 %3244  ;;  %v3249_v38 = vpop.permute.xlu0 %3248  ;;  %4697 = vmatmul.mubr.f32.vlgmr.msra.gmra.mrb[16].mxu1 %v4149_v50  ;;  %v10743_v50 = vld [vmem:[#allocation202_spill] sm:$0xff]  ;;  %v9658_v27 = vrot.slane %v9604_v8, %v7496_v46  ;;  %v2238_v31 = vmin.f32 %v10744_v57, %v7366_v62  ;;  %v615_v29 = vmax.f32 %v9543_v60, %v10712_v22  ;;  %v457_v8 = vmin.f32 %v9617_v43, %v10689_v41 }
 0x411   :  { %v4011_v34 = vmax.f32 %v3755_v58, 0.0  ;;  %v4012_v3 = vmax.f32 %v3756_v30, 0.0  ;;  %v3547_v55 = vmax.f32 %v3245_v10, %v7353_v49  ;;  %v3548_v63 = vmax.f32 %v3249_v38, %v7353_v49  ;;  %5468 = vmatprep.subr.bf16.mxu0 %v5467_v16  ;;  %4701 = vmatprep.mubr.f32.mxu1 %v9296_v32 }
 0x412   :  { %v2251_v25 = vmin.f32 %v10743_v50, %v7366_v62  ;;  %v487_v32 = vmin.f32 %v9540_v0, %v10711_v5  ;;  %v585_v53 = vmax.f32 %v9621_v24, %v10691_v44  ;;  %v4197_v58 = vmul.f32 %v9566_v26, %v740_v54 }
 0x413   :  { %v5469_v12 = vpack.c.bf16 %v4012_v3, %v4011_v34  ;;  %v3803_v6 = vsub.f32 %v2267_v59, %v3547_v55  ;;  %v3804_v23 = vsub.f32 %v2268_v21, %v3548_v63  ;;  %v10745_v59 = vld [vmem:[#allocation188_spill] sm:$0xff]  ;;  %v4154_v30 = vmul.f32 %v9658_v27, %v697_v45  ;;  %v10746_v55 = vld [vmem:[#allocation171_spill] sm:$0xff] }
 0x414   :  { %v3181_v9 = vpop.permute.xlu1 %3180  ;;  %v3185_v42 = vpop.permute.xlu0 %3184  ;;  %4702 = vmatmul.mubr.f32.gmra.mrb[18].mxu1 %v4165_v15  ;;  %v2237_v36 = vmin.f32 %v10745_v59, %v7366_v62  ;;  %v679_v60 = vsub.f32 %v487_v32, %v615_v29  ;;  %v649_v17 = vsub.f32 %v457_v8, %v585_v53  ;;  %v2222_v26 = vmin.f32 %v10746_v55, %v7366_v62  ;;  %v10747_v63 = vld [vmem:[#allocation172_spill] sm:$0xff] }
 0x415   :  { %v4059_v52 = vmax.f32 %v3803_v6, 0.0  ;;  %v4060_v4 = vmax.f32 %v3804_v23, 0.0  ;;  %v3531_v20 = vmax.f32 %v3181_v9, %v7353_v49  ;;  %v3532_v37 = vmax.f32 %v3185_v42, %v7353_v49  ;;  %5470 = vmatpush3.bf16.msra.mxu0 %v5469_v12  ;;  %4706 = vmatprep.mubr.f32.mxu1 %v9343_v51  ;;  %v4955_v9 = vpop.f32.mrb[0].mxu0  ;;  %v4999_v42 = vpop.f32.mrb[0].mxu1  ;;  %v10749_v8 = vld [vmem:[#allocation220_spill] sm:$0xff] }
 0x416   :  { %v743_v15 = vmax.f32 %v679_v60, 0.0  ;;  %v2221_v19 = vmin.f32 %v10747_v63, %v7366_v62  ;;  %v713_v12 = vmax.f32 %v649_v17, 0.0  ;;  %v473_v45 = vmin.f32 %v9617_v43, %v10703_v2  ;;  %v4956_v32 = vpop.f32.mrb[1].mxu0 }
 0x417   :  { %v3787_v35 = vsub.f32 %v2251_v25, %v3531_v20  ;;  %v3788_v0 = vsub.f32 %v2252_v1, %v3532_v37  ;;  %v5499_v21 = vpack.c.bf16 %v4060_v4, %v4059_v52  ;;  %v601_v37 = vmax.f32 %v9621_v24, %v10704_v56  ;;  %v4958_v57 = vpop.f32.mrb[2].mxu0 }
 0x418   :  { %v3125_v18 = vpop.permute.xlu1 %3124  ;;  %v3129_v51 = vpop.permute.xlu0 %3128  ;;  %4707 = vmatmul.mubr.f32.gmra.mrb[20].mxu1 %v4181_v13  ;;  %v9685_v25 = vmul.f32 %v9575_v47, %v743_v15  ;;  %v9690_v54 = vmul.f32 %v9658_v27, %v713_v12  ;;  %v489_v53 = vmin.f32 %v9617_v43, %v10711_v5  ;;  %v617_v60 = vmax.f32 %v9621_v24, %v10712_v22  ;;  %v10750_v43 = vld [vmem:[#allocation203_spill] sm:$0xff] }
 0x419   :  { %v4043_v16 = vmax.f32 %v3787_v35, 0.0  ;;  %v4044_v61 = vmax.f32 %v3788_v0, 0.0  ;;  %v3517_v10 = vmax.f32 %v3125_v18, %v7353_v49  ;;  %v3518_v38 = vmax.f32 %v3129_v51, %v7353_v49  ;;  %5500 = vmatprep.subr.bf16.mxu1 %v5499_v21  ;;  %4711 = vmatprep.mubr.f32.mxu1 %v9401_v7  ;;  %v5000_v47 = vpop.f32.mrb[1].mxu1 }
 0x41a   :  { %v2269_v35 = vmin.f32 %v10749_v8, %v7366_v62 }
 0x41b   :  { %v5501_v11 = vpack.c.bf16 %v4044_v61, %v4043_v16  ;;  %v3773_v34 = vsub.f32 %v2237_v36, %v3517_v10  ;;  %v3774_v3 = vsub.f32 %v2238_v31, %v3518_v38  ;;  %v10748_v31 = vld [vmem:[#allocation219_spill] sm:$0xff] }
 0x41c   :  { %v3061_v1 = vpop.permute.xlu1 %3060  ;;  %v3065_v50 = vpop.permute.xlu0 %3064  ;;  %4712 = vmatmul.mubr.f32.gmra.mrb[22].mxu1 %v4197_v58  ;;  %v2270_v29 = vmin.f32 %v10748_v31, %v7366_v62 }
 0x41d   :  { %v4029_v6 = vmax.f32 %v3773_v34, 0.0  ;;  %v4030_v7 = vmax.f32 %v3774_v3, 0.0  ;;  %v3501_v23 = vmax.f32 %v3061_v1, %v7353_v49  ;;  %v3502_v13 = vmax.f32 %v3065_v50, %v7353_v49  ;;  %5502 = vmatpush3.bf16.msra.mxu1 %v5501_v11  ;;  %4866 = vmatprep.mubr.f32.mxu1 %v4154_v30  ;;  %v4959_v58 = vpop.f32.mrb[3].mxu0  ;;  %v10751_v34 = vld [vmem:[#allocation204_spill] sm:$0xff] }
 0x41e   :  { %v665_v30 = vsub.f32 %v473_v45, %v601_v37  ;;  %v4961_v16 = vpop.f32.mrb[4].mxu0  ;;  %v2254_v11 = vmin.f32 %v10750_v43, %v7366_v62  ;;  %v2253_v3 = vmin.f32 %v10751_v34, %v7366_v62 }
 0x41f   :  { %v3757_v52 = vsub.f32 %v2221_v19, %v3501_v23  ;;  %v3758_v4 = vsub.f32 %v2222_v26, %v3502_v13  ;;  %v5471_v20 = vpack.c.bf16 %v4030_v7, %v4029_v6  ;;  %v4962_v17 = vpop.f32.mrb[5].mxu0  ;;  %v681_v19 = vsub.f32 %v489_v53, %v617_v60  ;;  %v10752_v23 = vld [vmem:[#allocation189_spill] sm:$0xff] }
 0x420   :  { %v3253_v0 = vpop.permute.xlu1 %3252  ;;  %v3257_v21 = vpop.permute.xlu0 %3256  ;;  %v729_v63 = vmax.f32 %v665_v30, 0.0  ;;  %v2240_v13 = vmin.f32 %v10752_v23, %v7366_v62  ;;  %v4963_v34 = vadd.f32 %v4962_v17, %v4961_v16 }
 0x421   :  { %v4013_v59 = vmax.f32 %v3757_v52, 0.0  ;;  %v4014_v36 = vmax.f32 %v3758_v4, 0.0  ;;  %v3549_v18 = vmax.f32 %v3253_v0, %v7353_v49  ;;  %v3550_v51 = vmax.f32 %v3257_v21, %v7353_v49  ;;  %5472 = vmatprep.subr.bf16.mxu0 %v5471_v20  ;;  %v5002_v15 = vpop.f32.mrb[2].mxu1  ;;  %v4964_v7 = vpop.f32.mrb[6].mxu0  ;;  %v10753_v0 = vld [vmem:[#allocation190_spill] sm:$0xff] }
 0x422   :  { %v5003_v6 = vpop.f32.mrb[3].mxu1  ;;  %v9715_v45 = vmul.f32 %v9658_v27, %v729_v63  ;;  %v745_v52 = vmax.f32 %v681_v19, 0.0  ;;  %v4965_v4 = vpop.f32.mrb[7].mxu0  ;;  %v2239_v21 = vmin.f32 %v10753_v0, %v7366_v62 }
 0x423   :  { %v5473_v61 = vpack.c.bf16 %v4014_v36, %v4013_v59  ;;  %v3805_v10 = vsub.f32 %v2269_v35, %v3549_v18  ;;  %v3806_v38 = vsub.f32 %v2270_v29, %v3550_v51  ;;  %v4957_v29 = vadd.f32 %v4956_v32, %v4955_v9  ;;  %v5043_v35 = vpop.f32.mrb[8].mxu0 }
 0x424   :  { %v3189_v55 = vpop.permute.xlu1 %3188  ;;  %v3193_v26 = vpop.permute.xlu0 %3192  ;;  %v9720_v36 = vmul.f32 %v9658_v27, %v745_v52  ;;  %v4960_v18 = vadd.f32 %v4959_v58, %v4958_v57  ;;  %v5001_v51 = vadd.f32 %v5000_v47, %v4999_v42  ;;  %v4966_v57 = vadd.f32 %v4965_v4, %v4964_v7  ;;  %v10755_v42 = vld [vmem:[#allocation174_spill] sm:$0xff] }
 0x425   :  { %v4061_v1 = vmax.f32 %v3805_v10, 0.0  ;;  %v4062_v50 = vmax.f32 %v3806_v38, 0.0  ;;  %v3533_v24 = vmax.f32 %v3189_v55, %v7353_v49  ;;  %v3534_v12 = vmax.f32 %v3193_v26, %v7353_v49  ;;  %5474 = vmatpush3.bf16.msra.mxu0 %v5473_v61  ;;  %v5005_v8 = vpop.f32.mrb[4].mxu1  ;;  %v5044_v32 = vpop.f32.mrb[9].mxu0  ;;  %v10754_v38 = vld [vmem:[#allocation173_spill] sm:$0xff] }
 0x426   :  { %v5006_v9 = vpop.f32.mrb[5].mxu1  ;;  %v2224_v43 = vmin.f32 %v10754_v38, %v7366_v62  ;;  %v2223_v47 = vmin.f32 %v10755_v42, %v7366_v62 }
 0x427   :  { %v3789_v20 = vsub.f32 %v2253_v3, %v3533_v24  ;;  %v3790_v37 = vsub.f32 %v2254_v11, %v3534_v12  ;;  %v5503_v31 = vpack.c.bf16 %v4062_v50, %v4061_v1  ;;  %v4359_v11 = vadd.f32 %v5001_v51, %v4957_v29  ;;  %v10757_v29 = vld [vmem:[#allocation222_spill] sm:$0xff] }
 0x428   :  { %v3133_v53 = vpop.permute.xlu1 %3132  ;;  %v3137_v59 = vpop.permute.xlu0 %3136  ;;  %v5004_v3 = vadd.f32 %v5003_v6, %v5002_v15  ;;  %v5007_v1 = vadd.f32 %v5006_v9, %v5005_v8  ;;  %v5045_v50 = vadd.f32 %v5044_v32, %v5043_v35  ;;  %v2271_v8 = vmin.f32 %v10757_v29, %v7366_v62  ;;  %v10759_v32 = vld [vmem:[#allocation206_spill] sm:$0xff] }
 0x429   :  { %v4045_v30 = vmax.f32 %v3789_v20, 0.0  ;;  %v4046_v60 = vmax.f32 %v3790_v37, 0.0  ;;  %v3519_v61 = vmax.f32 %v3133_v53, %v7353_v49  ;;  %v3520_v10 = vmax.f32 %v3137_v59, %v7353_v49  ;;  %5504 = vmatprep.subr.bf16.mxu1 %v5503_v31  ;;  %v5008_v15 = vpop.f32.mrb[6].mxu1  ;;  %v10756_v37 = vld [vmem:[#allocation221_spill] sm:$0xff] }
 0x42a   :  { %v9728_v19 = vadd.f32 %v5004_v3, %v4960_v18  ;;  %v9732_v17 = vadd.f32 %v5007_v1, %v4963_v34  ;;  %v5009_v6 = vpop.f32.mrb[7].mxu1  ;;  %v9734_v7 = vadd.f32 %v5045_v50, %v4359_v11  ;;  %v2272_v31 = vmin.f32 %v10756_v37, %v7366_v62  ;;  %v10763_v37 = vld [vmem:[#allocation176_spill] sm:$0xff] }
 0x42b   :  { %v5505_v55 = vpack.c.bf16 %v4046_v60, %v4045_v30  ;;  %v3775_v27 = vsub.f32 %v2239_v21, %v3519_v61  ;;  %v3776_v26 = vsub.f32 %v2240_v13, %v3520_v10  ;;  %v5010_v20 = vadd.f32 %v5009_v6, %v5008_v15  ;;  %v10758_v10 = vld [vmem:[#allocation205_spill] sm:$0xff] }
 0x42c   :  { %v3069_v58 = vpop.permute.xlu1 %3068  ;;  %v3073_v63 = vpop.permute.xlu0 %3072  ;;  %v2256_v9 = vmin.f32 %v10758_v10, %v7366_v62  ;;  %v2255_v38 = vmin.f32 %v10759_v32, %v7366_v62  ;;  %v10765_v10 = vld [vmem:[#allocation224_spill] sm:$0xff] }
 0x42d   :  { %v4031_v24 = vmax.f32 %v3775_v27, 0.0  ;;  %v4032_v12 = vmax.f32 %v3776_v26, 0.0  ;;  %v3503_v23 = vmax.f32 %v3069_v58, %v7353_v49  ;;  %v3504_v16 = vmax.f32 %v3073_v63, %v7353_v49  ;;  %5506 = vmatpush3.bf16.msra.mxu1 %v5505_v55  ;;  %v10761_v63 = vld [vmem:[#allocation192_spill] sm:$0xff] }
 0x42e   :  { %v9742_v51 = vadd.f32 %v5010_v20, %v4966_v57  ;;  %v2241_v1 = vmin.f32 %v10761_v63, %v7366_v62 }
 0x42f   :  { %v3759_v13 = vsub.f32 %v2223_v47, %v3503_v23  ;;  %v3760_v52 = vsub.f32 %v2224_v43, %v3504_v16  ;;  %v5475_v4 = vpack.c.bf16 %v4032_v12, %v4031_v24  ;;  %v10760_v47 = vld [vmem:[#allocation191_spill] sm:$0xff] }
 0x430   :  { %v3261_v35 = vpop.permute.xlu1 %3260  ;;  %v3265_v0 = vpop.permute.xlu0 %3264  ;;  %v2242_v58 = vmin.f32 %v10760_v47, %v7366_v62  ;;  %v10767_v47 = vld [vmem:[#allocation208_spill] sm:$0xff] }
 0x431   :  { %v4015_v21 = vmax.f32 %v3759_v13, 0.0  ;;  %v4016_v53 = vmax.f32 %v3760_v52, 0.0  ;;  %v3551_v59 = vmax.f32 %v3261_v35, %v7353_v49  ;;  %v3552_v18 = vmax.f32 %v3265_v0, %v7353_v49  ;;  %5476 = vmatprep.subr.bf16.mxu0 %v5475_v4  ;;  %v10762_v4 = vld [vmem:[#allocation175_spill] sm:$0xff] }
 0x432   :  { %v2226_v20 = vmin.f32 %v10762_v4, %v7366_v62  ;;  %v10769_v4 = vld [vmem:[#allocation194_spill] sm:$0xff] }
 0x433   :  { %v5477_v30 = vpack.c.bf16 %v4016_v53, %v4015_v21  ;;  %v3807_v60 = vsub.f32 %v2271_v8, %v3551_v59  ;;  %v3808_v61 = vsub.f32 %v2272_v31, %v3552_v18  ;;  %v2225_v31 = vmin.f32 %v10763_v37, %v7366_v62 }
 0x434   :  { %v3197_v43 = vpop.permute.xlu1 %3196  ;;  %v3201_v11 = vpop.permute.xlu0 %3200 }
 0x435   :  { %v4063_v34 = vmax.f32 %v3807_v60, 0.0  ;;  %v4064_v3 = vmax.f32 %v3808_v61, 0.0  ;;  %v3535_v55 = vmax.f32 %v3197_v43, %v7353_v49  ;;  %v3536_v27 = vmax.f32 %v3201_v11, %v7353_v49  ;;  %5478 = vmatpush3.bf16.msra.mxu0 %v5477_v30  ;;  %v10764_v60 = vld [vmem:[#allocation223_spill] sm:$0xff] }
 0x436   :  { %v2274_v61 = vmin.f32 %v10764_v60, %v7366_v62  ;;  %v10771_v60 = vld [vmem:[#allocation178_spill] sm:$0xff] }
 0x437   :  { %v3791_v26 = vsub.f32 %v2255_v38, %v3535_v55  ;;  %v3792_v57 = vsub.f32 %v2256_v9, %v3536_v27  ;;  %v5507_v42 = vpack.c.bf16 %v4064_v3, %v4063_v34  ;;  %v2273_v9 = vmin.f32 %v10765_v10, %v7366_v62 }
 0x438   :  { %v3141_v50 = vpop.permute.xlu1 %3140  ;;  %v3145_v24 = vpop.permute.xlu0 %3144 }
 0x439   :  { %v4047_v12 = vmax.f32 %v3791_v26, 0.0  ;;  %v4048_v23 = vmax.f32 %v3792_v57, 0.0  ;;  %v3521_v16 = vmax.f32 %v3141_v50, %v7353_v49  ;;  %v3522_v15 = vmax.f32 %v3145_v24, %v7353_v49  ;;  %5508 = vmatprep.subr.bf16.mxu1 %v5507_v42  ;;  %v10766_v57 = vld [vmem:[#allocation207_spill] sm:$0xff] }
 0x43a   :  { %v2258_v42 = vmin.f32 %v10766_v57, %v7366_v62  ;;  %v10773_v57 = vld [vmem:[#allocation226_spill] sm:$0xff] }
 0x43b   :  { %v5509_v6 = vpack.c.bf16 %v4048_v23, %v4047_v12  ;;  %v3777_v13 = vsub.f32 %v2241_v1, %v3521_v16  ;;  %v3778_v52 = vsub.f32 %v2242_v58, %v3522_v15  ;;  %v2257_v58 = vmin.f32 %v10767_v47, %v7366_v62 }
 0x43c   :  { %v3077_v29 = vpop.permute.xlu1 %3076  ;;  %v3081_v8 = vpop.permute.xlu0 %3080 }
 0x43d   :  { %v4033_v35 = vmax.f32 %v3777_v13, 0.0  ;;  %v4034_v0 = vmax.f32 %v3778_v52, 0.0  ;;  %v3505_v21 = vmax.f32 %v3077_v29, %v7353_v49  ;;  %v3506_v53 = vmax.f32 %v3081_v8, %v7353_v49  ;;  %5510 = vmatpush3.bf16.msra.mxu1 %v5509_v6  ;;  %v10768_v13 = vld [vmem:[#allocation193_spill] sm:$0xff] }
 0x43e   :  { %v2244_v52 = vmin.f32 %v10768_v13, %v7366_v62  ;;  %v10775_v13 = vld [vmem:[#allocation210_spill] sm:$0xff] }
 0x43f   :  { %v3761_v59 = vsub.f32 %v2225_v31, %v3505_v21  ;;  %v3762_v18 = vsub.f32 %v2226_v20, %v3506_v53  ;;  %v5479_v30 = vpack.c.bf16 %v4034_v0, %v4033_v35  ;;  %v2243_v20 = vmin.f32 %v10769_v4, %v7366_v62 }
 0x440   :  { %v3269_v32 = vpop.permute.xlu1 %3268  ;;  %v3273_v38 = vpop.permute.xlu0 %3272 }
 0x441   :  { %v4017_v43 = vmax.f32 %v3761_v59, 0.0  ;;  %v4018_v11 = vmax.f32 %v3762_v18, 0.0  ;;  %v3553_v34 = vmax.f32 %v3269_v32, %v7353_v49  ;;  %v3554_v3 = vmax.f32 %v3273_v38, %v7353_v49  ;;  %5480 = vmatprep.subr.bf16.mxu0 %v5479_v30  ;;  %v10770_v18 = vld [vmem:[#allocation177_spill] sm:$0xff] }
 0x442   :  { %v2228_v30 = vmin.f32 %v10770_v18, %v7366_v62  ;;  %v10777_v18 = vld [vmem:[#allocation196_spill] sm:$0xff] }
 0x443   :  { %v5481_v55 = vpack.c.bf16 %v4018_v11, %v4017_v43  ;;  %v3809_v27 = vsub.f32 %v2273_v9, %v3553_v34  ;;  %v3810_v26 = vsub.f32 %v2274_v61, %v3554_v3  ;;  %v2227_v61 = vmin.f32 %v10771_v60, %v7366_v62 }
 0x444   :  { %v3205_v63 = vpop.permute.xlu1 %3204  ;;  %v3209_v1 = vpop.permute.xlu0 %3208 }
 0x445   :  { %v4065_v50 = vmax.f32 %v3809_v27, 0.0  ;;  %v4066_v24 = vmax.f32 %v3810_v26, 0.0  ;;  %v3537_v12 = vmax.f32 %v3205_v63, %v7353_v49  ;;  %v3538_v23 = vmax.f32 %v3209_v1, %v7353_v49  ;;  %5482 = vmatpush3.bf16.msra.mxu0 %v5481_v55  ;;  %v10772_v27 = vld [vmem:[#allocation225_spill] sm:$0xff] }
 0x446   :  { %v2276_v26 = vmin.f32 %v10772_v27, %v7366_v62  ;;  %v10779_v27 = vld [vmem:[#allocation180_spill] sm:$0xff] }
 0x447   :  { %v3793_v16 = vsub.f32 %v2257_v58, %v3537_v12  ;;  %v3794_v15 = vsub.f32 %v2258_v42, %v3538_v23  ;;  %v5511_v6 = vpack.c.bf16 %v4066_v24, %v4065_v50  ;;  %v2275_v42 = vmin.f32 %v10773_v57, %v7366_v62 }
 0x448   :  { %v3149_v37 = vpop.permute.xlu1 %3148  ;;  %v3153_v31 = vpop.permute.xlu0 %3152 }
 0x449   :  { %v4049_v29 = vmax.f32 %v3793_v16, 0.0  ;;  %v4050_v8 = vmax.f32 %v3794_v15, 0.0  ;;  %v3523_v35 = vmax.f32 %v3149_v37, %v7353_v49  ;;  %v3524_v0 = vmax.f32 %v3153_v31, %v7353_v49  ;;  %5512 = vmatprep.subr.bf16.mxu1 %v5511_v6  ;;  %v10774_v15 = vld [vmem:[#allocation209_spill] sm:$0xff] }
 0x44a   :  { %v2260_v6 = vmin.f32 %v10774_v15, %v7366_v62  ;;  %v10780_v15 = vld [vmem:[#allocation227_spill] sm:$0xff] }
 0x44b   :  { %v5513_v21 = vpack.c.bf16 %v4050_v8, %v4049_v29  ;;  %v3779_v53 = vsub.f32 %v2243_v20, %v3523_v35  ;;  %v3780_v59 = vsub.f32 %v2244_v52, %v3524_v0  ;;  %v2259_v52 = vmin.f32 %v10775_v13, %v7366_v62  ;;  %v10781_v13 = vld [vmem:[#allocation228_spill] sm:$0xff] }
 0x44c   :  { %v3085_v10 = vpop.permute.xlu1 %3084  ;;  %v3089_v9 = vpop.permute.xlu0 %3088 }
 0x44d   :  { %v4035_v32 = vmax.f32 %v3779_v53, 0.0  ;;  %v4036_v38 = vmax.f32 %v3780_v59, 0.0  ;;  %v3507_v43 = vmax.f32 %v3085_v10, %v7353_v49  ;;  %v3508_v11 = vmax.f32 %v3089_v9, %v7353_v49  ;;  %5514 = vmatpush3.bf16.msra.mxu1 %v5513_v21  ;;  %v10776_v53 = vld [vmem:[#allocation195_spill] sm:$0xff] }
 0x44e   :  { %v2246_v59 = vmin.f32 %v10776_v53, %v7366_v62 }
 0x44f   :  { %v3763_v34 = vsub.f32 %v2227_v61, %v3507_v43  ;;  %v3764_v3 = vsub.f32 %v2228_v30, %v3508_v11  ;;  %v5483_v55 = vpack.c.bf16 %v4036_v38, %v4035_v32  ;;  %v2245_v30 = vmin.f32 %v10777_v18, %v7366_v62 }
 0x450   :  { %v3281_v58 = vpop.permute.xlu0 %3280 }
 0x451   :  { %v3277_v47 = vpop.permute.xlu1 %3276  ;;  %v4019_v63 = vmax.f32 %v3763_v34, 0.0  ;;  %v4020_v1 = vmax.f32 %v3764_v3, 0.0  ;;  %v3556_v24 = vmax.f32 %v3281_v58, %v7353_v49  ;;  %5484 = vmatprep.subr.bf16.mxu0 %v5483_v55  ;;  %v10778_v3 = vld [vmem:[#allocation179_spill] sm:$0xff] }
 0x452   :  { %v3555_v50 = vmax.f32 %v3277_v47, %v7353_v49  ;;  %v2230_v55 = vmin.f32 %v10778_v3, %v7366_v62 }
 0x453   :  { %v5485_v12 = vpack.c.bf16 %v4020_v1, %v4019_v63  ;;  %v3812_v16 = vsub.f32 %v2276_v26, %v3556_v24  ;;  %v2229_v26 = vmin.f32 %v10779_v27, %v7366_v62 }
 0x454   :  { %v3811_v23 = vsub.f32 %v2275_v42, %v3555_v50 }
 0x455   :  { %v3213_v4 = vpop.permute.xlu1 %3212  ;;  %v3217_v20 = vpop.permute.xlu0 %3216  ;;  %v4068_v31 = vmax.f32 %v3812_v16, 0.0  ;;  %5486 = vmatpush3.bf16.msra.mxu0 %v5485_v12 }
 0x456   :  { %v4067_v37 = vmax.f32 %v3811_v23, 0.0  ;;  %v3539_v29 = vmax.f32 %v3213_v4, %v7353_v49  ;;  %v3540_v8 = vmax.f32 %v3217_v20, %v7353_v49 }
 0x458   :  { %v3795_v35 = vsub.f32 %v2259_v52, %v3539_v29  ;;  %v3796_v0 = vsub.f32 %v2260_v6, %v3540_v8  ;;  %v5515_v21 = vpack.c.bf16 %v4068_v31, %v4067_v37  ;;  %v2278_v6 = vmin.f32 %v10780_v15, %v7366_v62 }
 0x459   :  { %v3157_v60 = vpop.permute.xlu1 %3156  ;;  %v3161_v61 = vpop.permute.xlu0 %3160  ;;  %v2277_v52 = vmin.f32 %v10781_v13, %v7366_v62 }
 0x45a   :  { %v4051_v10 = vmax.f32 %v3795_v35, 0.0  ;;  %v4052_v9 = vmax.f32 %v3796_v0, 0.0  ;;  %v3525_v32 = vmax.f32 %v3157_v60, %v7353_v49  ;;  %v3526_v38 = vmax.f32 %v3161_v61, %v7353_v49  ;;  %5516 = vmatprep.subr.bf16.mxu1 %v5515_v21  ;;  %v10783_v61 = vld [vmem:[#allocation212_spill] sm:$0xff] }
 0x45c   :  { %v5517_v43 = vpack.c.bf16 %v4052_v9, %v4051_v10  ;;  %v3781_v11 = vsub.f32 %v2245_v30, %v3525_v32  ;;  %v3782_v34 = vsub.f32 %v2246_v59, %v3526_v38  ;;  %v10782_v30 = vld [vmem:[#allocation211_spill] sm:$0xff]  ;;  %v2261_v10 = vmin.f32 %v10783_v61, %v7366_v62 }
 0x45d   :  { %v3093_v57 = vpop.permute.xlu1 %3092  ;;  %v3097_v42 = vpop.permute.xlu0 %3096  ;;  %v2262_v60 = vmin.f32 %v10782_v30, %v7366_v62 }
 0x45e   :  { %v4037_v47 = vmax.f32 %v3781_v11, 0.0  ;;  %v4038_v58 = vmax.f32 %v3782_v34, 0.0  ;;  %v3509_v63 = vmax.f32 %v3093_v57, %v7353_v49  ;;  %v3510_v1 = vmax.f32 %v3097_v42, %v7353_v49  ;;  %5518 = vmatpush3.bf16.msra.mxu1 %v5517_v43  ;;  %v5046_v50 = vpop.f32.mrb[10].mxu0 }
 0x45f   :  { %v5047_v16 = vpop.f32.mrb[11].mxu0 }
 0x460   :  { %v3765_v24 = vsub.f32 %v2229_v26, %v3509_v63  ;;  %v3766_v12 = vsub.f32 %v2230_v55, %v3510_v1  ;;  %v5487_v23 = vpack.c.bf16 %v4038_v58, %v4037_v47  ;;  %v5048_v37 = vadd.f32 %v5047_v16, %v5046_v50  ;;  %v10784_v58 = vld [vmem:[#allocation197_spill] sm:$0xff]  ;;  %v10785_v1 = vld [vmem:[#allocation198_spill] sm:$0xff] }
 0x461   :  { %v3285_v4 = vpop.permute.xlu1 %3284  ;;  %v3289_v20 = vpop.permute.xlu0 %3288  ;;  %v2248_v63 = vmin.f32 %v10784_v58, %v7366_v62  ;;  %v2247_v50 = vmin.f32 %v10785_v1, %v7366_v62 }
 0x462   :  { %v4021_v31 = vmax.f32 %v3765_v24, 0.0  ;;  %v4022_v29 = vmax.f32 %v3766_v12, 0.0  ;;  %v3557_v8 = vmax.f32 %v3285_v4, %v7353_v49  ;;  %v3558_v35 = vmax.f32 %v3289_v20, %v7353_v49  ;;  %5488 = vmatprep.subr.bf16.mxu0 %v5487_v23  ;;  %v5049_v18 = vpop.f32.mrb[12].mxu0 }
 0x463   :  { %v4449_v0 = vadd.f32 %v5048_v37, %v9728_v19  ;;  %v5050_v3 = vpop.f32.mrb[13].mxu0 }
 0x464   :  { %v5489_v21 = vpack.c.bf16 %v4022_v29, %v4021_v31  ;;  %v3813_v53 = vsub.f32 %v2277_v52, %v3557_v8  ;;  %v3814_v59 = vsub.f32 %v2278_v6, %v3558_v35  ;;  %v5087_v19 = vpop.f32.mrb[8].mxu1  ;;  %v5051_v27 = vadd.f32 %v5050_v3, %v5049_v18  ;;  %v10786_v8 = vld [vmem:[#allocation181_spill] sm:$0xff]  ;;  %v10789_v3 = vld [vmem:[#allocation230_spill] sm:$0xff] }
 0x465   :  { %v3221_v9 = vpop.permute.xlu1 %3220  ;;  %v3225_v32 = vpop.permute.xlu0 %3224  ;;  %v2232_v35 = vmin.f32 %v10786_v8, %v7366_v62 }
 0x466   :  { %v4069_v38 = vmax.f32 %v3813_v53, 0.0  ;;  %v4070_v43 = vmax.f32 %v3814_v59, 0.0  ;;  %v3541_v11 = vmax.f32 %v3221_v9, %v7353_v49  ;;  %v3542_v34 = vmax.f32 %v3225_v32, %v7353_v49  ;;  %5490 = vmatpush3.bf16.msra.mxu0 %v5489_v21  ;;  %v5088_v55 = vpop.f32.mrb[9].mxu1 }
 0x467   :  { %v5089_v47 = vadd.f32 %v5088_v55, %v5087_v19  ;;  %v9828_v23 = vadd.f32 %v5051_v27, %v9732_v17  ;;  %v5052_v29 = vpop.f32.mrb[14].mxu0  ;;  %v10787_v17 = vld [vmem:[#allocation182_spill] sm:$0xff]  ;;  %v2279_v55 = vmin.f32 %v10789_v3, %v7366_v62 }
 0x468   :  { %v3797_v26 = vsub.f32 %v2261_v10, %v3541_v11  ;;  %v3798_v57 = vsub.f32 %v2262_v60, %v3542_v34  ;;  %v5519_v42 = vpack.c.bf16 %v4070_v43, %v4069_v38  ;;  %v5090_v31 = vpop.f32.mrb[10].mxu1  ;;  %v2231_v21 = vmin.f32 %v10787_v17, %v7366_v62  ;;  %v5053_v10 = vpop.f32.mrb[15].mxu0  ;;  %v10788_v34 = vld [vmem:[#allocation229_spill] sm:$0xff] }
 0x469   :  { %v3165_v24 = vpop.permute.xlu1 %3164  ;;  %v3169_v12 = vpop.permute.xlu0 %3168  ;;  %v9833_v52 = vadd.f32 %v5089_v47, %v9734_v7  ;;  %v5054_v32 = vadd.f32 %v5053_v10, %v5052_v29  ;;  %v2280_v19 = vmin.f32 %v10788_v34, %v7366_v62 }
 0x46a   :  { %v4053_v16 = vmax.f32 %v3797_v26, 0.0  ;;  %v4054_v15 = vmax.f32 %v3798_v57, 0.0  ;;  %v3527_v6 = vmax.f32 %v3165_v24, %v7353_v49  ;;  %v3528_v13 = vmax.f32 %v3169_v12, %v7353_v49  ;;  %5520 = vmatprep.subr.bf16.mxu1 %v5519_v42  ;;  %v5091_v61 = vpop.f32.mrb[11].mxu1 }
 0x46b   :  { %v5092_v9 = vadd.f32 %v5091_v61, %v5090_v31  ;;  %v9848_v42 = vadd.f32 %v5054_v32, %v9742_v51  ;;  %v10794_v32 = vld [vmem:[#allocation200_spill] sm:$0xff] }
 0x46c   :  { %v5521_v4 = vpack.c.bf16 %v4054_v15, %v4053_v16  ;;  %v3783_v20 = vsub.f32 %v2247_v50, %v3527_v6  ;;  %v3784_v37 = vsub.f32 %v2248_v63, %v3528_v13  ;;  %v9855_v50 = vld [vmem:[%s9972_s0 + $0x60] sm:$0xff]  ;;  %v10791_v6 = vld [vmem:[#allocation214_spill] sm:$0xff] }
 0x46d   :  { %v3101_v53 = vpop.permute.xlu1 %3100  ;;  %v3105_v59 = vpop.permute.xlu0 %3104  ;;  %v9845_v57 = vadd.f32 %v5092_v9, %v4449_v0  ;;  %v10790_v15 = vld [vmem:[#allocation213_spill] sm:$0xff]  ;;  %v2263_v13 = vmin.f32 %v10791_v6, %v7366_v62  ;;  %v9867_v31 = vrot.slane %v9855_v50, %v7455_v33  ;;  %v9878_v9 = vld [vmem:[%s9972_s0 + $0x70] sm:$0xff]  ;;  %s5823_s0 = smov [#allocation2]  }
 0x46e   :  { %v4039_v18 = vmax.f32 %v3783_v20, 0.0  ;;  %v4040_v30 = vmax.f32 %v3784_v37, 0.0  ;;  %v3511_v60 = vmax.f32 %v3101_v53, %v7353_v49  ;;  %v3512_v7 = vmax.f32 %v3105_v59, %v7353_v49  ;;  %5522 = vmatpush3.bf16.msra.mxu1 %v5521_v4  ;;  %v5093_v0 = vpop.f32.mrb[12].mxu1  ;;  %v10792_v53 = vld [vmem:[#allocation183_spill] sm:$0xff]  ;;  %s4900_s28 = sshll.u32 %s5823_s0, 4  ;;  %s4901_s28 = int_to_ptr.vmem [resolvable:$true] %s4900_s28 }
 0x46f   :  { %v2264_v51 = vmin.f32 %v10790_v15, %v7366_v62  ;;  %v9863_v37 = vrot.slane %v9855_v50, %v7452_v40  ;;  %v2234_v59 = vmin.f32 %v10792_v53, %v7366_v62  ;;  %s5797_s29 = scalar_lea.vmem %s4901_s28, 512  ;;  %p5802_p1 = scmp.lt.s32.totalorder %s4901_s28, %s4901_s28 }
 0x470   :  { %v3767_v38 = vsub.f32 %v2231_v21, %v3511_v60  ;;  %v3768_v43 = vsub.f32 %v2232_v35, %v3512_v7  ;;  %v5491_v11 = vpack.c.bf16 %v4040_v30, %v4039_v18  ;;  %v5094_v21 = vpop.f32.mrb[13].mxu1  ;;  %v10793_v30 = vld [vmem:[#allocation199_spill] sm:$0xff]  ;;  %p5798_p0 = scmp.ne.s32.totalorder %s4901_s28, %s5797_s29  ;;  %p5803_p2 = scmp.lt.s32.totalorder %s5797_s29, %s5797_s29 }
 0x471   :  { %v3293_v27 = vpop.permute.xlu1 %3292  ;;  %v3297_v26 = vpop.permute.xlu0 %3296  ;;  %v5095_v18 = vadd.f32 %v5094_v21, %v5093_v0  ;;  %v2250_v60 = vmin.f32 %v10793_v30, %v7366_v62  ;;  %v438_v34 = vmin.f32 %v9863_v37, %v7467_v14  ;;  %v470_v30 = vmin.f32 %v9863_v37, %v10703_v2 }
 0x472   :  { %v4023_v47 = vmax.f32 %v3767_v38, 0.0  ;;  %v4024_v58 = vmax.f32 %v3768_v43, 0.0  ;;  %v3559_v63 = vmax.f32 %v3293_v27, %v7353_v49  ;;  %v3560_v1 = vmax.f32 %v3297_v26, %v7353_v49  ;;  %5492 = vmatprep.subr.bf16.mxu0 %v5491_v11  ;;  %p5804_p3 = por %p5803_p2, %p5802_p1 }
 0x473   :  { %v2249_v38 = vmin.f32 %v10794_v32, %v7366_v62  ;;  %v9887_v3 = vadd.f32 %v5095_v18, %v9828_v23  ;;  %v9901_v23 = vrot.slane %v9878_v9, %v7455_v33 }
 0x474   :  { %v5493_v24 = vpack.c.bf16 %v4024_v58, %v4023_v47  ;;  %v3815_v12 = vsub.f32 %v2279_v55, %v3559_v63  ;;  %v3816_v16 = vsub.f32 %v2280_v19, %v3560_v1  ;;  %v566_v19 = vmax.f32 %v9867_v31, %v7449_v39  ;;  %v10795_v58 = vld [vmem:[#allocation184_spill] sm:$0xff]  ;;  %v10796_v1 = vld [vmem:[#allocation215_spill] sm:$0xff]  ;;  %p5805_p4 = pnand %p5804_p3, %p5798_p0 }
 0x475   :  { %v3229_v4 = vpop.permute.xlu1 %3228  ;;  %v3233_v20 = vpop.permute.xlu0 %3232  ;;  %v2233_v63 = vmin.f32 %v10795_v58, %v7366_v62 }
 0x476   :  { %v4071_v29 = vmax.f32 %v3815_v12, 0.0  ;;  %v4072_v8 = vmax.f32 %v3816_v16, 0.0  ;;  %v3543_v35 = vmax.f32 %v3229_v4, %v7353_v49  ;;  %v3544_v17 = vmax.f32 %v3233_v20, %v7353_v49  ;;  %5494 = vmatpush3.bf16.msra.mxu0 %v5493_v24  ;;  %v10797_v16 = vld [vmem:[#allocation216_spill] sm:$0xff] }
 0x477   :  { %v2266_v24 = vmin.f32 %v10796_v1, %v7366_v62  ;;  %v9897_v12 = vrot.slane %v9878_v9, %v7452_v40  ;;  %v2265_v0 = vmin.f32 %v10797_v16, %v7366_v62  ;;  %v454_v40 = vmin.f32 %v9863_v37, %v10689_v41 }
 0x478   :  { %v3799_v7 = vsub.f32 %v2263_v13, %v3543_v35  ;;  %v3800_v61 = vsub.f32 %v2264_v51, %v3544_v17  ;;  %v5523_v10 = vpack.c.bf16 %v4072_v8, %v4071_v29  ;;  %v10798_v13 = vld [vmem:[#allocation231_spill] sm:$0xff]  ;;  %v630_v8 = vsub.f32 %v438_v34, %v566_v19  ;;  %v5096_v18 = vpop.f32.mrb[14].mxu1  ;;  %v10799_v34 = vld [vmem:[#allocation232_spill] sm:$0xff] }
 0x479   :  { %v3173_v43 = vpop.permute.xlu1 %3172  ;;  %v3177_v11 = vpop.permute.xlu0 %3176  ;;  %v2282_v4 = vmin.f32 %v10798_v13, %v7366_v62  ;;  %v582_v35 = vmax.f32 %v9867_v31, %v10691_v44  ;;  %v2281_v19 = vmin.f32 %v10799_v34, %v7366_v62 }
 0x47a   :  { %v4055_v55 = vmax.f32 %v3799_v7, 0.0  ;;  %v4056_v27 = vmax.f32 %v3800_v61, 0.0  ;;  %v3529_v26 = vmax.f32 %v3173_v43, %v7353_v49  ;;  %v3530_v47 = vmax.f32 %v3177_v11, %v7353_v49  ;;  %5524 = vmatprep.subr.bf16.mxu1 %v5523_v10  ;;  %v5097_v10 = vpop.f32.mrb[15].mxu1 }
 0x47b   :  { %v440_v7 = vmin.f32 %v9897_v12, %v7467_v14  ;;  %v568_v61 = vmax.f32 %v9901_v23, %v7449_v39  ;;  %v5098_v11 = vadd.f32 %v5097_v10, %v5096_v18  ;;  %v646_v58 = vsub.f32 %v454_v40, %v582_v35 }
 0x47c   :  { %v5525_v15 = vpack.c.bf16 %v4056_v27, %v4055_v55  ;;  %v3785_v51 = vsub.f32 %v2249_v38, %v3529_v26  ;;  %v3786_v6 = vsub.f32 %v2250_v60, %v3530_v47  ;;  %v598_v60 = vmax.f32 %v9867_v31, %v10704_v56 }
 0x47d   :  { %v3109_v20 = vpop.permute.xlu1 %3108  ;;  %v3113_v29 = vpop.permute.xlu0 %3112  ;;  %v694_v26 = vmax.f32 %v630_v8, 0.0  ;;  %v4126_v47 = vrot.slane %v9855_v50, %v7496_v46  ;;  %v9930_v62 = vadd.f32 %v5098_v11, %v9848_v42  ;;  %v614_v50 = vmax.f32 %v9867_v31, %v10712_v22 }
 0x47e   :  { %v4041_v33 = vmax.f32 %v3785_v51, 0.0  ;;  %v4042_v17 = vmax.f32 %v3786_v6, 0.0  ;;  %v3513_v21 = vmax.f32 %v3109_v20, %v7353_v49  ;;  %v3514_v53 = vmax.f32 %v3113_v29, %v7353_v49  ;;  %5526 = vmatpush3.bf16.msra.mxu1 %v5525_v15 }
 0x47f   :  { %v486_v15 = vmin.f32 %v9863_v37, %v10711_v5  ;;  %v4151_v8 = vmul.f32 %v4126_v47, %v694_v26  ;;  %v710_v40 = vmax.f32 %v646_v58, 0.0  ;;  %v456_v35 = vmin.f32 %v9897_v12, %v10689_v41 }
 0x480   :  { %v3769_v32 = vsub.f32 %v2233_v63, %v3513_v21  ;;  %v3770_v38 = vsub.f32 %v2234_v59, %v3514_v53  ;;  %v5495_v43 = vpack.c.bf16 %v4042_v17, %v4041_v33  ;;  %v662_v59 = vsub.f32 %v470_v30, %v598_v60 }
 0x481   :  { %v3301_v55 = vpop.permute.xlu1 %3300  ;;  %v3305_v27 = vpop.permute.xlu0 %3304  ;;  %v632_v63 = vsub.f32 %v440_v7, %v568_v61  ;;  %v584_v33 = vmax.f32 %v9901_v23, %v10691_v44  ;;  %v4134_v31 = vrot.slane %v9878_v9, %v7496_v46  ;;  %v678_v7 = vsub.f32 %v486_v15, %v614_v50 }
 0x482   :  { %v4025_v1 = vmax.f32 %v3769_v32, 0.0  ;;  %v4026_v14 = vmax.f32 %v3770_v38, 0.0  ;;  %v3561_v16 = vmax.f32 %v3301_v55, %v7353_v49  ;;  %v3562_v39 = vmax.f32 %v3305_v27, %v7353_v49  ;;  %5496 = vmatprep.subr.bf16.mxu0 %v5495_v43 }
 0x483   :  { %v696_v53 = vmax.f32 %v632_v63, 0.0  ;;  %v4167_v41 = vmul.f32 %v4126_v47, %v710_v40  ;;  %v648_v61 = vsub.f32 %v456_v35, %v584_v33  ;;  %v472_v44 = vmin.f32 %v9897_v12, %v10703_v2 }
 0x484   :  { %v5497_v51 = vpack.c.bf16 %v4026_v14, %v4025_v1  ;;  %v3817_v6 = vsub.f32 %v2281_v19, %v3561_v16  ;;  %v3818_v13 = vsub.f32 %v2282_v4, %v3562_v39  ;;  %v726_v4 = vmax.f32 %v662_v59, 0.0 }
 0x485   :  { %v3237_v20 = vpop.permute.xlu1 %3236  ;;  %v3241_v29 = vpop.permute.xlu0 %3240  ;;  %v600_v10 = vmax.f32 %v9901_v23, %v10704_v56  ;;  %v4153_v9 = vmul.f32 %v4134_v31, %v696_v53  ;;  %v488_v11 = vmin.f32 %v9897_v12, %v10711_v5  ;;  %v616_v2 = vmax.f32 %v9901_v23, %v10712_v22 }
 0x486   :  { %v4073_v37 = vmax.f32 %v3817_v6, 0.0  ;;  %v4074_v17 = vmax.f32 %v3818_v13, 0.0  ;;  %v3545_v42 = vmax.f32 %v3237_v20, %v7353_v49  ;;  %v3546_v21 = vmax.f32 %v3241_v29, %v7353_v49  ;;  %5498 = vmatpush3.bf16.msra.mxu0 %v5497_v51 }
 0x487   :  { %v4183_v46 = vmul.f32 %v4126_v47, %v726_v4  ;;  %v664_v43 = vsub.f32 %v472_v44, %v600_v10  ;;  %v680_v19 = vsub.f32 %v488_v11, %v616_v2 }
 0x488   :  { %v3801_v18 = vsub.f32 %v2265_v0, %v3545_v42  ;;  %v3802_v30 = vsub.f32 %v2266_v24, %v3546_v21  ;;  %v5527_v60 = vpack.c.bf16 %v4074_v17, %v4073_v37  ;;  %v742_v24 = vmax.f32 %v678_v7, 0.0 }
 0x489   :  { %4782 = vmatmul.mubr.f32.vlgmr.msra.gmra.mrb[24].mxu0 %v4151_v8  ;;  %v712_v0 = vmax.f32 %v648_v61, 0.0  ;;  %v728_v34 = vmax.f32 %v664_v43, 0.0  ;;  %v744_v5 = vmax.f32 %v680_v19, 0.0 }
 0x48a   :  { %v4057_v49 = vmax.f32 %v3801_v18, 0.0  ;;  %v4058_v32 = vmax.f32 %v3802_v30, 0.0  ;;  %5528 = vmatprep.subr.bf16.mxu1 %v5527_v60  ;;  %4786 = vmatprep.mubr.f32.mxu0 %v9626_v28  ;;  %v4199_v56 = vmul.f32 %v4126_v47, %v742_v24 }
 0x48b   :  { %v4169_v28 = vmul.f32 %v4134_v31, %v712_v0  ;;  %v4185_v55 = vmul.f32 %v4134_v31, %v728_v34  ;;  %v4201_v22 = vmul.f32 %v4134_v31, %v744_v5 }
 0x48c   :  { %v5529_v38 = vpack.c.bf16 %v4058_v32, %v4057_v49 }
 0x48d   :  { %4787 = vmatmul.mubr.f32.gmra.mrb[26].mxu0 %v4167_v41 }
 0x48e   :  { %5530 = vmatpush3.bf16.msra.mxu1 %v5529_v38  ;;  %4791 = vmatprep.mubr.f32.mxu0 %v9646_v48 }
 0x491   :  { %4792 = vmatmul.mubr.f32.gmra.mrb[28].mxu0 %v4183_v46  ;;  %4867 = vmatmul.mubr.f32.vlgmr.msra.gmra.mrb[24].mxu1 %v4153_v9 }
 0x492   :  { %4796 = vmatprep.mubr.f32.mxu0 %v9685_v25  ;;  %4871 = vmatprep.mubr.f32.mxu1 %v9690_v54 }
 0x495   :  { %4797 = vmatmul.mubr.f32.gmra.mrb[30].mxu0 %v4199_v56  ;;  %4872 = vmatmul.mubr.f32.gmra.mrb[26].mxu1 %v4169_v28 }
 0x496   :  { %4876 = vmatprep.mubr.f32.mxu1 %v9715_v45 }
 0x499   :  { %4877 = vmatmul.mubr.f32.gmra.mrb[28].mxu1 %v4185_v55 }
 0x49a   :  { %4881 = vmatprep.mubr.f32.mxu1 %v9720_v36 }
 0x49d   :  { %4882 = vmatmul.mubr.f32.gmra.mrb[30].mxu1 %v4201_v22 }
 0x4a7   :  { %v5131_v48 = vpop.f32.mrb[16].mxu0 }
 0x4a8   :  { %v5132_v12 = vpop.f32.mrb[17].mxu0 }
 0x4a9   :  { %v5133_v23 = vadd.f32 %v5132_v12, %v5131_v48 }
 0x4ab   :  { %v4614_v27 = vadd.f32 %v5133_v23, %v9833_v52  ;;  %v5134_v26 = vpop.f32.mrb[18].mxu0 }
 0x4ac   :  { %v5135_v25 = vpop.f32.mrb[19].mxu0 }
 0x4ad   :  { %v5136_v47 = vadd.f32 %v5135_v25, %v5134_v26 }
 0x4af   :  { %v4619_v54 = vadd.f32 %v5136_v47, %v9845_v57  ;;  %v5137_v58 = vpop.f32.mrb[20].mxu0 }
 0x4b0   :  { %v5138_v1 = vpop.f32.mrb[21].mxu0 }
 0x4b1   :  { %v5139_v14 = vadd.f32 %v5138_v1, %v5137_v58 }
 0x4b3   :  { %v4624_v45 = vadd.f32 %v5139_v14, %v9887_v3  ;;  %v5140_v16 = vpop.f32.mrb[22].mxu0 }
 0x4b4   :  { %v5141_v39 = vpop.f32.mrb[23].mxu0 }
 0x4b5   :  { %v5142_v59 = vadd.f32 %v5141_v39, %v5140_v16 }
 0x4b7   :  { %v4629_v36 = vadd.f32 %v5142_v59, %v9930_v62 }
 0x4e3   :  { %v5175_v63 = vpop.f32.mrb[16].mxu1 }
 0x4e4   :  { %v5176_v15 = vpop.f32.mrb[17].mxu1 }
 0x4e5   :  { %v5177_v51 = vadd.f32 %v5176_v15, %v5175_v63 }
 0x4e7   :  { %v4699_v6 = vadd.f32 %v5177_v51, %v4614_v27  ;;  %v5178_v52 = vpop.f32.mrb[18].mxu1 }
 0x4e8   :  { %v5179_v13 = vpop.f32.mrb[19].mxu1 }
 0x4e9   :  { %v5180_v50 = vadd.f32 %v5179_v13, %v5178_v52 }
 0x4eb   :  { %v4704_v20 = vadd.f32 %v5180_v50, %v4619_v54  ;;  %v5181_v29 = vpop.f32.mrb[20].mxu1 }
 0x4ec   :  { %v5182_v57 = vpop.f32.mrb[21].mxu1 }
 0x4ed   :  { %v5183_v8 = vadd.f32 %v5182_v57, %v5181_v29 }
 0x4ef   :  { %v4709_v40 = vadd.f32 %v5183_v8, %v4624_v45  ;;  %v5184_v35 = vpop.f32.mrb[22].mxu1 }
 0x4f0   :  { %v5185_v33 = vpop.f32.mrb[23].mxu1 }
 0x4f1   :  { %v5186_v3 = vadd.f32 %v5185_v33, %v5184_v35 }
 0x4f3   :  { %v4714_v37 = vadd.f32 %v5186_v3, %v4629_v36 }
 0x55c   :  { %v5219_v17 = vpop.f32.mrb[24].mxu0 }
 0x55d   :  { %v5220_v42 = vpop.f32.mrb[25].mxu0 }
 0x55e   :  { %v5221_v21 = vadd.f32 %v5220_v42, %v5219_v17 }
 0x560   :  { %v4784_v62 = vadd.f32 %v5221_v21, %v4699_v6  ;;  %v5222_v4 = vpop.f32.mrb[26].mxu0 }
 0x561   :  { %v5223_v53 = vpop.f32.mrb[27].mxu0 }
 0x562   :  { %v5224_v31 = vadd.f32 %v5223_v53, %v5222_v4 }
 0x564   :  { %v4789_v18 = vadd.f32 %v5224_v31, %v4704_v20  ;;  %v5225_v30 = vpop.f32.mrb[28].mxu0  ;;  %v5263_v60 = vpop.f32.mrb[24].mxu1 }
 0x565   :  { %v5226_v7 = vpop.f32.mrb[29].mxu0  ;;  %v5264_v41 = vpop.f32.mrb[25].mxu1 }
 0x566   :  { %v5227_v61 = vadd.f32 %v5226_v7, %v5225_v30  ;;  %v5265_v44 = vadd.f32 %v5264_v41, %v5263_v60 }
 0x568   :  { %v4794_v10 = vadd.f32 %v5227_v61, %v4709_v40  ;;  %v4869_v49 = vadd.f32 %v5265_v44, %v4784_v62  ;;  %v5228_v32 = vpop.f32.mrb[30].mxu0  ;;  %v5266_v38 = vpop.f32.mrb[26].mxu1 }
 0x569   :  { %v5229_v46 = vpop.f32.mrb[31].mxu0  ;;  %v5267_v9 = vpop.f32.mrb[27].mxu1 }
 0x56a   :  { %v5230_v24 = vadd.f32 %v5229_v46, %v5228_v32  ;;  %v5268_v0 = vadd.f32 %v5267_v9, %v5266_v38  ;;  %4891 = vst [vmem:[#allocation2] sm:$0xff] %v4869_v49 }
 0x56c   :  { %v4799_v43 = vadd.f32 %v5230_v24, %v4714_v37  ;;  %v4874_v11 = vadd.f32 %v5268_v0, %v4789_v18  ;;  %v5269_v2 = vpop.f32.mrb[28].mxu1 }
 0x56d   :  { %v5270_v56 = vpop.f32.mrb[29].mxu1 }
 0x56e   :  { %v5271_v28 = vadd.f32 %v5270_v56, %v5269_v2  ;;  %4892 = vst [vmem:[#allocation2 + $0x8] sm:$0xff] %v4874_v11 }
 0x570   :  { %v4879_v34 = vadd.f32 %v5271_v28, %v4794_v10  ;;  %v5272_v19 = vpop.f32.mrb[30].mxu1 }
 0x571   :  { %v5273_v55 = vpop.f32.mrb[31].mxu1 }
 0x572   :  { %v5274_v5 = vadd.f32 %v5273_v55, %v5272_v19  ;;  %4893 = vst [vmem:[#allocation2 + $0x10] sm:$0xff] %v4879_v34 }
 0x574   :  { %v4884_v22 = vadd.f32 %v5274_v5, %v4799_v43 }
 0x576   :  { %4894 = vst [vmem:[#allocation2 + $0x18] sm:$0xff] %v4884_v22 }
 0x577   :  { %5808 = shalt.err (!%p5805_p4)
}
 0x578   :  { %s5809_s4 = scalar_lea.hbm %s9974_s2, 512 }
 0x579   :  { %p5810_p5 = scmp.ne.s32.totalorder %s9974_s2, %s5809_s4  ;;  %p5813_p6 = scmp.lt.u32.totalorder %s5809_s4, %s9974_s2 }
 0x57b   :  { %p5815_p7 = pnand %p5813_p6, %p5810_p5 }
 0x57d   :  { %5818 = shalt.err (!%p5815_p7)
}
 0x57e   :  { %s5824_s9 = smov 128   ;;  %s5825_s10 = smov 8  }
 0x57f   :  { %4906 = dma.vmem_to_hbm [thread:$0]  %s4901_s28, 512, %s9974_s2, [#allocation3], %s5824_s9, %s5824_s9, %s5825_s10  }
 0x580   :  { %5819 = dma.done.wait [#allocation3], 512  }
 0x581   :  { %5820 = vsyncadd [#allocation3], 4294966784 }
 0x582   :  { %4910 = vsyncpa [#allocation3], 1 }

</bundles_post_ra>
